<compile_context>
chip_gen: v5e
topology: v5e:2x2
jax: 0.10.0
libtpu: 0.0.40
codegen_flags: <defaults>
</compile_context>

<pallas_src>
import functools

import jax
import jax.numpy as jnp
import numpy as np
from jax import lax
from jax.experimental import pallas as pl
from jax.experimental.pallas import tpu as pltpu

KSIZE = 7
PAD = KSIZE // 2


def _round_up(n, m):
    return ((n + m - 1) // m) * m


def _vmem_limit(bytes_needed):
    # 2x headroom over the double-buffered working set, clamped so we never ask
    # for the entire physical VMEM of a v7x TensorCore (64 MiB).
    return int(min(max(2 * bytes_needed, 8 * 2 ** 20), 48 * 2 ** 20))


def _pick_tk(in_dim, max_tk):
    """Largest K-tile that is a multiple of 128, <= max_tk and divides in_dim
    exactly (no zero padding of the dominant w1 / activation streams).  Falls
    back to a minimal pad to a multiple of 128 only if no such divisor exists."""
    def best_divisor(n):
        best, t = None, 128
        while t <= min(max_tk, n):
            if n % t == 0:
                best = t
            t += 128
        return best

    tk = best_divisor(in_dim)
    if tk is not None:
        return tk, in_dim
    in_dim_pad = _round_up(in_dim, 128)
    return (best_divisor(in_dim_pad) or 128), in_dim_pad


# ----------------------- Spatial attention (both streams fused) -----------------------
def _build_conv_matrices(w_conv, H, W):
    """Fold im2col + 7x7 'same' conv (2->1 channels, no bias) into two (P, P)
    matrices so that conv_out_flat = M_avg @ avg_flat + M_max @ max_flat."""
    K = w_conv.shape[-1]
    pad = K // 2
    P = H * W
    w = w_conv.reshape(2, K, K).astype(jnp.float32)
    pp = jnp.arange(P)
    ph, pw = pp // W, pp % W
    dy = ph[None, :] - ph[:, None] + pad      # (P_out, P_in) kernel row index
    dx = pw[None, :] - pw[:, None] + pad      # (P_out, P_in) kernel col index
    valid = (dy >= 0) & (dy < K) & (dx >= 0) & (dx < K)
    dyc = jnp.clip(dy, 0, K - 1)
    dxc = jnp.clip(dx, 0, K - 1)
    m_avg = jnp.where(valid, w[0][dyc, dxc], 0.0)   # (P, P)
    m_max = jnp.where(valid, w[1][dyc, dxc], 0.0)   # (P, P)
    return m_avg, m_max


def _make_spatial_attention_kernel(bb):
    def kernel(m_ref, x1_ref, x2_ref, o_ref):
        # m_ref : (2, 2, P, P) f32  folded conv matrices [stream, {avg, max}]
        # x*_ref: (bb, C, P)   f32  NCHW-flattened backbone features (one per stream)
        # o_ref : (bb, 2, P, C) bf16 gated features, channels-last (lane-dense store)
        for s, x_ref in ((0, x1_ref), (1, x2_ref)):
            m_avg = m_ref[s, 0]                                  # (P, P)
            m_max = m_ref[s, 1]
            for i in range(bb):                                  # static unroll, bb <= 8
                xs = x_ref[i].T                                  # (P, C) in-kernel transpose (XLU idle)
                avg = jnp.mean(xs, axis=1, keepdims=True)        # (P, 1) lane reduction over C
                mx = jnp.max(xs, axis=1, keepdims=True)          # (P, 1)
                logits = (jnp.dot(m_avg, avg, preferred_element_type=jnp.float32)
                          + jnp.dot(m_max, mx, preferred_element_type=jnp.float32))
                gated = xs * jax.nn.sigmoid(logits)              # broadcast gate over C lanes
                o_ref[i, s] = gated.astype(o_ref.dtype)          # bf16 store (halves HBM writeback)
    return kernel


def spatial_attention(x1, x2, m, *, bb):
    # x1, x2: (B, C, P) f32 ;  m: (2, 2, P, P) f32
    # returns (B, 2, P, C) bf16, channels-last, ready for a contiguous flatten.
    B, C, P = x1.shape
    need = (2 * 2 * bb * C * P * 4          # two double-buffered f32 input blocks
            + 2 * bb * 2 * P * C * 2        # double-buffered bf16 output block
            + 2 * m.size * 4)               # conv matrices
    return pl.pallas_call(
        _make_spatial_attention_kernel(bb),
        out_shape=jax.ShapeDtypeStruct((B, 2, P, C), jnp.bfloat16),
        grid=(B // bb,),
        in_specs=[
            pl.BlockSpec((2, 2, P, P), lambda b: (0, 0, 0, 0)),
            pl.BlockSpec((bb, C, P), lambda b: (b, 0, 0)),
            pl.BlockSpec((bb, C, P), lambda b: (b, 0, 0)),
        ],
        out_specs=pl.BlockSpec((bb, 2, P, C), lambda b: (b, 0, 0, 0)),
        compiler_params=pltpu.CompilerParams(
            dimension_semantics=("parallel",),
            vmem_limit_bytes=_vmem_limit(need)),
    )(m, x1, x2)


# ------------------------- MLP head, stage 1: K-tiled first GEMM ----------------------
def mlp_fc1_kernel(x_ref, w1_ref, b1_ref, h_ref, acc_ref):
    k = pl.program_id(1)

    @pl.when(k == 0)
    def _init():
        acc_ref[...] = jnp.zeros_like(acc_ref)

    # Native bf16 x bf16 -> f32 MXU path; w1 streamed from HBM as bf16, no upcast.
    acc_ref[...] += jnp.dot(x_ref[...], w1_ref[...],
                            preferred_element_type=jnp.float32)

    @pl.when(k == pl.num_programs(1) - 1)
    def _finish():
        h_ref[...] = jnp.maximum(acc_ref[...] + b1_ref[...], 0.0)


def mlp_fc1(x, w1, b1, *, tk):
    # x : (B, in_dim_pad) bf16 ; w1: (in_dim_pad, N1) bf16 ; b1: (1, N1) f32
    x = x.astype(jnp.bfloat16)
    B, in_dim_pad = x.shape
    N1 = w1.shape[1]
    tn = 128 if N1 % 128 == 0 else N1        # split N1 across cores (megacore on v7x)
    nj = N1 // tn
    kt = in_dim_pad // tk
    need = (2 * (B * tk * 2 + tk * tn * 2)   # double-buffered bf16 x / w1 tiles
            + 2 * B * tn * 4 + B * tn * 4    # output block + f32 accumulator
            + 2 * tn * 4)
    return pl.pallas_call(
        mlp_fc1_kernel,
        out_shape=jax.ShapeDtypeStruct((B, N1), jnp.float32),
        grid=(nj, kt),
        in_specs=[
            pl.BlockSpec((B, tk), lambda j, k: (0, k)),
            pl.BlockSpec((tk, tn), lambda j, k: (k, j)),
            pl.BlockSpec((1, tn), lambda j, k: (0, j)),
        ],
        out_specs=pl.BlockSpec((B, tn), lambda j, k: (0, j)),
        scratch_shapes=[pltpu.VMEM((B, tn), jnp.float32)],
        compiler_params=pltpu.CompilerParams(
            dimension_semantics=("parallel", "arbitrary"),
            vmem_limit_bytes=_vmem_limit(need)),
    )(x, w1, b1)


# ------------------------------- MLP head, stage 2: tail ------------------------------
def mlp_tail_kernel(h_ref, w2_ref, b2_ref, w3_ref, b3_ref, o_ref):
    # Dropout(p=0.5) layers are identity in eval mode.
    h = jnp.maximum(
        jnp.dot(h_ref[...], w2_ref[...], preferred_element_type=jnp.float32) + b2_ref[...],
        0.0)
    o_ref[...] = (jnp.dot(h, w3_ref[...], preferred_element_type=jnp.float32)
                  + b3_ref[...])


def mlp_tail(h, w2, b2, w3, b3):
    B, N1 = h.shape
    N2 = w2.shape[1]
    NC = w3.shape[1]
    return pl.pallas_call(
        mlp_tail_kernel,
        out_shape=jax.ShapeDtypeStruct((B, NC), jnp.float32),
        grid=(1,),
        in_specs=[
            pl.BlockSpec((B, N1), lambda i: (0, 0)),
            pl.BlockSpec((N1, N2), lambda i: (0, 0)),
            pl.BlockSpec((1, N2), lambda i: (0, 0)),
            pl.BlockSpec((N2, NC), lambda i: (0, 0)),
            pl.BlockSpec((1, NC), lambda i: (0, 0)),
        ],
        out_specs=pl.BlockSpec((B, NC), lambda i: (0, 0)),
    )(h, w2, b2, w3, b3)


# ------------------------------ One-time weight preparation ---------------------------
def prepare_params(params, *, C, H, W, max_tk=14336):
    """Offline / init-time prep (must NOT be re-run per forward):
    folds the 7x7 convs into (P,P) matrices, permutes w1 rows from the PyTorch NCHW
    flatten order (stream, c, hw) to the kernels' channels-last order (stream, hw, c)
    and stores w1 in bf16.  max_tk=14336 gives 7 K-tiles at the real in_dim=100352."""
    P = H * W
    in_dim = 2 * P * C
    tk, in_dim_pad = _pick_tk(in_dim, max_tk)
    N1 = params["w1"].shape[1]

    m = jnp.stack([jnp.stack(_build_conv_matrices(params["sa1_w"], H, W)),
                   jnp.stack(_build_conv_matrices(params["sa2_w"], H, W))])   # (2,2,P,P)

    w1 = params["w1"].reshape(2, C, P, N1).transpose(0, 2, 1, 3).reshape(in_dim, N1)
    if in_dim_pad != in_dim:
        w1 = jnp.pad(w1, ((0, in_dim_pad - in_dim), (0, 0)))
    w1 = w1.astype(jnp.bfloat16)

    arrays = dict(
        m=m, w1=w1,
        b1=params["b1"].reshape(1, -1).astype(jnp.float32),
        w2=params["w2"], b2=params["b2"].reshape(1, -1),
        w3=params["w3"], b3=params["b3"].reshape(1, -1))
    meta = dict(tk=tk, in_dim_pad=in_dim_pad)
    return arrays, meta


# ------------------------------------ Full forward ------------------------------------
def dual_model_forward(feat1, feat2, m, w1, b1, w2, b2, w3, b3, *, tk, in_dim_pad, bb):
    # feat1/feat2: (1, B, C, H, W) backbone feature maps (mirrors torch.squeeze(dim=0)).
    x1 = jnp.squeeze(feat1, axis=0)           # (B, C, H, W)
    x2 = jnp.squeeze(feat2, axis=0)
    B, C, H, W = x1.shape
    P = H * W
    in_dim = 2 * P * C

    # (B, C, H, W) -> (B, C, P) is a free contiguous view; the NCHW -> channels-last
    # swap happens inside the attention kernel (no wrapper-side HBM round trip).
    gated = spatial_attention(x1.reshape(B, C, P), x2.reshape(B, C, P), m, bb=bb)

    x_flat = gated.reshape(B, in_dim)          # contiguous (stream, p, c) flatten, bf16
    if in_dim_pad != in_dim:                   # fallback only (tk normally divides in_dim)
        x_flat = jnp.pad(x_flat, ((0, 0), (0, in_dim_pad - in_dim)))

    h = mlp_fc1(x_flat, w1, b1, tk=tk)         # (B, 256) f32
    return mlp_tail(h, w2, b2, w3, b3)         # (B, num_classes) f32


def build_forward(meta, *, batch, bb=8):
    bb = max(d for d in range(1, min(bb, batch) + 1) if batch % d == 0)
    return jax.jit(functools.partial(dual_model_forward, tk=meta["tk"],
                                     in_dim_pad=meta["in_dim_pad"], bb=bb))


# ---------------------------------- Pure-JAX reference --------------------------------
def spatial_attention_ref(x, w_conv):
    avg = jnp.mean(x, axis=1, keepdims=True)
    mx = jnp.max(x, axis=1, keepdims=True)
    out = jnp.concatenate([avg, mx], axis=1)
    o = lax.conv_general_dilated(out, w_conv, (1, 1), [(PAD, PAD), (PAD, PAD)],
                                 dimension_numbers=("NCHW", "OIHW", "NCHW"))
    return x * jax.nn.sigmoid(o)


def forward_ref(feat1, feat2, params):
    x1 = spatial_attention_ref(jnp.squeeze(feat1, axis=0), params["sa1_w"])
    x2 = spatial_attention_ref(jnp.squeeze(feat2, axis=0), params["sa2_w"])
    x = jnp.concatenate((x1, x2), axis=1).reshape(x1.shape[0], -1)
    # Match the kernel's bf16 activation/weight storage for the first linear
    # (accumulation stays f32); w2/w3 path stays f32.
    xb = x.astype(jnp.bfloat16)
    w1b = params["w1"].astype(jnp.bfloat16)
    h = jnp.maximum(jnp.dot(xb, w1b, preferred_element_type=jnp.float32) + params["b1"], 0.0)
    h = jnp.maximum(h @ params["w2"] + params["b2"], 0.0)
    return h @ params["w3"] + params["b3"]


if __name__ == "__main__":
    # Post-backbone shapes: densenet121 features -> (B, C, 7, 7).  Real model has
    # C=1024 (in_dim=100352); C=64 keeps the toy small while still exercising the
    # no-pad K-tiling path (tk=896 -> 7 K-tiles), the 2-way N1 split and the
    # batched (Bb=4) attention grid.
    B, C, H, W = 8, 64, 7, 7
    num_classes = 5
    in_dim = 2 * C * H * W

    key = jax.random.PRNGKey(0)
    k = jax.random.split(key, 10)

    feat1 = jax.random.normal(k[0], (1, B, C, H, W), jnp.float32)
    feat2 = jax.random.normal(k[1], (1, B, C, H, W), jnp.float32)

    params = {
        "sa1_w": 0.05 * jax.random.normal(k[2], (1, 2, KSIZE, KSIZE), jnp.float32),
        "sa2_w": 0.05 * jax.random.normal(k[3], (1, 2, KSIZE, KSIZE), jnp.float32),
        "w1": 0.02 * jax.random.normal(k[4], (in_dim, 256), jnp.float32),
        "b1": 0.01 * jax.random.normal(k[5], (256,), jnp.float32),
        "w2": 0.02 * jax.random.normal(k[6], (256, 128), jnp.float32),
        "b2": 0.01 * jax.random.normal(k[7], (128,), jnp.float32),
        "w3": 0.02 * jax.random.normal(k[8], (128, num_classes), jnp.float32),
        "b3": 0.01 * jax.random.normal(k[9], (num_classes,), jnp.float32),
    }

    # One-time (offline) weight prep; max_tk=1024 so the toy in_dim (6272) still
    # exercises a multi-step K grid.  At real scale the default (14336) gives 7 tiles.
    arrays, meta = prepare_params(params, C=C, H=H, W=W, max_tk=1024)
    forward = build_forward(meta, batch=B, bb=4)

    out = forward(feat1, feat2, arrays["m"], arrays["w1"], arrays["b1"],
                  arrays["w2"], arrays["b2"], arrays["w3"], arrays["b3"])
    out = jax.block_until_ready(out)
    assert out.shape == (B, num_classes), out.shape

    ref = jax.block_until_ready(forward_ref(feat1, feat2, params))
    np.testing.assert_allclose(np.asarray(out), np.asarray(ref), rtol=1e-2, atol=2e-3)

    print("KERNEL_OK")
</pallas_src>

<mosaic_0001>
module attributes {stable_mosaic.version = 11 : i64} {
  func.func @kernel(%arg0: i32, %arg1: memref<2x2x49x49xf32, #tpu.memory_space<vmem>>, %arg2: memref<4x64x49xf32, #tpu.memory_space<vmem>>, %arg3: memref<4x64x49xf32, #tpu.memory_space<vmem>>, %arg4: memref<4x2x49x64xbf16, #tpu.memory_space<vmem>>) attributes {dimension_semantics = [#tpu.dimension_semantics<parallel>], iteration_bounds = array<i64: 2>, scalar_prefetch = 0 : i64, scratch_operands = 0 : i64, tpu.core_type = #tpu.core_type<tc>, window_params = [{pipeline_mode = #tpu.pipeline_mode<synchronous>, transform_indices = @transform_0, window_bounds = array<i64: 2, 2, 49, 49>}, {transform_indices = @transform_1, window_bounds = array<i64: 4, 64, 49>}, {transform_indices = @transform_2, window_bounds = array<i64: 4, 64, 49>}, {transform_indices = @transform_3, window_bounds = array<i64: 4, 2, 49, 64>}]} {
    %c0 = arith.constant 0 : index
    %c0_0 = arith.constant 0 : index
    %c0_1 = arith.constant 0 : index
    %c0_2 = arith.constant 0 : index
    %0 = vector.load %arg1[%c0, %c0_0, %c0_1, %c0_2] : memref<2x2x49x49xf32, #tpu.memory_space<vmem>>, vector<1x1x49x49xf32>
    %1 = vector.shape_cast %0 : vector<1x1x49x49xf32> to vector<49x49xf32>
    %c0_3 = arith.constant 0 : index
    %c1 = arith.constant 1 : index
    %c0_4 = arith.constant 0 : index
    %c0_5 = arith.constant 0 : index
    %2 = vector.load %arg1[%c0_3, %c1, %c0_4, %c0_5] : memref<2x2x49x49xf32, #tpu.memory_space<vmem>>, vector<1x1x49x49xf32>
    %3 = vector.shape_cast %2 : vector<1x1x49x49xf32> to vector<49x49xf32>
    %c0_6 = arith.constant 0 : index
    %c0_7 = arith.constant 0 : index
    %c0_8 = arith.constant 0 : index
    %4 = vector.load %arg2[%c0_6, %c0_7, %c0_8] : memref<4x64x49xf32, #tpu.memory_space<vmem>>, vector<1x64x49xf32>
    %5 = vector.shape_cast %4 : vector<1x64x49xf32> to vector<64x49xf32>
    %6 = tpu.transpose %5, [1, 0] : vector<64x49xf32> -> vector<49x64xf32>
    %cst = arith.constant dense<0.000000e+00> : vector<49xf32>
    %7 = vector.multi_reduction <add>, %6, %cst [1] : vector<49x64xf32> to vector<49xf32>
    %8 = vector.shape_cast %7 : vector<49xf32> to vector<49x1xf32>
    %cst_9 = arith.constant 6.400000e+01 : f32
    %9 = vector.broadcast %cst_9 : f32 to vector<49x1xf32>
    %10 = arith.divf %8, %9 : vector<49x1xf32>
    %cst_10 = arith.constant dense<0xFF800000> : vector<49xf32>
    %11 = vector.multi_reduction <maximumf>, %6, %cst_10 [1] : vector<49x64xf32> to vector<49xf32>
    %12 = vector.shape_cast %11 : vector<49xf32> to vector<49x1xf32>
    %cst_11 = arith.constant dense<0.000000e+00> : vector<49x1xf32>
    %13 = tpu.matmul %1, %10, %cst_11 {dimension_numbers = #tpu.dot_dimension_numbers<[1], [0], [0], [1], [0, 0, 1, 1], [], []>} : vector<49x49xf32>, vector<49x1xf32>, vector<49x1xf32> -> vector<49x1xf32>
    %cst_12 = arith.constant dense<0.000000e+00> : vector<49x1xf32>
    %14 = tpu.matmul %3, %12, %cst_12 {dimension_numbers = #tpu.dot_dimension_numbers<[1], [0], [0], [1], [0, 0, 1, 1], [], []>} : vector<49x49xf32>, vector<49x1xf32>, vector<49x1xf32> -> vector<49x1xf32>
    %15 = arith.addf %13, %14 : vector<49x1xf32>
    %16 = arith.negf %15 : vector<49x1xf32>
    %17 = math.exp %16 : vector<49x1xf32>
    %cst_13 = arith.constant 1.000000e+00 : f32
    %18 = vector.broadcast %cst_13 : f32 to vector<49x1xf32>
    %19 = arith.addf %18, %17 : vector<49x1xf32>
    %20 = arith.divf %18, %19 : vector<49x1xf32>
    %21 = vector.broadcast %20 : vector<49x1xf32> to vector<49x64xf32>
    %22 = arith.mulf %6, %21 : vector<49x64xf32>
    %23 = arith.truncf %22 : vector<49x64xf32> to vector<49x64xbf16>
    %c0_14 = arith.constant 0 : index
    %c0_15 = arith.constant 0 : index
    %c0_16 = arith.constant 0 : index
    %c0_17 = arith.constant 0 : index
    %24 = vector.load %arg4[%c0_14, %c0_15, %c0_16, %c0_17] : memref<4x2x49x64xbf16, #tpu.memory_space<vmem>>, vector<1x1x49x64xbf16>
    %25 = vector.shape_cast %24 : vector<1x1x49x64xbf16> to vector<49x64xbf16>
    %26 = vector.shape_cast %23 : vector<49x64xbf16> to vector<1x1x49x64xbf16>
    tpu.vector_store %arg4[%c0_14, %c0_15, %c0_16, %c0_17], %26 {strides = array<i32>} : memref<4x2x49x64xbf16, #tpu.memory_space<vmem>>, vector<1x1x49x64xbf16>,
    %c1_18 = arith.constant 1 : index
    %c0_19 = arith.constant 0 : index
    %c0_20 = arith.constant 0 : index
    %27 = vector.load %arg2[%c1_18, %c0_19, %c0_20] : memref<4x64x49xf32, #tpu.memory_space<vmem>>, vector<1x64x49xf32>
    %28 = vector.shape_cast %27 : vector<1x64x49xf32> to vector<64x49xf32>
    %29 = tpu.transpose %28, [1, 0] : vector<64x49xf32> -> vector<49x64xf32>
    %cst_21 = arith.constant dense<0.000000e+00> : vector<49xf32>
    %30 = vector.multi_reduction <add>, %29, %cst_21 [1] : vector<49x64xf32> to vector<49xf32>
    %31 = vector.shape_cast %30 : vector<49xf32> to vector<49x1xf32>
    %cst_22 = arith.constant 6.400000e+01 : f32
    %32 = vector.broadcast %cst_22 : f32 to vector<49x1xf32>
    %33 = arith.divf %31, %32 : vector<49x1xf32>
    %cst_23 = arith.constant dense<0xFF800000> : vector<49xf32>
    %34 = vector.multi_reduction <maximumf>, %29, %cst_23 [1] : vector<49x64xf32> to vector<49xf32>
    %35 = vector.shape_cast %34 : vector<49xf32> to vector<49x1xf32>
    %cst_24 = arith.constant dense<0.000000e+00> : vector<49x1xf32>
    %36 = tpu.matmul %1, %33, %cst_24 {dimension_numbers = #tpu.dot_dimension_numbers<[1], [0], [0], [1], [0, 0, 1, 1], [], []>} : vector<49x49xf32>, vector<49x1xf32>, vector<49x1xf32> -> vector<49x1xf32>
    %cst_25 = arith.constant dense<0.000000e+00> : vector<49x1xf32>
    %37 = tpu.matmul %3, %35, %cst_25 {dimension_numbers = #tpu.dot_dimension_numbers<[1], [0], [0], [1], [0, 0, 1, 1], [], []>} : vector<49x49xf32>, vector<49x1xf32>, vector<49x1xf32> -> vector<49x1xf32>
    %38 = arith.addf %36, %37 : vector<49x1xf32>
    %39 = arith.negf %38 : vector<49x1xf32>
    %40 = math.exp %39 : vector<49x1xf32>
    %cst_26 = arith.constant 1.000000e+00 : f32
    %41 = vector.broadcast %cst_26 : f32 to vector<49x1xf32>
    %42 = arith.addf %41, %40 : vector<49x1xf32>
    %43 = arith.divf %41, %42 : vector<49x1xf32>
    %44 = vector.broadcast %43 : vector<49x1xf32> to vector<49x64xf32>
    %45 = arith.mulf %29, %44 : vector<49x64xf32>
    %46 = arith.truncf %45 : vector<49x64xf32> to vector<49x64xbf16>
    %c1_27 = arith.constant 1 : index
    %c0_28 = arith.constant 0 : index
    %c0_29 = arith.constant 0 : index
    %c0_30 = arith.constant 0 : index
    %47 = vector.load %arg4[%c1_27, %c0_28, %c0_29, %c0_30] : memref<4x2x49x64xbf16, #tpu.memory_space<vmem>>, vector<1x1x49x64xbf16>
    %48 = vector.shape_cast %47 : vector<1x1x49x64xbf16> to vector<49x64xbf16>
    %49 = vector.shape_cast %46 : vector<49x64xbf16> to vector<1x1x49x64xbf16>
    tpu.vector_store %arg4[%c1_27, %c0_28, %c0_29, %c0_30], %49 {strides = array<i32>} : memref<4x2x49x64xbf16, #tpu.memory_space<vmem>>, vector<1x1x49x64xbf16>,
    %c2 = arith.constant 2 : index
    %c0_31 = arith.constant 0 : index
    %c0_32 = arith.constant 0 : index
    %50 = vector.load %arg2[%c2, %c0_31, %c0_32] : memref<4x64x49xf32, #tpu.memory_space<vmem>>, vector<1x64x49xf32>
    %51 = vector.shape_cast %50 : vector<1x64x49xf32> to vector<64x49xf32>
    %52 = tpu.transpose %51, [1, 0] : vector<64x49xf32> -> vector<49x64xf32>
    %cst_33 = arith.constant dense<0.000000e+00> : vector<49xf32>
    %53 = vector.multi_reduction <add>, %52, %cst_33 [1] : vector<49x64xf32> to vector<49xf32>
    %54 = vector.shape_cast %53 : vector<49xf32> to vector<49x1xf32>
    %cst_34 = arith.constant 6.400000e+01 : f32
    %55 = vector.broadcast %cst_34 : f32 to vector<49x1xf32>
    %56 = arith.divf %54, %55 : vector<49x1xf32>
    %cst_35 = arith.constant dense<0xFF800000> : vector<49xf32>
    %57 = vector.multi_reduction <maximumf>, %52, %cst_35 [1] : vector<49x64xf32> to vector<49xf32>
    %58 = vector.shape_cast %57 : vector<49xf32> to vector<49x1xf32>
    %cst_36 = arith.constant dense<0.000000e+00> : vector<49x1xf32>
    %59 = tpu.matmul %1, %56, %cst_36 {dimension_numbers = #tpu.dot_dimension_numbers<[1], [0], [0], [1], [0, 0, 1, 1], [], []>} : vector<49x49xf32>, vector<49x1xf32>, vector<49x1xf32> -> vector<49x1xf32>
    %cst_37 = arith.constant dense<0.000000e+00> : vector<49x1xf32>
    %60 = tpu.matmul %3, %58, %cst_37 {dimension_numbers = #tpu.dot_dimension_numbers<[1], [0], [0], [1], [0, 0, 1, 1], [], []>} : vector<49x49xf32>, vector<49x1xf32>, vector<49x1xf32> -> vector<49x1xf32>
    %61 = arith.addf %59, %60 : vector<49x1xf32>
    %62 = arith.negf %61 : vector<49x1xf32>
    %63 = math.exp %62 : vector<49x1xf32>
    %cst_38 = arith.constant 1.000000e+00 : f32
    %64 = vector.broadcast %cst_38 : f32 to vector<49x1xf32>
    %65 = arith.addf %64, %63 : vector<49x1xf32>
    %66 = arith.divf %64, %65 : vector<49x1xf32>
    %67 = vector.broadcast %66 : vector<49x1xf32> to vector<49x64xf32>
    %68 = arith.mulf %52, %67 : vector<49x64xf32>
    %69 = arith.truncf %68 : vector<49x64xf32> to vector<49x64xbf16>
    %c2_39 = arith.constant 2 : index
    %c0_40 = arith.constant 0 : index
    %c0_41 = arith.constant 0 : index
    %c0_42 = arith.constant 0 : index
    %70 = vector.load %arg4[%c2_39, %c0_40, %c0_41, %c0_42] : memref<4x2x49x64xbf16, #tpu.memory_space<vmem>>, vector<1x1x49x64xbf16>
    %71 = vector.shape_cast %70 : vector<1x1x49x64xbf16> to vector<49x64xbf16>
    %72 = vector.shape_cast %69 : vector<49x64xbf16> to vector<1x1x49x64xbf16>
    tpu.vector_store %arg4[%c2_39, %c0_40, %c0_41, %c0_42], %72 {strides = array<i32>} : memref<4x2x49x64xbf16, #tpu.memory_space<vmem>>, vector<1x1x49x64xbf16>,
    %c3 = arith.constant 3 : index
    %c0_43 = arith.constant 0 : index
    %c0_44 = arith.constant 0 : index
    %73 = vector.load %arg2[%c3, %c0_43, %c0_44] : memref<4x64x49xf32, #tpu.memory_space<vmem>>, vector<1x64x49xf32>
    %74 = vector.shape_cast %73 : vector<1x64x49xf32> to vector<64x49xf32>
    %75 = tpu.transpose %74, [1, 0] : vector<64x49xf32> -> vector<49x64xf32>
    %cst_45 = arith.constant dense<0.000000e+00> : vector<49xf32>
    %76 = vector.multi_reduction <add>, %75, %cst_45 [1] : vector<49x64xf32> to vector<49xf32>
    %77 = vector.shape_cast %76 : vector<49xf32> to vector<49x1xf32>
    %cst_46 = arith.constant 6.400000e+01 : f32
    %78 = vector.broadcast %cst_46 : f32 to vector<49x1xf32>
    %79 = arith.divf %77, %78 : vector<49x1xf32>
    %cst_47 = arith.constant dense<0xFF800000> : vector<49xf32>
    %80 = vector.multi_reduction <maximumf>, %75, %cst_47 [1] : vector<49x64xf32> to vector<49xf32>
    %81 = vector.shape_cast %80 : vector<49xf32> to vector<49x1xf32>
    %cst_48 = arith.constant dense<0.000000e+00> : vector<49x1xf32>
    %82 = tpu.matmul %1, %79, %cst_48 {dimension_numbers = #tpu.dot_dimension_numbers<[1], [0], [0], [1], [0, 0, 1, 1], [], []>} : vector<49x49xf32>, vector<49x1xf32>, vector<49x1xf32> -> vector<49x1xf32>
    %cst_49 = arith.constant dense<0.000000e+00> : vector<49x1xf32>
    %83 = tpu.matmul %3, %81, %cst_49 {dimension_numbers = #tpu.dot_dimension_numbers<[1], [0], [0], [1], [0, 0, 1, 1], [], []>} : vector<49x49xf32>, vector<49x1xf32>, vector<49x1xf32> -> vector<49x1xf32>
    %84 = arith.addf %82, %83 : vector<49x1xf32>
    %85 = arith.negf %84 : vector<49x1xf32>
    %86 = math.exp %85 : vector<49x1xf32>
    %cst_50 = arith.constant 1.000000e+00 : f32
    %87 = vector.broadcast %cst_50 : f32 to vector<49x1xf32>
    %88 = arith.addf %87, %86 : vector<49x1xf32>
    %89 = arith.divf %87, %88 : vector<49x1xf32>
    %90 = vector.broadcast %89 : vector<49x1xf32> to vector<49x64xf32>
    %91 = arith.mulf %75, %90 : vector<49x64xf32>
    %92 = arith.truncf %91 : vector<49x64xf32> to vector<49x64xbf16>
    %c3_51 = arith.constant 3 : index
    %c0_52 = arith.constant 0 : index
    %c0_53 = arith.constant 0 : index
    %c0_54 = arith.constant 0 : index
    %93 = vector.load %arg4[%c3_51, %c0_52, %c0_53, %c0_54] : memref<4x2x49x64xbf16, #tpu.memory_space<vmem>>, vector<1x1x49x64xbf16>
    %94 = vector.shape_cast %93 : vector<1x1x49x64xbf16> to vector<49x64xbf16>
    %95 = vector.shape_cast %92 : vector<49x64xbf16> to vector<1x1x49x64xbf16>
    tpu.vector_store %arg4[%c3_51, %c0_52, %c0_53, %c0_54], %95 {strides = array<i32>} : memref<4x2x49x64xbf16, #tpu.memory_space<vmem>>, vector<1x1x49x64xbf16>,
    %c1_55 = arith.constant 1 : index
    %c0_56 = arith.constant 0 : index
    %c0_57 = arith.constant 0 : index
    %c0_58 = arith.constant 0 : index
    %96 = vector.load %arg1[%c1_55, %c0_56, %c0_57, %c0_58] : memref<2x2x49x49xf32, #tpu.memory_space<vmem>>, vector<1x1x49x49xf32>
    %97 = vector.shape_cast %96 : vector<1x1x49x49xf32> to vector<49x49xf32>
    %c1_59 = arith.constant 1 : index
    %c1_60 = arith.constant 1 : index
    %c0_61 = arith.constant 0 : index
    %c0_62 = arith.constant 0 : index
    %98 = vector.load %arg1[%c1_59, %c1_60, %c0_61, %c0_62] : memref<2x2x49x49xf32, #tpu.memory_space<vmem>>, vector<1x1x49x49xf32>
    %99 = vector.shape_cast %98 : vector<1x1x49x49xf32> to vector<49x49xf32>
    %c0_63 = arith.constant 0 : index
    %c0_64 = arith.constant 0 : index
    %c0_65 = arith.constant 0 : index
    %100 = vector.load %arg3[%c0_63, %c0_64, %c0_65] : memref<4x64x49xf32, #tpu.memory_space<vmem>>, vector<1x64x49xf32>
    %101 = vector.shape_cast %100 : vector<1x64x49xf32> to vector<64x49xf32>
    %102 = tpu.transpose %101, [1, 0] : vector<64x49xf32> -> vector<49x64xf32>
    %cst_66 = arith.constant dense<0.000000e+00> : vector<49xf32>
    %103 = vector.multi_reduction <add>, %102, %cst_66 [1] : vector<49x64xf32> to vector<49xf32>
    %104 = vector.shape_cast %103 : vector<49xf32> to vector<49x1xf32>
    %cst_67 = arith.constant 6.400000e+01 : f32
    %105 = vector.broadcast %cst_67 : f32 to vector<49x1xf32>
    %106 = arith.divf %104, %105 : vector<49x1xf32>
    %cst_68 = arith.constant dense<0xFF800000> : vector<49xf32>
    %107 = vector.multi_reduction <maximumf>, %102, %cst_68 [1] : vector<49x64xf32> to vector<49xf32>
    %108 = vector.shape_cast %107 : vector<49xf32> to vector<49x1xf32>
    %cst_69 = arith.constant dense<0.000000e+00> : vector<49x1xf32>
    %109 = tpu.matmul %97, %106, %cst_69 {dimension_numbers = #tpu.dot_dimension_numbers<[1], [0], [0], [1], [0, 0, 1, 1], [], []>} : vector<49x49xf32>, vector<49x1xf32>, vector<49x1xf32> -> vector<49x1xf32>
    %cst_70 = arith.constant dense<0.000000e+00> : vector<49x1xf32>
    %110 = tpu.matmul %99, %108, %cst_70 {dimension_numbers = #tpu.dot_dimension_numbers<[1], [0], [0], [1], [0, 0, 1, 1], [], []>} : vector<49x49xf32>, vector<49x1xf32>, vector<49x1xf32> -> vector<49x1xf32>
    %111 = arith.addf %109, %110 : vector<49x1xf32>
    %112 = arith.negf %111 : vector<49x1xf32>
    %113 = math.exp %112 : vector<49x1xf32>
    %cst_71 = arith.constant 1.000000e+00 : f32
    %114 = vector.broadcast %cst_71 : f32 to vector<49x1xf32>
    %115 = arith.addf %114, %113 : vector<49x1xf32>
    %116 = arith.divf %114, %115 : vector<49x1xf32>
    %117 = vector.broadcast %116 : vector<49x1xf32> to vector<49x64xf32>
    %118 = arith.mulf %102, %117 : vector<49x64xf32>
    %119 = arith.truncf %118 : vector<49x64xf32> to vector<49x64xbf16>
    %c0_72 = arith.constant 0 : index
    %c1_73 = arith.constant 1 : index
    %c0_74 = arith.constant 0 : index
    %c0_75 = arith.constant 0 : index
    %120 = vector.load %arg4[%c0_72, %c1_73, %c0_74, %c0_75] : memref<4x2x49x64xbf16, #tpu.memory_space<vmem>>, vector<1x1x49x64xbf16>
    %121 = vector.shape_cast %120 : vector<1x1x49x64xbf16> to vector<49x64xbf16>
    %122 = vector.shape_cast %119 : vector<49x64xbf16> to vector<1x1x49x64xbf16>
    tpu.vector_store %arg4[%c0_72, %c1_73, %c0_74, %c0_75], %122 {strides = array<i32>} : memref<4x2x49x64xbf16, #tpu.memory_space<vmem>>, vector<1x1x49x64xbf16>,
    %c1_76 = arith.constant 1 : index
    %c0_77 = arith.constant 0 : index
    %c0_78 = arith.constant 0 : index
    %123 = vector.load %arg3[%c1_76, %c0_77, %c0_78] : memref<4x64x49xf32, #tpu.memory_space<vmem>>, vector<1x64x49xf32>
    %124 = vector.shape_cast %123 : vector<1x64x49xf32> to vector<64x49xf32>
    %125 = tpu.transpose %124, [1, 0] : vector<64x49xf32> -> vector<49x64xf32>
    %cst_79 = arith.constant dense<0.000000e+00> : vector<49xf32>
    %126 = vector.multi_reduction <add>, %125, %cst_79 [1] : vector<49x64xf32> to vector<49xf32>
    %127 = vector.shape_cast %126 : vector<49xf32> to vector<49x1xf32>
    %cst_80 = arith.constant 6.400000e+01 : f32
    %128 = vector.broadcast %cst_80 : f32 to vector<49x1xf32>
    %129 = arith.divf %127, %128 : vector<49x1xf32>
    %cst_81 = arith.constant dense<0xFF800000> : vector<49xf32>
    %130 = vector.multi_reduction <maximumf>, %125, %cst_81 [1] : vector<49x64xf32> to vector<49xf32>
    %131 = vector.shape_cast %130 : vector<49xf32> to vector<49x1xf32>
    %cst_82 = arith.constant dense<0.000000e+00> : vector<49x1xf32>
    %132 = tpu.matmul %97, %129, %cst_82 {dimension_numbers = #tpu.dot_dimension_numbers<[1], [0], [0], [1], [0, 0, 1, 1], [], []>} : vector<49x49xf32>, vector<49x1xf32>, vector<49x1xf32> -> vector<49x1xf32>
    %cst_83 = arith.constant dense<0.000000e+00> : vector<49x1xf32>
    %133 = tpu.matmul %99, %131, %cst_83 {dimension_numbers = #tpu.dot_dimension_numbers<[1], [0], [0], [1], [0, 0, 1, 1], [], []>} : vector<49x49xf32>, vector<49x1xf32>, vector<49x1xf32> -> vector<49x1xf32>
    %134 = arith.addf %132, %133 : vector<49x1xf32>
    %135 = arith.negf %134 : vector<49x1xf32>
    %136 = math.exp %135 : vector<49x1xf32>
    %cst_84 = arith.constant 1.000000e+00 : f32
    %137 = vector.broadcast %cst_84 : f32 to vector<49x1xf32>
    %138 = arith.addf %137, %136 : vector<49x1xf32>
    %139 = arith.divf %137, %138 : vector<49x1xf32>
    %140 = vector.broadcast %139 : vector<49x1xf32> to vector<49x64xf32>
    %141 = arith.mulf %125, %140 : vector<49x64xf32>
    %142 = arith.truncf %141 : vector<49x64xf32> to vector<49x64xbf16>
    %c1_85 = arith.constant 1 : index
    %c1_86 = arith.constant 1 : index
    %c0_87 = arith.constant 0 : index
    %c0_88 = arith.constant 0 : index
    %143 = vector.load %arg4[%c1_85, %c1_86, %c0_87, %c0_88] : memref<4x2x49x64xbf16, #tpu.memory_space<vmem>>, vector<1x1x49x64xbf16>
    %144 = vector.shape_cast %143 : vector<1x1x49x64xbf16> to vector<49x64xbf16>
    %145 = vector.shape_cast %142 : vector<49x64xbf16> to vector<1x1x49x64xbf16>
    tpu.vector_store %arg4[%c1_85, %c1_86, %c0_87, %c0_88], %145 {strides = array<i32>} : memref<4x2x49x64xbf16, #tpu.memory_space<vmem>>, vector<1x1x49x64xbf16>,
    %c2_89 = arith.constant 2 : index
    %c0_90 = arith.constant 0 : index
    %c0_91 = arith.constant 0 : index
    %146 = vector.load %arg3[%c2_89, %c0_90, %c0_91] : memref<4x64x49xf32, #tpu.memory_space<vmem>>, vector<1x64x49xf32>
    %147 = vector.shape_cast %146 : vector<1x64x49xf32> to vector<64x49xf32>
    %148 = tpu.transpose %147, [1, 0] : vector<64x49xf32> -> vector<49x64xf32>
    %cst_92 = arith.constant dense<0.000000e+00> : vector<49xf32>
    %149 = vector.multi_reduction <add>, %148, %cst_92 [1] : vector<49x64xf32> to vector<49xf32>
    %150 = vector.shape_cast %149 : vector<49xf32> to vector<49x1xf32>
    %cst_93 = arith.constant 6.400000e+01 : f32
    %151 = vector.broadcast %cst_93 : f32 to vector<49x1xf32>
    %152 = arith.divf %150, %151 : vector<49x1xf32>
    %cst_94 = arith.constant dense<0xFF800000> : vector<49xf32>
    %153 = vector.multi_reduction <maximumf>, %148, %cst_94 [1] : vector<49x64xf32> to vector<49xf32>
    %154 = vector.shape_cast %153 : vector<49xf32> to vector<49x1xf32>
    %cst_95 = arith.constant dense<0.000000e+00> : vector<49x1xf32>
    %155 = tpu.matmul %97, %152, %cst_95 {dimension_numbers = #tpu.dot_dimension_numbers<[1], [0], [0], [1], [0, 0, 1, 1], [], []>} : vector<49x49xf32>, vector<49x1xf32>, vector<49x1xf32> -> vector<49x1xf32>
    %cst_96 = arith.constant dense<0.000000e+00> : vector<49x1xf32>
    %156 = tpu.matmul %99, %154, %cst_96 {dimension_numbers = #tpu.dot_dimension_numbers<[1], [0], [0], [1], [0, 0, 1, 1], [], []>} : vector<49x49xf32>, vector<49x1xf32>, vector<49x1xf32> -> vector<49x1xf32>
    %157 = arith.addf %155, %156 : vector<49x1xf32>
    %158 = arith.negf %157 : vector<49x1xf32>
    %159 = math.exp %158 : vector<49x1xf32>
    %cst_97 = arith.constant 1.000000e+00 : f32
    %160 = vector.broadcast %cst_97 : f32 to vector<49x1xf32>
    %161 = arith.addf %160, %159 : vector<49x1xf32>
    %162 = arith.divf %160, %161 : vector<49x1xf32>
    %163 = vector.broadcast %162 : vector<49x1xf32> to vector<49x64xf32>
    %164 = arith.mulf %148, %163 : vector<49x64xf32>
    %165 = arith.truncf %164 : vector<49x64xf32> to vector<49x64xbf16>
    %c2_98 = arith.constant 2 : index
    %c1_99 = arith.constant 1 : index
    %c0_100 = arith.constant 0 : index
    %c0_101 = arith.constant 0 : index
    %166 = vector.load %arg4[%c2_98, %c1_99, %c0_100, %c0_101] : memref<4x2x49x64xbf16, #tpu.memory_space<vmem>>, vector<1x1x49x64xbf16>
    %167 = vector.shape_cast %166 : vector<1x1x49x64xbf16> to vector<49x64xbf16>
    %168 = vector.shape_cast %165 : vector<49x64xbf16> to vector<1x1x49x64xbf16>
    tpu.vector_store %arg4[%c2_98, %c1_99, %c0_100, %c0_101], %168 {strides = array<i32>} : memref<4x2x49x64xbf16, #tpu.memory_space<vmem>>, vector<1x1x49x64xbf16>,
    %c3_102 = arith.constant 3 : index
    %c0_103 = arith.constant 0 : index
    %c0_104 = arith.constant 0 : index
    %169 = vector.load %arg3[%c3_102, %c0_103, %c0_104] : memref<4x64x49xf32, #tpu.memory_space<vmem>>, vector<1x64x49xf32>
    %170 = vector.shape_cast %169 : vector<1x64x49xf32> to vector<64x49xf32>
    %171 = tpu.transpose %170, [1, 0] : vector<64x49xf32> -> vector<49x64xf32>
    %cst_105 = arith.constant dense<0.000000e+00> : vector<49xf32>
    %172 = vector.multi_reduction <add>, %171, %cst_105 [1] : vector<49x64xf32> to vector<49xf32>
    %173 = vector.shape_cast %172 : vector<49xf32> to vector<49x1xf32>
    %cst_106 = arith.constant 6.400000e+01 : f32
    %174 = vector.broadcast %cst_106 : f32 to vector<49x1xf32>
    %175 = arith.divf %173, %174 : vector<49x1xf32>
    %cst_107 = arith.constant dense<0xFF800000> : vector<49xf32>
    %176 = vector.multi_reduction <maximumf>, %171, %cst_107 [1] : vector<49x64xf32> to vector<49xf32>
    %177 = vector.shape_cast %176 : vector<49xf32> to vector<49x1xf32>
    %cst_108 = arith.constant dense<0.000000e+00> : vector<49x1xf32>
    %178 = tpu.matmul %97, %175, %cst_108 {dimension_numbers = #tpu.dot_dimension_numbers<[1], [0], [0], [1], [0, 0, 1, 1], [], []>} : vector<49x49xf32>, vector<49x1xf32>, vector<49x1xf32> -> vector<49x1xf32>
    %cst_109 = arith.constant dense<0.000000e+00> : vector<49x1xf32>
    %179 = tpu.matmul %99, %177, %cst_109 {dimension_numbers = #tpu.dot_dimension_numbers<[1], [0], [0], [1], [0, 0, 1, 1], [], []>} : vector<49x49xf32>, vector<49x1xf32>, vector<49x1xf32> -> vector<49x1xf32>
    %180 = arith.addf %178, %179 : vector<49x1xf32>
    %181 = arith.negf %180 : vector<49x1xf32>
    %182 = math.exp %181 : vector<49x1xf32>
    %cst_110 = arith.constant 1.000000e+00 : f32
    %183 = vector.broadcast %cst_110 : f32 to vector<49x1xf32>
    %184 = arith.addf %183, %182 : vector<49x1xf32>
    %185 = arith.divf %183, %184 : vector<49x1xf32>
    %186 = vector.broadcast %185 : vector<49x1xf32> to vector<49x64xf32>
    %187 = arith.mulf %171, %186 : vector<49x64xf32>
    %188 = arith.truncf %187 : vector<49x64xf32> to vector<49x64xbf16>
    %c3_111 = arith.constant 3 : index
    %c1_112 = arith.constant 1 : index
    %c0_113 = arith.constant 0 : index
    %c0_114 = arith.constant 0 : index
    %189 = vector.load %arg4[%c3_111, %c1_112, %c0_113, %c0_114] : memref<4x2x49x64xbf16, #tpu.memory_space<vmem>>, vector<1x1x49x64xbf16>
    %190 = vector.shape_cast %189 : vector<1x1x49x64xbf16> to vector<49x64xbf16>
    %191 = vector.shape_cast %188 : vector<49x64xbf16> to vector<1x1x49x64xbf16>
    tpu.vector_store %arg4[%c3_111, %c1_112, %c0_113, %c0_114], %191 {strides = array<i32>} : memref<4x2x49x64xbf16, #tpu.memory_space<vmem>>, vector<1x1x49x64xbf16>,
    return
  }
  func.func @transform_0(%arg0: i32) -> (i32, i32, i32, i32) {
    %c0_i32 = arith.constant 0 : i32
    %c0_i32_0 = arith.constant 0 : i32
    %c0_i32_1 = arith.constant 0 : i32
    %c0_i32_2 = arith.constant 0 : i32
    %c0_i32_3 = arith.constant 0 : i32
    return %c0_i32, %c0_i32_0, %c0_i32_1, %c0_i32_2 : i32, i32, i32, i32
  }
  func.func @transform_1(%arg0: i32) -> (i32, i32, i32) {
    %c0_i32 = arith.constant 0 : i32
    %c0_i32_0 = arith.constant 0 : i32
    %c0_i32_1 = arith.constant 0 : i32
    return %arg0, %c0_i32, %c0_i32_0 : i32, i32, i32
  }
  func.func @transform_2(%arg0: i32) -> (i32, i32, i32) {
    %c0_i32 = arith.constant 0 : i32
    %c0_i32_0 = arith.constant 0 : i32
    %c0_i32_1 = arith.constant 0 : i32
    return %arg0, %c0_i32, %c0_i32_0 : i32, i32, i32
  }
  func.func @transform_3(%arg0: i32) -> (i32, i32, i32, i32) {
    %c0_i32 = arith.constant 0 : i32
    %c0_i32_0 = arith.constant 0 : i32
    %c0_i32_1 = arith.constant 0 : i32
    %c0_i32_2 = arith.constant 0 : i32
    return %arg0, %c0_i32, %c0_i32_0, %c0_i32_1 : i32, i32, i32, i32
  }
}

module attributes {stable_mosaic.version = 11 : i64} {
  func.func @mlp_fc1_kernel(%arg0: i32, %arg1: i32, %arg2: memref<8x896xbf16, #tpu.memory_space<vmem>>, %arg3: memref<896x128xbf16, #tpu.memory_space<vmem>>, %arg4: memref<1x128xf32, #tpu.memory_space<vmem>>, %arg5: memref<8x128xf32, #tpu.memory_space<vmem>>, %arg6: memref<8x128xf32, #tpu.memory_space<vmem>>) attributes {dimension_semantics = [#tpu.dimension_semantics<parallel>, #tpu.dimension_semantics<arbitrary>], iteration_bounds = array<i64: 2, 7>, scalar_prefetch = 0 : i64, scratch_operands = 1 : i64, tpu.core_type = #tpu.core_type<tc>, window_params = [{transform_indices = @transform_0, window_bounds = array<i64: 8, 896>}, {transform_indices = @transform_1, window_bounds = array<i64: 896, 128>}, {transform_indices = @transform_2, window_bounds = array<i64: 1, 128>}, {transform_indices = @transform_3, window_bounds = array<i64: 8, 128>}]} {
    %c0_i32 = arith.constant 0 : i32
    %0 = arith.cmpi eq, %arg1, %c0_i32 : i32
    %1 = arith.extui %0 : i1 to i32
    %c0_i32_0 = arith.constant 0 : i32
    %2 = arith.cmpi ne, %1, %c0_i32_0 : i32
    scf.if %2 {
      %cst_9 = arith.constant 0.000000e+00 : f32
      %12 = vector.broadcast %cst_9 : f32 to vector<8x128xf32>
      %c0_10 = arith.constant 0 : index
      %c0_11 = arith.constant 0 : index
      %13 = vector.load %arg6[%c0_10, %c0_11] : memref<8x128xf32, #tpu.memory_space<vmem>>, vector<8x128xf32>
      tpu.vector_store %arg6[%c0_10, %c0_11], %12 {strides = array<i32>} : memref<8x128xf32, #tpu.memory_space<vmem>>, vector<8x128xf32>,
    } else {
    }
    %c0 = arith.constant 0 : index
    %c0_1 = arith.constant 0 : index
    %3 = vector.load %arg6[%c0, %c0_1] : memref<8x128xf32, #tpu.memory_space<vmem>>, vector<8x128xf32>
    %c0_2 = arith.constant 0 : index
    %c0_3 = arith.constant 0 : index
    %4 = vector.load %arg2[%c0_2, %c0_3] : memref<8x896xbf16, #tpu.memory_space<vmem>>, vector<8x896xbf16>
    %c0_4 = arith.constant 0 : index
    %c0_5 = arith.constant 0 : index
    %5 = vector.load %arg3[%c0_4, %c0_5] : memref<896x128xbf16, #tpu.memory_space<vmem>>, vector<896x128xbf16>
    %cst = arith.constant dense<0.000000e+00> : vector<8x128xf32>
    %6 = tpu.matmul %4, %5, %cst {dimension_numbers = #tpu.dot_dimension_numbers<[1], [0], [0], [1], [0, 0, 1, 1], [], []>} : vector<8x896xbf16>, vector<896x128xbf16>, vector<8x128xf32> -> vector<8x128xf32>
    %7 = arith.addf %3, %6 : vector<8x128xf32>
    %c0_6 = arith.constant 0 : index
    %c0_7 = arith.constant 0 : index
    %8 = vector.load %arg6[%c0_6, %c0_7] : memref<8x128xf32, #tpu.memory_space<vmem>>, vector<8x128xf32>
    tpu.vector_store %arg6[%c0_6, %c0_7], %7 {strides = array<i32>} : memref<8x128xf32, #tpu.memory_space<vmem>>, vector<8x128xf32>,
    %c6_i32 = arith.constant 6 : i32
    %9 = arith.cmpi eq, %arg1, %c6_i32 : i32
    %10 = arith.extui %9 : i1 to i32
    %c0_i32_8 = arith.constant 0 : i32
    %11 = arith.cmpi ne, %10, %c0_i32_8 : i32
    scf.if %11 {
      %c0_9 = arith.constant 0 : index
      %c0_10 = arith.constant 0 : index
      %12 = vector.load %arg6[%c0_9, %c0_10] : memref<8x128xf32, #tpu.memory_space<vmem>>, vector<8x128xf32>
      %c0_11 = arith.constant 0 : index
      %c0_12 = arith.constant 0 : index
      %13 = vector.load %arg4[%c0_11, %c0_12] : memref<1x128xf32, #tpu.memory_space<vmem>>, vector<1x128xf32>
      %14 = vector.broadcast %13 : vector<1x128xf32> to vector<8x128xf32>
      %15 = arith.addf %12, %14 : vector<8x128xf32>
      %cst_13 = arith.constant 0.000000e+00 : f32
      %16 = vector.broadcast %cst_13 : f32 to vector<8x128xf32>
      %17 = arith.maximumf %15, %16 : vector<8x128xf32>
      %c0_14 = arith.constant 0 : index
      %c0_15 = arith.constant 0 : index
      %18 = vector.load %arg5[%c0_14, %c0_15] : memref<8x128xf32, #tpu.memory_space<vmem>>, vector<8x128xf32>
      tpu.vector_store %arg5[%c0_14, %c0_15], %17 {strides = array<i32>} : memref<8x128xf32, #tpu.memory_space<vmem>>, vector<8x128xf32>,
    } else {
    }
    return
  }
  func.func @transform_0(%arg0: i32, %arg1: i32) -> (i32, i32) {
    %c0_i32 = arith.constant 0 : i32
    %c0_i32_0 = arith.constant 0 : i32
    return %c0_i32, %arg1 : i32, i32
  }
  func.func @transform_1(%arg0: i32, %arg1: i32) -> (i32, i32) {
    %c0_i32 = arith.constant 0 : i32
    return %arg1, %arg0 : i32, i32
  }
  func.func @transform_2(%arg0: i32, %arg1: i32) -> (i32, i32) {
    %c0_i32 = arith.constant 0 : i32
    %c0_i32_0 = arith.constant 0 : i32
    return %c0_i32, %arg0 : i32, i32
  }
  func.func @transform_3(%arg0: i32, %arg1: i32) -> (i32, i32) {
    %c0_i32 = arith.constant 0 : i32
    %c0_i32_0 = arith.constant 0 : i32
    return %c0_i32, %arg0 : i32, i32
  }
}

module attributes {stable_mosaic.version = 11 : i64} {
  func.func @mlp_tail_kernel(%arg0: i32, %arg1: memref<8x256xf32, #tpu.memory_space<vmem>>, %arg2: memref<256x128xf32, #tpu.memory_space<vmem>>, %arg3: memref<1x128xf32, #tpu.memory_space<vmem>>, %arg4: memref<128x5xf32, #tpu.memory_space<vmem>>, %arg5: memref<1x5xf32, #tpu.memory_space<vmem>>, %arg6: memref<8x5xf32, #tpu.memory_space<vmem>>) attributes {dimension_semantics = [#tpu.dimension_semantics<arbitrary>], iteration_bounds = array<i64: 1>, scalar_prefetch = 0 : i64, scratch_operands = 0 : i64, tpu.core_type = #tpu.core_type<tc>, window_params = [{pipeline_mode = #tpu.pipeline_mode<synchronous>, transform_indices = @transform_0, window_bounds = array<i64: 8, 256>}, {pipeline_mode = #tpu.pipeline_mode<synchronous>, transform_indices = @transform_1, window_bounds = array<i64: 256, 128>}, {pipeline_mode = #tpu.pipeline_mode<synchronous>, transform_indices = @transform_2, window_bounds = array<i64: 1, 128>}, {pipeline_mode = #tpu.pipeline_mode<synchronous>, transform_indices = @transform_3, window_bounds = array<i64: 128, 5>}, {pipeline_mode = #tpu.pipeline_mode<synchronous>, transform_indices = @transform_4, window_bounds = array<i64: 1, 5>}, {pipeline_mode = #tpu.pipeline_mode<synchronous>, transform_indices = @transform_5, window_bounds = array<i64: 8, 5>}]} {
    %c0 = arith.constant 0 : index
    %c0_0 = arith.constant 0 : index
    %0 = vector.load %arg1[%c0, %c0_0] : memref<8x256xf32, #tpu.memory_space<vmem>>, vector<8x256xf32>
    %c0_1 = arith.constant 0 : index
    %c0_2 = arith.constant 0 : index
    %1 = vector.load %arg2[%c0_1, %c0_2] : memref<256x128xf32, #tpu.memory_space<vmem>>, vector<256x128xf32>
    %cst = arith.constant dense<0.000000e+00> : vector<8x128xf32>
    %2 = tpu.matmul %0, %1, %cst {dimension_numbers = #tpu.dot_dimension_numbers<[1], [0], [0], [1], [0, 0, 1, 1], [], []>} : vector<8x256xf32>, vector<256x128xf32>, vector<8x128xf32> -> vector<8x128xf32>
    %c0_3 = arith.constant 0 : index
    %c0_4 = arith.constant 0 : index
    %3 = vector.load %arg3[%c0_3, %c0_4] : memref<1x128xf32, #tpu.memory_space<vmem>>, vector<1x128xf32>
    %4 = vector.broadcast %3 : vector<1x128xf32> to vector<8x128xf32>
    %5 = arith.addf %2, %4 : vector<8x128xf32>
    %cst_5 = arith.constant 0.000000e+00 : f32
    %6 = vector.broadcast %cst_5 : f32 to vector<8x128xf32>
    %7 = arith.maximumf %5, %6 : vector<8x128xf32>
    %c0_6 = arith.constant 0 : index
    %c0_7 = arith.constant 0 : index
    %8 = vector.load %arg4[%c0_6, %c0_7] : memref<128x5xf32, #tpu.memory_space<vmem>>, vector<128x5xf32>
    %cst_8 = arith.constant dense<0.000000e+00> : vector<8x5xf32>
    %9 = tpu.matmul %7, %8, %cst_8 {dimension_numbers = #tpu.dot_dimension_numbers<[1], [0], [0], [1], [0, 0, 1, 1], [], []>} : vector<8x128xf32>, vector<128x5xf32>, vector<8x5xf32> -> vector<8x5xf32>
    %c0_9 = arith.constant 0 : index
    %c0_10 = arith.constant 0 : index
    %10 = vector.load %arg5[%c0_9, %c0_10] : memref<1x5xf32, #tpu.memory_space<vmem>>, vector<1x5xf32>
    %11 = vector.broadcast %10 : vector<1x5xf32> to vector<8x5xf32>
    %12 = arith.addf %9, %11 : vector<8x5xf32>
    %c0_11 = arith.constant 0 : index
    %c0_12 = arith.constant 0 : index
    %13 = vector.load %arg6[%c0_11, %c0_12] : memref<8x5xf32, #tpu.memory_space<vmem>>, vector<8x5xf32>
    tpu.vector_store %arg6[%c0_11, %c0_12], %12 {strides = array<i32>} : memref<8x5xf32, #tpu.memory_space<vmem>>, vector<8x5xf32>,
    return
  }
  func.func @transform_0(%arg0: i32) -> (i32, i32) {
    %c0_i32 = arith.constant 0 : i32
    %c0_i32_0 = arith.constant 0 : i32
    %c0_i32_1 = arith.constant 0 : i32
    return %c0_i32, %c0_i32_0 : i32, i32
  }
  func.func @transform_1(%arg0: i32) -> (i32, i32) {
    %c0_i32 = arith.constant 0 : i32
    %c0_i32_0 = arith.constant 0 : i32
    %c0_i32_1 = arith.constant 0 : i32
    return %c0_i32, %c0_i32_0 : i32, i32
  }
  func.func @transform_2(%arg0: i32) -> (i32, i32) {
    %c0_i32 = arith.constant 0 : i32
    %c0_i32_0 = arith.constant 0 : i32
    %c0_i32_1 = arith.constant 0 : i32
    return %c0_i32, %c0_i32_0 : i32, i32
  }
  func.func @transform_3(%arg0: i32) -> (i32, i32) {
    %c0_i32 = arith.constant 0 : i32
    %c0_i32_0 = arith.constant 0 : i32
    %c0_i32_1 = arith.constant 0 : i32
    return %c0_i32, %c0_i32_0 : i32, i32
  }
  func.func @transform_4(%arg0: i32) -> (i32, i32) {
    %c0_i32 = arith.constant 0 : i32
    %c0_i32_0 = arith.constant 0 : i32
    %c0_i32_1 = arith.constant 0 : i32
    return %c0_i32, %c0_i32_0 : i32, i32
  }
  func.func @transform_5(%arg0: i32) -> (i32, i32) {
    %c0_i32 = arith.constant 0 : i32
    %c0_i32_0 = arith.constant 0 : i32
    %c0_i32_1 = arith.constant 0 : i32
    return %c0_i32, %c0_i32_0 : i32, i32
  }
}

</mosaic_0001>

<bundles_post_ra>
// kernel: dual_model_forward.5
= control target key start
LH: loop header
LB: loop body
LE: loop exit
PB: predicated region body
PF: predicated region fallthrough
CT: control target
= control target key end

     0   :  { %10 = vsyncpa [#allocation3], 0  ;;  %s415_s0 = inlined_call_operand.vmem [shape: f32[8,256], index: 0, kind: input, shape index: {}]   ;;  %s416_s1 = inlined_call_operand.hbm [shape: f32[256,128], index: 1, kind: input, shape index: {}]   ;;  %s417_s2 = inlined_call_operand.hbm [shape: f32[1,128], index: 2, kind: input, shape index: {}]   ;;  %s418_s3 = inlined_call_operand.vmem [shape: f32[128,5], index: 3, kind: input, shape index: {}]   ;;  %s419_s4 = inlined_call_operand.hbm [shape: f32[1,5], index: 4, kind: input, shape index: {}]   ;;  %s420_s5 = inlined_call_operand.hbm [shape: f32[8,5], index: 5, kind: output, shape index: {}]  }
   0x1   :  { %11 = vsyncpa [#allocation6], 0  ;;  %s33_s20 = sshll.u32 %s417_s2, 4  ;;  %s34_s20 = int_to_ptr.hbm [resolvable:$true] %s33_s20 }
   0x2   :  { %12 = vsyncpa [#allocation4], 0  ;;  %s313_s21 = smov [#allocation5]   ;;  %s19_s25 = sshll.u32 %s416_s1, 4  ;;  %s20_s25 = int_to_ptr.hbm [resolvable:$true] %s19_s25 }
   0x3   :  { %s35_s22 = sshll.u32 %s313_s21, 4  ;;  %s314_s26 = smov [#allocation2]   ;;  %s36_s22 = int_to_ptr.vmem [resolvable:$true] %s35_s22 }
   0x4   :  { %38 = dma.hbm_to_vmem [thread:$0]  %s34_s20, 16, %s36_s22, [#allocation6]  }
   0x5   :  { %s21_s27 = sshll.u32 %s314_s26, 4  ;;  %s315_s28 = smov 128   ;;  %s22_s27 = int_to_ptr.vmem [resolvable:$true] %s21_s27 }
   0x6   :  { %s316_s29 = smov 8   ;;  %s46_s2 = sshll.u32 %s419_s4, 4  ;;  %s47_s2 = int_to_ptr.hbm [resolvable:$true] %s46_s2 }
   0x7   :  { %27 = dma.hbm_to_vmem [thread:$0]  %s20_s25, 4096, %s22_s27, [#allocation3], %s315_s28, %s315_s28, %s316_s29  }
   0x8   :  { %s317_s7 = smov [#allocation7]  }
   0x9   :  { %s48_s8 = sshll.u32 %s317_s7, 4  ;;  %s49_s8 = int_to_ptr.vmem [resolvable:$true] %s48_s8 }
   0xa   :  { %51 = dma.hbm_to_vmem [thread:$0]  %s47_s2, 16, %s49_s8, [#allocation6]  }
   0xb   :  { %307 = dma.done.wait [#allocation3], 4096  }
   0xc   :  { %308 = vsyncadd [#allocation3], 4294963200 }
   0xd   :  { %309 = dma.done.wait [#allocation6], 32  }
   0xe   :  { %310 = vsyncadd [#allocation6], 4294967264  ;;  %v81_v0 = vld [vmem:[#allocation2 + $0x78] sm:$0xff]  ;;  %v80_v1 = vld [vmem:[#allocation2 + $0x70] sm:$0xff]  ;;  %s318_s14 = smov [#allocation8]   ;;  %s192_s18 = sshll.u32 %s420_s5, 4  ;;  %s193_s18 = int_to_ptr.hbm [resolvable:$true] %s192_s18 }
   0xf   :  { %v97_v2 = vld [vmem:[#allocation2 + $0xf8] sm:$0xff]  ;;  %102 = vmatpush.msra.mxu0 %v81_v0  ;;  %v96_v3 = vld [vmem:[#allocation2 + $0xf0] sm:$0xff]  ;;  %v79_v4 = vld [vmem:[#allocation2 + $0x68] sm:$0xff]  ;;  %s190_s15 = sshll.u32 %s318_s14, 4  ;;  %vm183_vm0 = vcmask 39936   ;;  %s191_s15 = int_to_ptr.vmem [resolvable:$true] %s190_s15 }
  0x10   :  { %122 = vmatpush.msra.mxu1 %v97_v2  ;;  %v95_v5 = vld [vmem:[#allocation2 + $0xe8] sm:$0xff]  ;;  %v78_v6 = vld [vmem:[#allocation2 + $0x60] sm:$0xff]  ;;  %v77_v8 = vld [vmem:[#allocation2 + $0x58] sm:$0xff] }
  0x11   :  { %103 = vmatpush.msra.mxu0 %v80_v1  ;;  %v94_v7 = vld [vmem:[#allocation2 + $0xe0] sm:$0xff]  ;;  %v93_v9 = vld [vmem:[#allocation2 + $0xd8] sm:$0xff]  ;;  %v76_v10 = vld [vmem:[#allocation2 + $0x50] sm:$0xff] }
  0x12   :  { %123 = vmatpush.msra.mxu1 %v96_v3  ;;  %v92_v11 = vld [vmem:[#allocation2 + $0xd0] sm:$0xff]  ;;  %v75_v12 = vld [vmem:[#allocation2 + $0x48] sm:$0xff]  ;;  %v158_v14 = vld [vmem:[%s418_s3 + $0x78] sm:$0xff] }
  0x13   :  { %104 = vmatpush.msra.mxu0 %v79_v4  ;;  %v91_v13 = vld [vmem:[#allocation2 + $0xc8] sm:$0xff]  ;;  %v157_v15 = vld [vmem:[%s418_s3 + $0x70] sm:$0xff]  ;;  %v74_v16 = vld [vmem:[#allocation2 + $0x40] sm:$0xff]  ;;  %163 = vmatpush.msra.mxu2 %v158_v14 }
  0x14   :  { %124 = vmatpush.msra.mxu1 %v95_v5  ;;  %v90_v17 = vld [vmem:[#allocation2 + $0xc0] sm:$0xff]  ;;  %v156_v18 = vld [vmem:[%s418_s3 + $0x68] sm:$0xff]  ;;  %v73_v19 = vld [vmem:[#allocation2 + $0x38] sm:$0xff] }
  0x15   :  { %105 = vmatpush.msra.mxu0 %v78_v6  ;;  %v89_v20 = vld [vmem:[#allocation2 + $0xb8] sm:$0xff]  ;;  %164 = vmatpush.msra.mxu2 %v157_v15  ;;  %v155_v21 = vld [vmem:[%s418_s3 + $0x60] sm:$0xff]  ;;  %v72_v22 = vld [vmem:[#allocation2 + $0x30] sm:$0xff] }
  0x16   :  { %125 = vmatpush.msra.mxu1 %v94_v7  ;;  %v88_v23 = vld [vmem:[#allocation2 + $0xb0] sm:$0xff]  ;;  %v154_v24 = vld [vmem:[%s418_s3 + $0x58] sm:$0xff]  ;;  %v71_v25 = vld [vmem:[#allocation2 + $0x28] sm:$0xff] }
  0x17   :  { %106 = vmatpush.msra.mxu0 %v77_v8  ;;  %165 = vmatpush.msra.mxu2 %v156_v18  ;;  %v87_v26 = vld [vmem:[#allocation2 + $0xa8] sm:$0xff]  ;;  %v153_v27 = vld [vmem:[%s418_s3 + $0x50] sm:$0xff]  ;;  %v70_v28 = vld [vmem:[#allocation2 + $0x20] sm:$0xff] }
  0x18   :  { %126 = vmatpush.msra.mxu1 %v93_v9  ;;  %v86_v29 = vld [vmem:[#allocation2 + $0xa0] sm:$0xff]  ;;  %v152_v30 = vld [vmem:[%s418_s3 + $0x48] sm:$0xff]  ;;  %v69_v31 = vld [vmem:[#allocation2 + $0x18] sm:$0xff] }
  0x19   :  { %107 = vmatpush.msra.mxu0 %v76_v10  ;;  %166 = vmatpush.msra.mxu2 %v155_v21  ;;  %v85_v32 = vld [vmem:[#allocation2 + $0x98] sm:$0xff]  ;;  %v151_v33 = vld [vmem:[%s418_s3 + $0x40] sm:$0xff]  ;;  %v68_v34 = vld [vmem:[#allocation2 + $0x10] sm:$0xff] }
  0x1a   :  { %127 = vmatpush.msra.mxu1 %v92_v11  ;;  %v84_v35 = vld [vmem:[#allocation2 + $0x90] sm:$0xff]  ;;  %v150_v36 = vld [vmem:[%s418_s3 + $0x38] sm:$0xff]  ;;  %v67_v37 = vld [vmem:[#allocation2 + $0x8] sm:$0xff] }
  0x1b   :  { %108 = vmatpush.msra.mxu0 %v75_v12  ;;  %167 = vmatpush.msra.mxu2 %v154_v24  ;;  %v83_v38 = vld [vmem:[#allocation2 + $0x88] sm:$0xff]  ;;  %v149_v39 = vld [vmem:[%s418_s3 + $0x30] sm:$0xff]  ;;  %v66_v40 = vld [vmem:[#allocation2] sm:$0xff] }
  0x1c   :  { %128 = vmatpush.msra.mxu1 %v91_v13  ;;  %v82_v41 = vld [vmem:[#allocation2 + $0x80] sm:$0xff]  ;;  %v65_v43 = vld [vmem:[%s415_s0 + $0x8] sm:$0xff]  ;;  %v146_v46 = vld [vmem:[%s418_s3 + $0x18] sm:$0xff] }
  0x1d   :  { %109 = vmatpush.msra.mxu0 %v74_v16  ;;  %168 = vmatpush.msra.mxu2 %v153_v27  ;;  %v64_v42 = vld [vmem:[%s415_s0] sm:$0xff]  ;;  %v148_v44 = vld [vmem:[%s418_s3 + $0x28] sm:$0xff]  ;;  %v145_v47 = vld [vmem:[%s418_s3 + $0x10] sm:$0xff] }
  0x1e   :  { %129 = vmatpush.msra.mxu1 %v90_v17  ;;  %v147_v45 = vld [vmem:[%s418_s3 + $0x20] sm:$0xff]  ;;  %v144_v48 = vld [vmem:[%s418_s3 + $0x8] sm:$0xff] }
  0x1f   :  { %110 = vmatpush.msra.mxu0 %v73_v19  ;;  %169 = vmatpush.msra.mxu2 %v152_v30  ;;  %v143_v49 = vld [vmem:[%s418_s3] sm:$0xff] }
  0x20   :  { %130 = vmatpush.msra.mxu1 %v89_v20  ;;  %v209_v50 = vld [vmem:[#allocation5] ss:$0 sm:$0xff]  ;;  %v210_v56 = vld [vmem:[#allocation7] ss:$0 sm:$0xff] }
  0x21   :  { %111 = vmatpush.msra.mxu0 %v72_v22  ;;  %170 = vmatpush.msra.mxu2 %v151_v33 }
  0x22   :  { %131 = vmatpush.msra.mxu1 %v88_v23 }
  0x23   :  { %112 = vmatpush.msra.mxu0 %v71_v25  ;;  %171 = vmatpush.msra.mxu2 %v150_v36 }
  0x24   :  { %132 = vmatpush.msra.mxu1 %v87_v26 }
  0x25   :  { %113 = vmatpush.msra.mxu0 %v70_v28  ;;  %172 = vmatpush.msra.mxu2 %v149_v39 }
  0x26   :  { %133 = vmatpush.msra.mxu1 %v86_v29 }
  0x27   :  { %114 = vmatpush.msra.mxu0 %v69_v31  ;;  %173 = vmatpush.msra.mxu2 %v148_v44 }
  0x28   :  { %134 = vmatpush.msra.mxu1 %v85_v32 }
  0x29   :  { %115 = vmatpush.msra.mxu0 %v68_v34  ;;  %174 = vmatpush.msra.mxu2 %v147_v45 }
  0x2a   :  { %135 = vmatpush.msra.mxu1 %v84_v35 }
  0x2b   :  { %116 = vmatpush.msra.mxu0 %v67_v37  ;;  %175 = vmatpush.msra.mxu2 %v146_v46 }
  0x2c   :  { %136 = vmatpush.msra.mxu1 %v83_v38 }
  0x2d   :  { %117 = vmatpush.msra.mxu0 %v66_v40  ;;  %176 = vmatpush.msra.mxu2 %v145_v47 }
  0x2e   :  { %137 = vmatpush.msra.mxu1 %v82_v41  ;;  %118 = vmatmul.f32.vlgmr.msra.gmra.mxu0 %v64_v42 }
  0x2f   :  { %138 = vmatmul.f32.vlgmr.msra.gmra.mxu1 %v65_v43  ;;  %177 = vmatpush.msra.mxu2 %v144_v48 }
  0x31   :  { %178 = vmatpush.msra.mxu2 %v143_v49 }
  0xab   :  { %v119_v51 = vpop.f32.mrf.mxu0 }
  0xac   :  { %v139_v52 = vpop.f32.mrf.mxu1  ;;  %v120_v53 = vadd.f32 %v209_v50, %v119_v51 }
  0xae   :  { %v140_v54 = vadd.f32 %v139_v52, %v120_v53 }
  0xb0   :  { %v142_v55 = vmax.f32 %v140_v54, 0.0 }
  0xb2   :  { %179 = vmatmul.f32.vlgmr.msra.gmra.mxu2 %v142_v55 }
 0x135   :  { %v180_v57 = vpop.f32.mrf.mxu2 }
 0x136   :  { %v181_v58 = vadd.f32 %v210_v56, %v180_v57 }
 0x138   :  { %184 = vst.msk [vmem:[#allocation8] sm:$0xff] %vm183_vm0, %v181_v58 }
 0x139   :  { %195 = dma.vmem_to_hbm [thread:$0]  %s191_s15, 128, %s193_s18, [#allocation4]  }
 0x13a   :  { %311 = dma.done.wait [#allocation4], 128  }
 0x13b   :  { %312 = vsyncadd [#allocation4], 4294967168 }
 0x13c   :  { %200 = vsyncpa [#allocation3], 1 }
 0x13d   :  { %201 = vsyncpa [#allocation6], 1 }
 0x13e   :  { %202 = vsyncpa [#allocation4], 1 }

// kernel: dual_model_forward.4
= control target key start
LH: loop header
LB: loop body
LE: loop exit
PB: predicated region body
PF: predicated region fallthrough
CT: control target
= control target key end

     0   :  { %s1803_s0 = inlined_call_operand.vmem [shape: bf16[8,6272], index: 0, kind: input, shape index: {}]   ;;  %s1804_s1 = inlined_call_operand.hbm [shape: bf16[6272,256], index: 1, kind: input, shape index: {}]   ;;  %s1805_s2 = inlined_call_operand.hbm [shape: f32[1,256], index: 2, kind: input, shape index: {}]   ;;  %s1806_s3 = inlined_call_operand.vmem [shape: f32[8,256], index: 3, kind: output, shape index: {}]  }
   0x1   :  { %1808 = sst [smem:[#allocation10_spill]] %s1804_s1 }
   0x2   :  { %8 = vsyncpa [#allocation4], 0 }
   0x3   :  { %10 = vsyncpa [#allocation4 + $0x1], 0 }
   0x4   :  { %11 = vsyncpa [#allocation6], 0 }
   0x5   :  { %13 = vsyncpa [#allocation6 + $0x1], 0  ;;  %s1543_s12 = smov 0   ;;  %s1545_s13 = smov 0  }
   0x6   :  { %s1547_s14 = smov 0   ;;  %s1549_s15 = smov 0  }
   0x7   :  { %s1551_s16 = smov 0   ;;  %s1553_s17 = smov 0  }
   0x8   :  { %s1555_s18 = smov 0   ;;  %s1557_s19 = smov 0  }
   0x9   :  { %s1559_s20 = smov 0   ;;  %s1561_s21 = smov 0  }
   0xa   :  { %s1563_s22 = smov 0  }
   0xb LB: > { %s28_s23 = sadd.s32 1, %s1509_s20  ;;  %p73_p1 = scmp.ne.s32.totalorder %s1497_s17, %s1493_s16  ;;  %s1517_s22 = sphi %s1563_s22, %s19_s22   ;;  %s1513_s21 = sphi %s1561_s21, %s1826_s21   ;;  %s1509_s20 = sphi %s1559_s20, %s1825_s20   ;;  %s1505_s19 = sphi %s1557_s19, %s1824_s19   ;;  %s1501_s18 = sphi %s1555_s18, %s1823_s18   ;;  %s1497_s17 = sphi %s1553_s17, %s1822_s17   ;;  %s1493_s16 = sphi %s1551_s16, %s1821_s16   ;;  %s1489_s15 = sphi %s1549_s15, %s1820_s15   ;;  %s1485_s14 = sphi %s1547_s14, %s1819_s14   ;;  %s1481_s13 = sphi %s1545_s13, %s1818_s13   ;;  %s1477_s12 = sphi %s1543_s12, %s1817_s12  }
   0xc   : > { %p1599_p0 = scmp.ge.s32.totalorder %s28_s23, 7  ;;  %p74_p2 = scmp.eq.s32.totalorder %s1517_s22, 0 }
   0xd   : > { %p1269_p4 = scmp.lt.s32.totalorder %s1517_s22, 14  ;;  %s66_s25 = sadd.s32 1, %s1497_s17 }
   0xe   : > { %s1828_s23 = smov (%p1599_p0, %s28_s23), 0  ;;  %p75_p3 = por %p74_p2, %p73_p1 }
   0xf   : > { %s164_s26 = sand.u32 1, %s1497_s17   ;;  %s1199_s28 = smul.u32 224, %s1509_s20 }
  0x10   : > { %s1256_s27 = smul.u32 448, %s164_s26  ;;  %p1263_p5 = pnand %p1269_p4, %p75_p3 }
  0x11   : > { %s173_s29 = sadd.s32 %s1513_s21, %s1199_s28  ;;  %s1810_s1 = sld [smem:[#allocation10_spill]] }
  0x12   : > { %s168_s30 = scalar_lea.vmem [#allocation3], %s1256_s27  ;;  %s967_s5 = sshll.u32 %s173_s29, 2 }
  0x13   : > { %s178_s4 = sshll.u32 %s168_s30, 4  ;;  %s165_s10 = scalar_lea.sflag [#allocation4], %s164_s26  ;;  %s179_s4 = int_to_ptr.vmem [resolvable:$true] %s178_s4 }
  0x14   : > { %s1519_s11 = smov 128   ;;  %s1520_s27 = smov 64  }
  0x15   : > { %s1521_s28 = smov 4   ;;  %p968_p6 = scmp.ge.s32.totalorder %s1517_s22, 1 }
  0x16   : > { %p203_p7 = scmp.lt.s32.totalorder %s1517_s22, 15  ;;  %s962_s30 = sadd.s32 4294967295, %s1517_s22  }
  0x17   : > { %s175_s8 = scalar_lea.hbm %s1810_s1, %s967_s5  ;;  %s31_s5 = sadd.s32 1, %s1513_s21 }
  0x18   : > { %s176_s9 = sshll.u32 %s175_s8, 4  ;;  %p1624_p8 = pnand %p968_p6, %p203_p7  ;;  %s177_s9 = int_to_ptr.hbm [resolvable:$true] %s176_s9 }
  0x19   : > { %1265 = dma.hbm_to_vmem [thread:$0]  (!%p1263_p5), %s177_s9, 7168, %s179_s4, %s165_s10, %s1519_s11, %s1520_s27, %s1521_s28  }
  0x1a   : > { %p79_p9 = scmp.ne.s32.totalorder %s1493_s16, %s1489_s15  ;;  %s1830_s5 = smov (!%p1599_p0, %s31_s5), %s1513_s21 }
  0x1b   : > { %s61_s26 = ssub.s32 %s1509_s20, %s1828_s23  ;;  %p80_p10 = scmp.eq.s32.totalorder %s962_s30, 0 }
  0x1c   : > { %p33_p11 = scmp.ge.s32.totalorder %s1830_s5, 2  ;;  %p99_p12 = scmp.ne.s32.totalorder %s1485_s14, %s1481_s13 }
  0x1d   : > { %p1639_p13 = por %p80_p10, %p79_p9  ;;  %p105_p1 = scmp.ne.s32.totalorder %s1481_s13, %s1477_s12 }
  0x1e   : > { %s1832_s5 = smov (%p33_p11, %s1830_s5), 0  ;;  %s92_s15 = sadd.s32 1, %s1485_s14 }
  0x1f   : > { %1813 = sst [smem:[#allocation9_spill]] %s1832_s5  ;;  %p1648_p3 = por %p105_p1, %p80_p10 }
  0x20   : > { %s62_s6 = ssub.s32 %s1513_s21, %s1832_s5  ;;  %p1656_p0 = por %p99_p12, %p74_p2 }
  0x21   : > { %s63_s8 = sor.u32 %s62_s6, %s61_s26  ;;  %p90_p5 = scmp.eq.s32.totalorder %s62_s6, 0 }
  0x22   : > { %p64_p6 = scmp.eq.s32.totalorder %s63_s8, 0  ;;  %s188_s12 = sand.u32 1, %s1485_s14  }
  0x23   : > { %s1662_s9 = scalar_select %p90_p5, %s1485_s14, %s92_s15  }
  0x24   : > { %s1667_s10 = scalar_select %p64_p6, %s1497_s17, %s66_s25  }
  0x25   : > { %s194_s28 = scalar_lea.hbm %s1805_s2, %s1513_s21  ;;  %s191_s1 = scalar_lea.vmem [#allocation5], %s188_s12 }
  0x26   : > { %s196_s30 = sshll.u32 %s194_s28, 4  ;;  %s198_s5 = sshll.u32 %s191_s1, 4  ;;  %s197_s30 = int_to_ptr.hbm [resolvable:$true] %s196_s30  ;;  %s199_s5 = int_to_ptr.vmem [resolvable:$true] %s198_s5 }
  0x27   : > { %p1266_p2 = pnand %p1269_p4, %p1656_p0  ;;  %s189_s26 = scalar_lea.sflag [#allocation6], %s188_s12 }
  0x28   : > { %207 = sbr.rel (%p1624_p8) target bundleno = 274 (0x112), region = 32  ;;  %s209_s25 = sand.u32 (!%p1624_p8), 1, %s1493_s16  }
  0x29   : > { %1268 = dma.hbm_to_vmem [thread:$0]  (!%p1266_p2), %s197_s30, 16, %s199_s5, %s189_s26  }
  0x2a   : > { %s1257_s15 = smul.u32 (!%p1624_p8), 448, %s209_s25  ;;  %s210_s6 = scalar_lea.sflag (!%p1624_p8), [#allocation4], %s209_s25 }
  0x2c   : > { %s1680_s8 = scalar_lea.vmem (!%p1624_p8), [#allocation3], %s1257_s15 }
  0x2d   : > { %1468 = dma.done.wait (%p1639_p13), %s210_s6, 7168  }
  0x2e   : > { %1470 = vsyncadd (%p1639_p13), %s210_s6, 4294960128  ;;  %s219_s1 = sand.u32 1, %s1481_s13  }
  0x2f   : > { %s220_s7 = scalar_lea.sflag [#allocation6], %s219_s1  ;;  %s1687_s5 = scalar_lea.vmem [#allocation5], %s219_s1 }
  0x30   : > { %1472 = dma.done.wait (%p1648_p3), %s220_s7, 16  }
  0x31   : > { %1474 = vsyncadd (%p1648_p3), %s220_s7, 4294967280  ;;  %s254_s29 = smul.u32 7, %s1501_s18  ;;  %p261_p4 = scmp.lt.s32.totalorder %s1505_s19, 1 }
  0x32   : > { %p971_p8 = scmp.ne.s32.totalorder %s1501_s18, 0 }
  0x33   : > { %p255_p7 = scmp.lt.s32.totalorder %s254_s29, 48  ;;  %s1834_s19 = smov (!%p261_p4, %s1505_s19), 1 }
  0x34   : > { %s970_s4 = sshll.u32 %s1834_s19, 3  ;;  %268 = sbr.rel (%p971_p8) target bundleno = 59 (0x3b), region = 44 }
  0x35   : > { %s1836_s29 = smov (!%p255_p7, %s254_s29), 48  ;;  %s1699_s28 = scalar_lea.vmem %s1806_s3, %s970_s4 }
  0x36   : > { %s969_s12 = sshll.u32 %s1836_s29, 2 }
  0x37   : > { %s1704_s24 = scalar_lea.vmem %s1803_s0, %s969_s12 }
  0x39   : > { %v1522_v0 = vmov 0.0  }
  0x3a   : > { %269 = vst [vmem:[#allocation2] sm:$0xff] %v1522_v0 }
  0x3b PF: > { %v1207_v1 = vld [vmem:[%s1680_s8 + $0x38] sm:$0xff]  ;;  %v1206_v4 = vld [vmem:[%s1680_s8 + $0x30] sm:$0xff]  ;;  %v1205_v8 = vld [vmem:[%s1680_s8 + $0x28] sm:$0xff]  ;;  %p1196_p9 = scmp.ne.s32.totalorder %s1501_s18, 6 }
  0x3c   : > { %v1215_v2 = vld [vmem:[%s1680_s8 + $0x78] sm:$0xff]  ;;  %748 = vmatpush.bf16.msra.mxu0 %v1207_v1  ;;  %v1214_v5 = vld [vmem:[%s1680_s8 + $0x70] sm:$0xff]  ;;  %v1213_v9 = vld [vmem:[%s1680_s8 + $0x68] sm:$0xff] }
  0x3d   : > { %v1223_v3 = vld [vmem:[%s1680_s8 + $0xb8] sm:$0xff]  ;;  %761 = vmatpush.bf16.msra.mxu1 %v1215_v2  ;;  %v1222_v6 = vld [vmem:[%s1680_s8 + $0xb0] sm:$0xff]  ;;  %v1221_v10 = vld [vmem:[%s1680_s8 + $0xa8] sm:$0xff] }
  0x3e   : > { %774 = vmatpush.bf16.msra.mxu2 %v1223_v3  ;;  %v1231_v7 = vld [vmem:[%s1680_s8 + $0xf8] sm:$0xff]  ;;  %v1230_v11 = vld [vmem:[%s1680_s8 + $0xf0] sm:$0xff]  ;;  %v1204_v12 = vld [vmem:[%s1680_s8 + $0x20] sm:$0xff] }
  0x3f   : > { %787 = vmatpush.bf16.msra.mxu3 %v1231_v7  ;;  %v1212_v13 = vld [vmem:[%s1680_s8 + $0x60] sm:$0xff]  ;;  %v1229_v15 = vld [vmem:[%s1680_s8 + $0xe8] sm:$0xff]  ;;  %v1203_v16 = vld [vmem:[%s1680_s8 + $0x18] sm:$0xff] }
  0x40   : > { %749 = vmatpush.bf16.msra.mxu0 %v1206_v4  ;;  %v1220_v14 = vld [vmem:[%s1680_s8 + $0xa0] sm:$0xff]  ;;  %v1211_v17 = vld [vmem:[%s1680_s8 + $0x58] sm:$0xff]  ;;  %v1202_v20 = vld [vmem:[%s1680_s8 + $0x10] sm:$0xff] }
  0x41   : > { %762 = vmatpush.bf16.msra.mxu1 %v1214_v5  ;;  %v1219_v18 = vld [vmem:[%s1680_s8 + $0x98] sm:$0xff]  ;;  %v1228_v19 = vld [vmem:[%s1680_s8 + $0xe0] sm:$0xff]  ;;  %v1210_v21 = vld [vmem:[%s1680_s8 + $0x50] sm:$0xff] }
  0x42   : > { %775 = vmatpush.bf16.msra.mxu2 %v1222_v6  ;;  %v1218_v22 = vld [vmem:[%s1680_s8 + $0x90] sm:$0xff]  ;;  %v1227_v23 = vld [vmem:[%s1680_s8 + $0xd8] sm:$0xff]  ;;  %v1201_v24 = vld [vmem:[%s1680_s8 + $0x8] sm:$0xff] }
  0x43   : > { %788 = vmatpush.bf16.msra.mxu3 %v1230_v11  ;;  %v1209_v25 = vld [vmem:[%s1680_s8 + $0x48] sm:$0xff]  ;;  %v271_v26 = vld [vmem:[%s1704_s24] sm:$0xff]  ;;  %v1226_v28 = vld [vmem:[%s1680_s8 + $0xd0] sm:$0xff] }
  0x44   : > { %750 = vmatpush.bf16.msra.mxu0 %v1205_v8  ;;  %v1217_v27 = vld [vmem:[%s1680_s8 + $0x88] sm:$0xff]  ;;  %v272_v29 = vld [vmem:[%s1704_s24 + $0x8] sm:$0xff]  ;;  %v391_v30 = vunpack.c.l.b16 %v271_v26  ;;  %v392_v34 = vunpack.c.h.b16 %v271_v26  ;;  %v1239_v36 = vld [vmem:[%s1680_s8 + $0x138] sm:$0xff] }
  0x45   : > { %763 = vmatpush.bf16.msra.mxu1 %v1213_v9  ;;  %v1200_v31 = vld [vmem:[%s1680_s8] sm:$0xff]  ;;  %v393_v33 = vunpack.c.l.b16 %v272_v29  ;;  %v1247_v37 = vld [vmem:[%s1680_s8 + $0x178] sm:$0xff]  ;;  %v1225_v39 = vld [vmem:[%s1680_s8 + $0xc8] sm:$0xff]  ;;  %v394_v47 = vunpack.c.h.b16 %v272_v29 }
  0x46   : > { %776 = vmatpush.bf16.msra.mxu2 %v1221_v10  ;;  %v1208_v32 = vld [vmem:[%s1680_s8 + $0x40] sm:$0xff]  ;;  %v1255_v38 = vld [vmem:[%s1680_s8 + $0x1b8] sm:$0xff]  ;;  %v398_v40 = vpack.c.b16 %v391_v30, %v391_v30  ;;  %v399_v42 = vpack.c.b16 %v392_v34, %v392_v34  ;;  %v1238_v43 = vld [vmem:[%s1680_s8 + $0x130] sm:$0xff] }
  0x47   : > { %789 = vmatpush.bf16.msra.mxu3 %v1229_v15  ;;  %v1216_v35 = vld [vmem:[%s1680_s8 + $0x80] sm:$0xff]  ;;  %v400_v41 = vpack.c.b16 %v393_v33, %v393_v33  ;;  %v1246_v44 = vld [vmem:[%s1680_s8 + $0x170] sm:$0xff]  ;;  %v1237_v48 = vld [vmem:[%s1680_s8 + $0x128] sm:$0xff]  ;;  %v401_v51 = vpack.c.b16 %v394_v47, %v394_v47 }
  0x48   : > { %751 = vmatpush.bf16.msra.mxu0 %v1204_v12  ;;  %v1254_v45 = vld [vmem:[%s1680_s8 + $0x1b0] sm:$0xff]  ;;  %v1224_v46 = vld [vmem:[%s1680_s8 + $0xc0] sm:$0xff]  ;;  %v1245_v49 = vld [vmem:[%s1680_s8 + $0x168] sm:$0xff] }
  0x49   : > { %764 = vmatpush.bf16.msra.mxu1 %v1212_v13  ;;  %v1253_v50 = vld [vmem:[%s1680_s8 + $0x1a8] sm:$0xff]  ;;  %v1236_v52 = vld [vmem:[%s1680_s8 + $0x120] sm:$0xff]  ;;  %v1235_v55 = vld [vmem:[%s1680_s8 + $0x118] sm:$0xff] }
  0x4a   : > { %777 = vmatpush.bf16.msra.mxu2 %v1220_v14  ;;  %v1244_v53 = vld [vmem:[%s1680_s8 + $0x160] sm:$0xff]  ;;  %v1243_v56 = vld [vmem:[%s1680_s8 + $0x158] sm:$0xff]  ;;  %v1234_v58 = vld [vmem:[%s1680_s8 + $0x110] sm:$0xff] }
  0x4b   : > { %790 = vmatpush.bf16.msra.mxu3 %v1228_v19  ;;  %v1252_v54 = vld [vmem:[%s1680_s8 + $0x1a0] sm:$0xff]  ;;  %v1251_v57 = vld [vmem:[%s1680_s8 + $0x198] sm:$0xff]  ;;  %v1242_v59 = vld [vmem:[%s1680_s8 + $0x150] sm:$0xff] }
  0x4c   : > { %752 = vmatpush.bf16.msra.mxu0 %v1203_v16  ;;  %v1250_v60 = vld [vmem:[%s1680_s8 + $0x190] sm:$0xff]  ;;  %v1233_v61 = vld [vmem:[%s1680_s8 + $0x108] sm:$0xff]  ;;  %v1232_v3 = vld [vmem:[%s1680_s8 + $0x100] sm:$0xff] }
  0x4d   : > { %765 = vmatpush.bf16.msra.mxu1 %v1211_v17  ;;  %v273_v62 = vld [vmem:[%s1704_s24 + $0x10] sm:$0xff]  ;;  %v274_v1 = vld [vmem:[%s1704_s24 + $0x18] sm:$0xf]  ;;  %v1240_v6 = vld [vmem:[%s1680_s8 + $0x140] sm:$0xff] }
  0x4e   : > { %778 = vmatpush.bf16.msra.mxu2 %v1219_v18  ;;  %v1241_v63 = vld [vmem:[%s1680_s8 + $0x148] sm:$0xff]  ;;  %v395_v2 = vunpack.c.l.b16 %v273_v62  ;;  %v396_v4 = vunpack.c.h.b16 %v273_v62  ;;  %v397_v5 = vunpack.c.l.b16 %v274_v1  ;;  %v1248_v7 = vld [vmem:[%s1680_s8 + $0x180] sm:$0xff]  ;;  %v270_v26 = vld [vmem:[#allocation2] sm:$0xff] }
  0x4f   : > { %791 = vmatpush.bf16.msra.mxu3 %v1227_v23  ;;  %v1249_v0 = vld [vmem:[%s1680_s8 + $0x188] sm:$0xff] }
  0x50   : > { %753 = vmatpush.bf16.msra.mxu0 %v1202_v20  ;;  %v402_v8 = vpack.c.b16 %v395_v2, %v395_v2  ;;  %v403_v9 = vpack.c.b16 %v396_v4, %v396_v4  ;;  %v404_v10 = vpack.c.b16 %v397_v5, %v397_v5 }
  0x51   : > { %766 = vmatpush.bf16.msra.mxu1 %v1210_v21 }
  0x52   : > { %779 = vmatpush.bf16.msra.mxu2 %v1218_v22 }
  0x53   : > { %792 = vmatpush.bf16.msra.mxu3 %v1226_v28 }
  0x54   : > { %754 = vmatpush.bf16.msra.mxu0 %v1201_v24 }
  0x55   : > { %767 = vmatpush.bf16.msra.mxu1 %v1209_v25 }
  0x56   : > { %780 = vmatpush.bf16.msra.mxu2 %v1217_v27 }
  0x57   : > { %793 = vmatpush.bf16.msra.mxu3 %v1225_v39 }
  0x58   : > { %755 = vmatpush.bf16.msra.mxu0 %v1200_v31 }
  0x59   : > { %768 = vmatpush.bf16.msra.mxu1 %v1208_v32 }
  0x5a   : > { %781 = vmatpush.bf16.msra.mxu2 %v1216_v35 }
  0x5b   : > { %756 = vmatmul.bf16.vlgmr.msra.gmra.mxu0 %v398_v40  ;;  %794 = vmatpush.bf16.msra.mxu3 %v1224_v46 }
  0x5c   : > { %800 = vmatpush.bf16.msrb.mxu0 %v1239_v36  ;;  %769 = vmatmul.bf16.vlgmr.msra.gmra.mxu1 %v399_v42 }
  0x5d   : > { %813 = vmatpush.bf16.msrb.mxu1 %v1247_v37  ;;  %782 = vmatmul.bf16.vlgmr.msra.gmra.mxu2 %v400_v41 }
  0x5e   : > { %826 = vmatpush.bf16.msrb.mxu2 %v1255_v38  ;;  %795 = vmatmul.bf16.vlgmr.msra.gmra.mxu3 %v401_v51 }
  0x60   : > { %801 = vmatpush.bf16.msrb.mxu0 %v1238_v43 }
  0x61   : > { %814 = vmatpush.bf16.msrb.mxu1 %v1246_v44 }
  0x62   : > { %827 = vmatpush.bf16.msrb.mxu2 %v1254_v45 }
  0x64   : > { %802 = vmatpush.bf16.msrb.mxu0 %v1237_v48 }
  0x65   : > { %815 = vmatpush.bf16.msrb.mxu1 %v1245_v49 }
  0x66   : > { %828 = vmatpush.bf16.msrb.mxu2 %v1253_v50 }
  0x68   : > { %803 = vmatpush.bf16.msrb.mxu0 %v1236_v52 }
  0x69   : > { %816 = vmatpush.bf16.msrb.mxu1 %v1244_v53 }
  0x6a   : > { %829 = vmatpush.bf16.msrb.mxu2 %v1252_v54 }
  0x6c   : > { %804 = vmatpush.bf16.msrb.mxu0 %v1235_v55 }
  0x6d   : > { %817 = vmatpush.bf16.msrb.mxu1 %v1243_v56 }
  0x6e   : > { %830 = vmatpush.bf16.msrb.mxu2 %v1251_v57 }
  0x70   : > { %805 = vmatpush.bf16.msrb.mxu0 %v1234_v58 }
  0x71   : > { %818 = vmatpush.bf16.msrb.mxu1 %v1242_v59 }
  0x72   : > { %831 = vmatpush.bf16.msrb.mxu2 %v1250_v60 }
  0x74   : > { %806 = vmatpush.bf16.msrb.mxu0 %v1233_v61 }
  0x75   : > { %819 = vmatpush.bf16.msrb.mxu1 %v1241_v63 }
  0x76   : > { %832 = vmatpush.bf16.msrb.mxu2 %v1249_v0 }
  0x78   : > { %807 = vmatpush.bf16.msrb.mxu0 %v1232_v3 }
  0x79   : > { %820 = vmatpush.bf16.msrb.mxu1 %v1240_v6 }
  0x7a   : > { %833 = vmatpush.bf16.msrb.mxu2 %v1248_v7 }
  0x7b   : > { %808 = vmatmul.bf16.vlgmr.msrb.gmra.mxu0 %v402_v8 }
  0x7c   : > { %821 = vmatmul.bf16.vlgmr.msrb.gmra.mxu1 %v403_v9 }
  0x7d   : > { %834 = vmatmul.bf16.vlgmr.msrb.gmra.mxu2 %v404_v10 }
  0xd8   : > { %v757_v11 = vpop.f32.mrf.mxu0 }
  0xd9   : > { %v770_v12 = vpop.f32.mrf.mxu1 }
  0xda   : > { %v771_v18 = vadd.f32 %v770_v12, %v757_v11 }
  0xe0   : > { %v783_v13 = vpop.f32.mrf.mxu2  ;;  %v759_v14 = vpop.f32.mrf.mxu0 }
  0xe1   : > { %v772_v15 = vpop.f32.mrf.mxu1  ;;  %v796_v16 = vpop.f32.mrf.mxu3  ;;  %v784_v20 = vadd.f32 %v783_v13, %v771_v18 }
  0xe3   : > { %v797_v21 = vadd.f32 %v796_v16, %v784_v20 }
  0xe8   : > { %v785_v17 = vpop.f32.mrf.mxu2 }
  0xe9   : > { %v798_v19 = vpop.f32.mrf.mxu3 }
  0xf8   : > { %v809_v22 = vpop.f32.mrf.mxu0 }
  0xf9   : > { %v822_v23 = vpop.f32.mrf.mxu1  ;;  %v810_v24 = vadd.f32 %v809_v22, %v797_v21 }
  0xfb   : > { %v823_v25 = vadd.f32 %v822_v23, %v810_v24 }
 0x100   : > { %v835_v27 = vpop.f32.mrf.mxu2  ;;  %v811_v29 = vpop.f32.mrf.mxu0 }
 0x101   : > { %v836_v28 = vadd.f32 %v835_v27, %v823_v25  ;;  %v824_v30 = vpop.f32.mrf.mxu1 }
 0x103   : > { %v839_v31 = vadd.f32 %v836_v28, %v270_v26 }
 0x104   : > { %844 = sbr.rel (%p1196_p9) target bundleno = 274 (0x112), region = 48 }
 0x105   : > { %840 = vst [vmem:[#allocation2] sm:$0xff] %v839_v31 }
 0x108   : > { %v837_v32 = vpop.f32.mrf.mxu2 }
 0x109   : > { %v1362_v34 = vld [vmem:[%s1687_s5] ss:$0 sm:$0xff] }
 0x10c   : > { %v845_v33 = vld [vmem:[#allocation2] sm:$0xff] }
 0x10d   : > { %v850_v35 = vadd.f32 %v1362_v34, %v845_v33 }
 0x10f   : > { %v851_v36 = vmax.f32 %v850_v35, 0.0 }
 0x111   : > { %852 = vst [vmem:[%s1699_s28] sm:$0xff] %v851_v36 }
 0x112 PF: > { %s19_s22 = sadd.s32 1, %s1517_s22   ;;  %s1816_s25 = sld [smem:[#allocation9_spill]] }
 0x113   : > { %p16_p10 = scmp.ge.s32.totalorder %s19_s22, 16   ;;  %s1817_s12 = smov %s1481_s13 }
 0x114   : > { %s1818_s13 = smov %s1485_s14  ;;  %s1819_s14 = smov %s1662_s9 }
 0x115   : > { %s1820_s15 = smov %s1493_s16  ;;  %s1821_s16 = smov %s1497_s17 }
 0x116   : > { %s1822_s17 = smov %s1667_s10  ;;  %s1823_s18 = smov %s1509_s20 }
 0x117   : > { %s1824_s19 = smov %s1513_s21  ;;  %s1825_s20 = smov %s1828_s23 }
 0x118   : > { %s1826_s21 = smov %s1816_s25  ;;  %18 = sbr.rel (!%p16_p10) target bundleno = 11 (0xb), region = 96 }
 0x11d   :  { %872 = vsyncpa [#allocation4], 1 }
 0x11e   :  { %874 = vsyncpa [#allocation4 + $0x1], 1 }
 0x11f   :  { %875 = vsyncpa [#allocation6], 1 }
 0x120   :  { %877 = vsyncpa [#allocation6 + $0x1], 1 }

// kernel: dual_model_forward.3
= control target key start
LH: loop header
LB: loop body
LE: loop exit
PB: predicated region body
PF: predicated region fallthrough
CT: control target
= control target key end

     0   :  { %s3924_s12 = smov 0   ;;  %s6343_s0 = inlined_call_operand.vmem [shape: f32[2,2,49,49], index: 0, kind: input, shape index: {}]   ;;  %s6344_s1 = inlined_call_operand.vmem [shape: f32[8,64,49], index: 1, kind: input, shape index: {}]   ;;  %s6345_s2 = inlined_call_operand.vmem [shape: f32[8,64,49], index: 2, kind: input, shape index: {}]   ;;  %s6346_s3 = inlined_call_operand.vmem [shape: bf16[8,2,49,64], index: 3, kind: output, shape index: {}]  }
   0x1 LB: > { %s3313_s13 = sadd.s32 4294967295, %s3900_s12   ;;  %p3317_p0 = scmp.ge.s32.totalorder %s3900_s12, 1  ;;  %s3900_s12 = sphi %s3924_s12, %s13_s12  }
   0x2   : > { %p151_p1 = scmp.lt.s32.totalorder %s3900_s12, 3 }
   0x4   : > { %p152_p2 = pnand %p3317_p0, %p151_p1 }
   0x6   : > { %155 = sbr.rel (%p152_p2) target bundleno = 1385 (0x569), region = 32 }
   0xb   : > { %s3318_s14 = sshll.u32 %s3313_s13, 2  ;;  %vm259_vm0 = vcmask 523264   ;;  %vm278_vm1 = vcmask 516096   ;;  %vm339_vm2 = vcmask 1040384   ;;  %vm317_vm4 = vcmask 400384  }
   0xc   : > { %p184_p3 = scmp.lt.s32.totalorder %s3318_s14, 7 }
   0xe   : > { %s6630_s14 = smov (!%p184_p3, %s3318_s14), 7 }
   0xf   : > { %s3637_s15 = sshll.u32 %s6630_s14, 6  ;;  %s3639_s28 = smul.u32 56, %s6630_s14 }
  0x10   : > { %s3940_s18 = scalar_lea.vmem %s6344_s1, %s3637_s15  ;;  %s3971_s21 = scalar_lea.vmem %s6345_s2, %s3637_s15 }
  0x11   : > { %v3395_v0 = vld [vmem:[%s3940_s18 + $0x80] sm:$0xff]  ;;  %v3396_v3 = vld [vmem:[%s3940_s18 + $0x88] sm:$0xff]  ;;  %v3397_v6 = vld [vmem:[%s3940_s18 + $0x90] sm:$0xff]  ;;  %s5615_s30 = scalar_lea.vmem %s6346_s3, %s3639_s28 }
  0x12   : > { %v3356_v1 = vld [vmem:[%s3940_s18 + $0x40] sm:$0xff]  ;;  %1011 = vxpose.xlu1.b32.start [1/8] (short) (narrow) %v3395_v0, 56  ;;  %v3357_v4 = vld [vmem:[%s3940_s18 + $0x48] sm:$0xff]  ;;  %v3358_v7 = vld [vmem:[%s3940_s18 + $0x50] sm:$0xff] }
  0x13   : > { %v219_v2 = vld [vmem:[%s3940_s18] sm:$0xff]  ;;  %647 = vxpose.xlu2.b32.start [1/8] (short) (narrow) %v3356_v1, 56  ;;  %v220_v5 = vld [vmem:[%s3940_s18 + $0x8] sm:$0xff]  ;;  %v221_v8 = vld [vmem:[%s3940_s18 + $0x10] sm:$0xff] }
  0x14   : > { %227 = vxpose.xlu0.b32.start [1/8] (short) (narrow) %v219_v2, 56  ;;  %v3398_v9 = vld [vmem:[%s3940_s18 + $0x98] sm:$0xff]  ;;  %v3399_v12 = vld [vmem:[%s3940_s18 + $0xa0] sm:$0xff]  ;;  %v3400_v15 = vld [vmem:[%s3940_s18 + $0xa8] sm:$0xff] }
  0x15   : > { %v3359_v10 = vld [vmem:[%s3940_s18 + $0x58] sm:$0xff]  ;;  %v3360_v13 = vld [vmem:[%s3940_s18 + $0x60] sm:$0xff]  ;;  %v3361_v16 = vld [vmem:[%s3940_s18 + $0x68] sm:$0xff] }
  0x16   : > { %v222_v11 = vld [vmem:[%s3940_s18 + $0x18] sm:$0xff]  ;;  %v223_v14 = vld [vmem:[%s3940_s18 + $0x20] sm:$0xff]  ;;  %v224_v17 = vld [vmem:[%s3940_s18 + $0x28] sm:$0xff] }
  0x17   : > { %v3401_v18 = vld [vmem:[%s3940_s18 + $0xb0] sm:$0xff]  ;;  %v3402_v21 = vld [vmem:[%s3940_s18 + $0xb8] sm:$0xff]  ;;  %v1746_v24 = vld [vmem:[%s3971_s21] sm:$0xff] }
  0x18   : > { %v3362_v19 = vld [vmem:[%s3940_s18 + $0x70] sm:$0xff]  ;;  %v3363_v22 = vld [vmem:[%s3940_s18 + $0x78] sm:$0xff]  ;;  %v3434_v25 = vld [vmem:[%s3940_s18 + $0xc0] sm:$0xff] }
  0x19   : > { %v225_v20 = vld [vmem:[%s3940_s18 + $0x30] sm:$0xff]  ;;  %v226_v23 = vld [vmem:[%s3940_s18 + $0x38] sm:$0xff]  ;;  %v1747_v26 = vld [vmem:[%s3971_s21 + $0x8] sm:$0xff] }
  0x1a   : > { %1012 = vxpose.xlu1.b32.cont [2/8] (short) (narrow) %v3396_v3, 56  ;;  %v3435_v27 = vld [vmem:[%s3940_s18 + $0xc8] sm:$0xff]  ;;  %v1748_v28 = vld [vmem:[%s3971_s21 + $0x10] sm:$0xff]  ;;  %v1749_v30 = vld [vmem:[%s3971_s21 + $0x18] sm:$0xff] }
  0x1b   : > { %648 = vxpose.xlu2.b32.cont [2/8] (short) (narrow) %v3357_v4, 56  ;;  %v3436_v29 = vld [vmem:[%s3940_s18 + $0xd0] sm:$0xff]  ;;  %v3437_v31 = vld [vmem:[%s3940_s18 + $0xd8] sm:$0xff]  ;;  %v1750_v32 = vld [vmem:[%s3971_s21 + $0x20] sm:$0xff] }
  0x1c   : > { %228 = vxpose.xlu0.b32.cont [2/8] (short) (narrow) %v220_v5, 56  ;;  %v3438_v33 = vld [vmem:[%s3940_s18 + $0xe0] sm:$0xff]  ;;  %v1751_v34 = vld [vmem:[%s3971_s21 + $0x28] sm:$0xff]  ;;  %v1752_v36 = vld [vmem:[%s3971_s21 + $0x30] sm:$0xff] }
  0x1d   : > { %v3439_v35 = vld [vmem:[%s3940_s18 + $0xe8] sm:$0xff]  ;;  %v3440_v37 = vld [vmem:[%s3940_s18 + $0xf0] sm:$0xff]  ;;  %v1753_v38 = vld [vmem:[%s3971_s21 + $0x38] sm:$0xff] }
  0x1e   : > { %v3441_v39 = vld [vmem:[%s3940_s18 + $0xf8] sm:$0xff]  ;;  %v3518_v40 = vld [vmem:[%s3971_s21 + $0x40] sm:$0xff]  ;;  %v3519_v41 = vld [vmem:[%s3971_s21 + $0x48] sm:$0xff] }
  0x1f   : > { %v3520_v42 = vld [vmem:[%s3971_s21 + $0x50] sm:$0xff]  ;;  %v3521_v43 = vld [vmem:[%s3971_s21 + $0x58] sm:$0xff]  ;;  %v3522_v44 = vld [vmem:[%s3971_s21 + $0x60] sm:$0xff] }
  0x20   : > { %v3523_v46 = vld [vmem:[%s3971_s21 + $0x68] sm:$0xff]  ;;  %v3524_v49 = vld [vmem:[%s3971_s21 + $0x70] sm:$0xff]  ;;  %v3525_v52 = vld [vmem:[%s3971_s21 + $0x78] sm:$0xff] }
  0x22   : > { %1013 = vxpose.xlu1.b32.cont [3/8] (short) (narrow) %v3397_v6, 56 }
  0x23   : > { %649 = vxpose.xlu2.b32.cont [3/8] (short) (narrow) %v3358_v7, 56 }
  0x24   : > { %229 = vxpose.xlu0.b32.cont [3/8] (short) (narrow) %v221_v8, 56 }
  0x2a   : > { %1014 = vxpose.xlu1.b32.cont [4/8] (short) (narrow) %v3398_v9, 56 }
  0x2b   : > { %650 = vxpose.xlu2.b32.cont [4/8] (short) (narrow) %v3359_v10, 56 }
  0x2c   : > { %230 = vxpose.xlu0.b32.cont [4/8] (short) (narrow) %v222_v11, 56 }
  0x32   : > { %1015 = vxpose.xlu1.b32.cont [5/8] (short) (narrow) %v3399_v12, 56 }
  0x33   : > { %651 = vxpose.xlu2.b32.cont [5/8] (short) (narrow) %v3360_v13, 56 }
  0x34   : > { %231 = vxpose.xlu0.b32.cont [5/8] (short) (narrow) %v223_v14, 56 }
  0x3a   : > { %1016 = vxpose.xlu1.b32.cont [6/8] (short) (narrow) %v3400_v15, 56 }
  0x3b   : > { %652 = vxpose.xlu2.b32.cont [6/8] (short) (narrow) %v3361_v16, 56 }
  0x3c   : > { %232 = vxpose.xlu0.b32.cont [6/8] (short) (narrow) %v224_v17, 56 }
  0x42   : > { %1017 = vxpose.xlu1.b32.cont [7/8] (short) (narrow) %v3401_v18, 56 }
  0x43   : > { %653 = vxpose.xlu2.b32.cont [7/8] (short) (narrow) %v3362_v19, 56 }
  0x44   : > { %233 = vxpose.xlu0.b32.cont [7/8] (short) (narrow) %v225_v20, 56 }
  0x4a   : > { %1018 = vxpose.xlu1.b32.end [8/8] (short) (narrow) %v3402_v21, 56 }
  0x4b   : > { %654 = vxpose.xlu2.b32.end [8/8] (short) (narrow) %v3363_v22, 56 }
  0x4c   : > { %234 = vxpose.xlu0.b32.end [8/8] (short) (narrow) %v226_v23, 56 }
  0x52   : > { %1754 = vxpose.xlu1.b32.start [1/8] (short) (narrow) %v1746_v24, 56 }
  0x54   : > { %1375 = vxpose.xlu0.b32.start [1/8] (short) (narrow) %v3434_v25, 56 }
  0x5a   : > { %1755 = vxpose.xlu1.b32.cont [2/8] (short) (narrow) %v1747_v26, 56 }
  0x5c   : > { %1376 = vxpose.xlu0.b32.cont [2/8] (short) (narrow) %v3435_v27, 56 }
  0x62   : > { %1756 = vxpose.xlu1.b32.cont [3/8] (short) (narrow) %v1748_v28, 56 }
  0x64   : > { %1377 = vxpose.xlu0.b32.cont [3/8] (short) (narrow) %v3436_v29, 56 }
  0x6a   : > { %1757 = vxpose.xlu1.b32.cont [4/8] (short) (narrow) %v1749_v30, 56 }
  0x6c   : > { %1378 = vxpose.xlu0.b32.cont [4/8] (short) (narrow) %v3437_v31, 56 }
  0x72   : > { %1758 = vxpose.xlu1.b32.cont [5/8] (short) (narrow) %v1750_v32, 56 }
  0x74   : > { %1379 = vxpose.xlu0.b32.cont [5/8] (short) (narrow) %v3438_v33, 56 }
  0x7a   : > { %1759 = vxpose.xlu1.b32.cont [6/8] (short) (narrow) %v1751_v34, 56 }
  0x7c   : > { %1380 = vxpose.xlu0.b32.cont [6/8] (short) (narrow) %v3439_v35, 56 }
  0x82   : > { %1760 = vxpose.xlu1.b32.cont [7/8] (short) (narrow) %v1752_v36, 56 }
  0x84   : > { %1381 = vxpose.xlu0.b32.cont [7/8] (short) (narrow) %v3440_v37, 56 }
  0x8a   : > { %1761 = vxpose.xlu1.b32.end [8/8] (short) (narrow) %v1753_v38, 56 }
  0x8c   : > { %1382 = vxpose.xlu0.b32.end [8/8] (short) (narrow) %v3441_v39, 56 }
  0x94   : > { %2160 = vxpose.xlu0.b32.start [1/8] (short) (narrow) %v3518_v40, 56 }
  0x9c   : > { %2161 = vxpose.xlu0.b32.cont [2/8] (short) (narrow) %v3519_v41, 56 }
  0xa4   : > { %2162 = vxpose.xlu0.b32.cont [3/8] (short) (narrow) %v3520_v42, 56 }
  0xac   : > { %2163 = vxpose.xlu0.b32.cont [4/8] (short) (narrow) %v3521_v43, 56  ;;  %v4021_v60 = vpop.trf.xlu2 }
  0xad   : > { %6402 = vst [vmem:[#allocation7_spill] sm:$0xff] %v4021_v60  ;;  %v679_v26 = vsel %vm259_vm0, %v4021_v60, 0.0 }
  0xb4   : > { %2164 = vxpose.xlu0.b32.cont [5/8] (short) (narrow) %v3522_v44, 56  ;;  %v4031_v1 = vpop.trf.xlu2 }
  0xb5   : > { %6405 = vst [vmem:[#allocation10_spill] sm:$0xff] %v4031_v1  ;;  %v682_v29 = vsel %vm259_vm0, %v4031_v1, 0.0 }
  0xb6   : > { %v4011_v55 = vpop.trf.xlu1 }
  0xb7   : > { %6399 = vst [vmem:[#allocation4_spill] sm:$0xff] %v4011_v55  ;;  %v1071_v21 = vsel %vm259_vm0, %v4011_v55, -inf }
  0xb8   : > { %v3994_v45 = vpop.trf.xlu0 }
  0xb9   : > { %v296_v47 = vsel %vm259_vm0, %v3994_v45, -inf  ;;  %v260_v0 = vsel %vm259_vm0, %v3994_v45, 0.0 }
  0xbc   : > { %2165 = vxpose.xlu0.b32.cont [6/8] (short) (narrow) %v3523_v46, 56  ;;  %297 = vmax.xlane.f32.xlu2 %v296_v47  ;;  %v4041_v6 = vpop.trf.xlu2 }
  0xbd   : > { %6408 = vst [vmem:[#allocation13_spill] sm:$0xff] %v4041_v6  ;;  %v713_v7 = vsel %vm259_vm0, %v4041_v6, -inf  ;;  %v685_v34 = vsel %vm259_vm0, %v4041_v6, 0.0 }
  0xbe   : > { %v4017_v58 = vpop.trf.xlu1 }
  0xbf   : > { %6401 = vst [vmem:[#allocation6_spill] sm:$0xff] %v4017_v58  ;;  %v1046_v10 = vsel %vm259_vm0, %v4017_v58, 0.0 }
  0xc0   : > { %v3999_v48 = vpop.trf.xlu0 }
  0xc1   : > { %v263_v4 = vsel %vm259_vm0, %v3999_v48, 0.0  ;;  %v299_v14 = vsel %vm259_vm0, %v3999_v48, -inf }
  0xc4   : > { %2166 = vxpose.xlu0.b32.cont [7/8] (short) (narrow) %v3524_v49, 56  ;;  %v4059_v15 = vpop.trf.xlu2 }
  0xc5   : > { %6411 = vst [vmem:[#allocation16_spill] sm:$0xff] %v4059_v15  ;;  %v688_v38 = vsel %vm259_vm0, %v4059_v15, 0.0 }
  0xc6   : > { %v4027_v63 = vpop.trf.xlu1 }
  0xc7   : > { %6404 = vst [vmem:[#allocation9_spill] sm:$0xff] %v4027_v63  ;;  %v1077_v25 = vsel %vm259_vm0, %v4027_v63, -inf }
  0xc8   : > { %v4002_v50 = vpop.trf.xlu0 }
  0xc9   : > { %6397 = vst [vmem:[#allocation2_spill] sm:$0xff] %v4002_v50  ;;  %v266_v51 = vsel %vm259_vm0, %v4002_v50, 0.0  ;;  %v302_v54 = vsel %vm259_vm0, %v4002_v50, -inf }
  0xca   : > { %267 = vadd.xlane.f32.xlu2 %v266_v51 }
  0xcc   : > { %2167 = vxpose.xlu0.b32.end [8/8] (short) (narrow) %v3525_v52, 56  ;;  %v4067_v19 = vpop.trf.xlu2 }
  0xcd   : > { %6413 = vst [vmem:[#allocation18_spill] sm:$0xff] %v4067_v19  ;;  %v691_v43 = vsel %vm259_vm0, %v4067_v19, 0.0 }
  0xce   : > { %v4039_v5 = vpop.trf.xlu1 }
  0xcf   : > { %6407 = vst [vmem:[#allocation12_spill] sm:$0xff] %v4039_v5  ;;  %v1052_v13 = vsel %vm259_vm0, %v4039_v5, 0.0 }
  0xd0   : > { %v4007_v53 = vpop.trf.xlu0 }
  0xd1   : > { %6398 = vst [vmem:[#allocation3_spill] sm:$0xff] %v4007_v53  ;;  %v269_v56 = vsel %vm259_vm0, %v4007_v53, 0.0  ;;  %v305_v18 = vsel %vm259_vm0, %v4007_v53, -inf }
  0xd2   : > { %303 = vmax.xlane.f32.xlu2 %v302_v54 }
  0xd4   : > { %v4077_v24 = vpop.trf.xlu2 }
  0xd5   : > { %6416 = vst [vmem:[#allocation21_spill] sm:$0xff] %v4077_v24  ;;  %v694_v51 = vsel %vm259_vm0, %v4077_v24, 0.0 }
  0xd6   : > { %v4047_v9 = vpop.trf.xlu1 }
  0xd7   : > { %6409 = vst [vmem:[#allocation14_spill] sm:$0xff] %v4047_v9  ;;  %v1083_v28 = vsel %vm259_vm0, %v4047_v9, -inf }
  0xd8   : > { %v4015_v57 = vpop.trf.xlu0 }
  0xd9   : > { %6400 = vst [vmem:[#allocation5_spill] sm:$0xff] %v4015_v57  ;;  %v308_v59 = vsel %vm259_vm0, %v4015_v57, -inf  ;;  %v272_v8 = vsel %vm259_vm0, %v4015_v57, 0.0 }
  0xda   : > { %270 = vadd.xlane.f32.xlu2 %v269_v56 }
  0xdc   : > { %v4091_v31 = vpop.trf.xlu2 }
  0xdd   : > { %6419 = vst [vmem:[#allocation24_spill] sm:$0xff] %v4091_v31  ;;  %v697_v40 = vsel %vm278_vm1, %v4091_v31, 0.0  ;;  %v725_v47 = vsel %vm278_vm1, %v4091_v31, -inf }
  0xde   : > { %v4053_v12 = vpop.trf.xlu1 }
  0xdf   : > { %6410 = vst [vmem:[#allocation15_spill] sm:$0xff] %v4053_v12  ;;  %v1058_v17 = vsel %vm259_vm0, %v4053_v12, 0.0 }
  0xe0   : > { %v4023_v61 = vpop.trf.xlu0 }
  0xe1   : > { %6403 = vst [vmem:[#allocation8_spill] sm:$0xff] %v4023_v61  ;;  %v275_v62 = vsel %vm259_vm0, %v4023_v61, 0.0  ;;  %v311_v22 = vsel %vm259_vm0, %v4023_v61, -inf }
  0xe2   : > { %309 = vmax.xlane.f32.xlu2 %v308_v59  ;;  %v1043_v59 = vsel %vm259_vm0, %v4011_v55, 0.0 }
  0xe6   : > { %v4061_v16 = vpop.trf.xlu1 }
  0xe7   : > { %6412 = vst [vmem:[#allocation17_spill] sm:$0xff] %v4061_v16  ;;  %v1089_v33 = vsel %vm278_vm1, %v4061_v16, -inf }
  0xe8   : > { %v4033_v2 = vpop.trf.xlu0 }
  0xe9   : > { %6406 = vst [vmem:[#allocation11_spill] sm:$0xff] %v4033_v2  ;;  %v314_v3 = vsel %vm278_vm1, %v4033_v2, -inf  ;;  %v279_v11 = vsel %vm278_vm1, %v4033_v2, 0.0 }
  0xea   : > { %276 = vadd.xlane.f32.xlu2 %v275_v62  ;;  %261 = vadd.xlane.f32.xlu1 %v260_v0 }
  0xf2   : > { %315 = vmax.xlane.f32.xlu2 %v314_v3  ;;  %264 = vadd.xlane.f32.xlu1 %v263_v4  ;;  %v707_v3 = vsel %vm259_vm0, %v4021_v60, -inf }
  0xf6   : > { %v4069_v20 = vpop.trf.xlu1 }
  0xf7   : > { %6414 = vst [vmem:[#allocation19_spill] sm:$0xff] %v4069_v20 }
  0xf8   : > { %v4075_v23 = vpop.trf.xlu0 }
  0xf9   : > { %6415 = vst [vmem:[#allocation20_spill] sm:$0xff] %v4075_v23  ;;  %v1407_v39 = vsel %vm259_vm0, %v4075_v23, 0.0 }
  0xfa   : > { %714 = vmax.xlane.f32.xlu2 %v713_v7  ;;  %273 = vadd.xlane.f32.xlu1 %v272_v8  ;;  %v1049_v7 = vsel %vm259_vm0, %v4027_v63, 0.0 }
  0xfe   : > { %v4083_v27 = vpop.trf.xlu1 }
  0xff   : > { %6417 = vst [vmem:[#allocation22_spill] sm:$0xff] %v4083_v27 }
 0x100   : > { %v4089_v30 = vpop.trf.xlu0 }
 0x101   : > { %6418 = vst [vmem:[#allocation23_spill] sm:$0xff] %v4089_v30  ;;  %v1410_v46 = vsel %vm259_vm0, %v4089_v30, 0.0 }
 0x102   : > { %1047 = vadd.xlane.f32.xlu2 %v1046_v10  ;;  %280 = vadd.xlane.f32.xlu1 %v279_v11 }
 0x106   : > { %v4093_v32 = vpop.trf.xlu1 }
 0x107   : > { %6420 = vst [vmem:[#allocation25_spill] sm:$0xff] %v4093_v32 }
 0x108   : > { %v4099_v35 = vpop.trf.xlu0 }
 0x109   : > { %6421 = vst [vmem:[#allocation26_spill] sm:$0xff] %v4099_v35  ;;  %v1413_v54 = vsel %vm259_vm0, %v4099_v35, 0.0 }
 0x10a   : > { %1053 = vadd.xlane.f32.xlu2 %v1052_v13  ;;  %300 = vmax.xlane.f32.xlu1 %v299_v14  ;;  %v710_v13 = vsel %vm259_vm0, %v4031_v1, -inf  ;;  %v1055_v14 = vsel %vm259_vm0, %v4047_v9, 0.0 }
 0x10e   : > { %v4103_v37 = vpop.trf.xlu1 }
 0x10f   : > { %6422 = vst [vmem:[#allocation27_spill] sm:$0xff] %v4103_v37 }
 0x110   : > { %v4113_v42 = vpop.trf.xlu0 }
 0x111   : > { %6423 = vst [vmem:[#allocation28_spill] sm:$0xff] %v4113_v42  ;;  %v1416_v0 = vsel %vm259_vm0, %v4113_v42, 0.0 }
 0x112   : > { %1059 = vadd.xlane.f32.xlu2 %v1058_v17  ;;  %306 = vmax.xlane.f32.xlu1 %v305_v18 }
 0x116   : > { %v4117_v44 = vpop.trf.xlu1 }
 0x117   : > { %6424 = vst [vmem:[#allocation29_spill] sm:$0xff] %v4117_v44 }
 0x118   : > { %v4127_v52 = vpop.trf.xlu0 }
 0x119   : > { %6425 = vst [vmem:[#allocation30_spill] sm:$0xff] %v4127_v52 }
 0x11a   : > { %1072 = vmax.xlane.f32.xlu2 %v1071_v21  ;;  %312 = vmax.xlane.f32.xlu1 %v311_v22  ;;  %v3902_v21 = vmov 64.0  }
 0x11b   : > { %3654 = vrcp.f32 %v3902_v21 }
 0x11e   : > { %v4131_v56 = vpop.trf.xlu1 }
 0x11f   : > { %6426 = vst [vmem:[#allocation31_spill] sm:$0xff] %v4131_v56 }
 0x120   : > { %v4141_v4 = vpop.trf.xlu0 }
 0x121   : > { %6427 = vst [vmem:[#allocation32_spill] sm:$0xff] %v4141_v4  ;;  %v1422_v11 = vsel %vm259_vm0, %v4141_v4, 0.0 }
 0x122   : > { %1078 = vmax.xlane.f32.xlu2 %v1077_v25  ;;  %680 = vadd.xlane.f32.xlu1 %v679_v26  ;;  %v716_v26 = vsel %vm259_vm0, %v4059_v15, -inf }
 0x126   : > { %v4145_v8 = vpop.trf.xlu1 }
 0x127   : > { %6428 = vst [vmem:[#allocation33_spill] sm:$0xff] %v4145_v8 }
 0x128   : > { %v4155_v17 = vpop.trf.xlu0 }
 0x129   : > { %6429 = vst [vmem:[#allocation34_spill] sm:$0xff] %v4155_v17  ;;  %v1425_v25 = vsel %vm278_vm1, %v4155_v17, 0.0 }
 0x12a   : > { %1084 = vmax.xlane.f32.xlu2 %v1083_v28  ;;  %683 = vadd.xlane.f32.xlu1 %v682_v29  ;;  %v3655_v28 = vpop.eup %3654  ;;  %v1061_v29 = vsel %vm278_vm1, %v4061_v16, 0.0 }
 0x12b   : > { %vm287_vm3 = vweird.f32 %v3655_v28 }
 0x12f   : > { %v4101_v36 = vpop.xlane.xlu2 %297 }
 0x132   : > { %1090 = vmax.xlane.f32.xlu2 %v1089_v33  ;;  %686 = vadd.xlane.f32.xlu1 %v685_v34 }
 0x13a   : > { %1408 = vadd.xlane.f32.xlu2 %v1407_v39  ;;  %689 = vadd.xlane.f32.xlu1 %v688_v38  ;;  %v283_v38 = vmul.f32 64.0, %v3655_v28  ;;  %v1435_v39 = vsel %vm259_vm0, %v4075_v23, -inf }
 0x13d   : > { %698 = vadd.xlane.f32.xlu0 %v697_v40  ;;  %v4111_v41 = vpop.xlane.xlu2 %267  ;;  %v719_v40 = vsel %vm259_vm0, %v4067_v19, -inf }
 0x142   : > { %1411 = vadd.xlane.f32.xlu2 %v1410_v46  ;;  %692 = vadd.xlane.f32.xlu1 %v691_v43  ;;  %v284_v43 = vsub.f32 1.0, %v283_v38  ;;  %v4168_v46 = vpop.trf.xlu0  ;;  %v1419_v38 = vsel %vm259_vm0, %v4127_v52, 0.0 }
 0x143   : > { %6430 = vst [vmem:[#allocation35_spill] sm:$0xff] %v4168_v46 }
 0x145   : > { %726 = vmax.xlane.f32.xlu0 %v725_v47  ;;  %v4123_v49 = vpop.xlane.xlu2 %303  ;;  %v1074_v47 = vsel %vm259_vm0, %v4017_v58, -inf }
 0x14a   : > { %1414 = vadd.xlane.f32.xlu2 %v1413_v54  ;;  %695 = vadd.xlane.f32.xlu1 %v694_v51 }
 0x14d   : > { %1044 = vadd.xlane.f32.xlu0 %v1043_v59  ;;  %v4135_v62 = vpop.xlane.xlu2 %270  ;;  %v285_v59 = vmul.f32 %v3655_v28, %v284_v43 }
 0x152   : > { %1417 = vadd.xlane.f32.xlu2 %v1416_v0  ;;  %708 = vmax.xlane.f32.xlu1 %v707_v3  ;;  %v1441_v0 = vsel %vm259_vm0, %v4099_v35, -inf  ;;  %v722_v3 = vsel %vm259_vm0, %v4077_v24, -inf }
 0x155   : > { %1050 = vadd.xlane.f32.xlu0 %v1049_v7  ;;  %v4147_v10 = vpop.xlane.xlu2 %309  ;;  %v286_v7 = vadd.f32 %v3655_v28, %v285_v59 }
 0x157   : > { %v4184_v21 = vsel %vm287_vm3, %v3655_v28, %v286_v7  ;;  %v1086_v28 = vsel %vm259_vm0, %v4053_v12, -inf  ;;  %v1438_v7 = vsel %vm259_vm0, %v4089_v30, -inf  ;;  %v2192_v12 = vsel %vm259_vm0, %v4168_v46, 0.0 }
 0x158   : > { %v292_v43 = vmul.f32 %v4184_v21, %v4135_v62  ;;  %v291_v59 = vmul.f32 %v4184_v21, %v4111_v41 }
 0x15a   : > { %1423 = vadd.xlane.f32.xlu2 %v1422_v11  ;;  %711 = vmax.xlane.f32.xlu1 %v710_v13  ;;  %v1080_v11 = vsel %vm259_vm0, %v4039_v5, -inf  ;;  %v4180_v13 = vpop.trf.xlu0 }
 0x15b   : > { %6431 = vst [vmem:[#allocation36_spill] sm:$0xff] %v4180_v13 }
 0x15d   : > { %1056 = vadd.xlane.f32.xlu0 %v1055_v14  ;;  %v277_v18 = vpop.xlane.xlu2 %276  ;;  %v262_v22 = vpop.xlane.xlu1 %261 }
 0x15e   : > { %v289_v62 = vmul.f32 %v4184_v21, %v262_v22  ;;  %v1789_v22 = vsel %vm259_vm0, %v4083_v27, 0.0 }
 0x162   : > { %1426 = vadd.xlane.f32.xlu2 %v1425_v25  ;;  %717 = vmax.xlane.f32.xlu1 %v716_v26 }
 0x165   : > { %1062 = vadd.xlane.f32.xlu0 %v1061_v29  ;;  %v316_v33 = vpop.xlane.xlu2 %315  ;;  %v265_v34 = vpop.xlane.xlu1 %264  ;;  %v1444_v29 = vsel %vm259_vm0, %v4113_v42, -inf }
 0x166   : > { %3333 = vmatpush.msk.msra.mxu0 %vm339_vm2, %v316_v33  ;;  %v294_v33 = vmul.f32 %v4184_v21, %v277_v18  ;;  %v4200_v18 = vpop.trf.xlu0 }
 0x167   : > { %6432 = vst [vmem:[#allocation37_spill] sm:$0xff] %v4200_v18 }
 0x16a   : > { %1436 = vmax.xlane.f32.xlu2 %v1435_v39  ;;  %720 = vmax.xlane.f32.xlu1 %v719_v40 }
 0x16d   : > { %1075 = vmax.xlane.f32.xlu0 %v1074_v47  ;;  %v4172_v51 = vpop.xlane.xlu2 %714  ;;  %v274_v54 = vpop.xlane.xlu1 %273 }
 0x16e   : > { %v293_v39 = vmul.f32 %v4184_v21, %v274_v54  ;;  %v1450_v54 = vsel %vm259_vm0, %v4141_v4, -inf }
 0x172   : > { %1442 = vmax.xlane.f32.xlu2 %v1441_v0  ;;  %723 = vmax.xlane.f32.xlu1 %v722_v3  ;;  %v290_v0 = vmul.f32 %v4184_v21, %v265_v34  ;;  %v1447_v3 = vsel %vm259_vm0, %v4127_v52, -inf  ;;  %v1786_v34 = vsel %vm259_vm0, %v4069_v20, 0.0 }
 0x175   : > { %1081 = vmax.xlane.f32.xlu0 %v1080_v11  ;;  %v4182_v14 = vpop.xlane.xlu2 %1047  ;;  %v281_v25 = vpop.xlane.xlu1 %280 }
 0x176   : > { %v295_v26 = vmul.f32 %v4184_v21, %v281_v25  ;;  %v4214_v25 = vpop.trf.xlu0 }
 0x177   : > { %6433 = vst [vmem:[#allocation38_spill] sm:$0xff] %v4214_v25 }
 0x178   : > { %3341 = vmatpush.msk.msra.mxu1 %vm339_vm2, %v295_v26  ;;  %v1453_v26 = vsel %vm278_vm1, %v4155_v17, -inf }
 0x17a   : > { %1445 = vmax.xlane.f32.xlu2 %v1444_v29  ;;  %415 = vmatpush.msra.mxu1 %v294_v33 }
 0x17b   : > { %1420 = vadd.xlane.f32.xlu1 %v1419_v38  ;;  %v1792_v38 = vsel %vm259_vm0, %v4093_v32, 0.0 }
 0x17c   : > { %416 = vmatpush.msra.mxu1 %v293_v39 }
 0x17d   : > { %1087 = vmax.xlane.f32.xlu0 %v1086_v28  ;;  %v4196_v40 = vpop.xlane.xlu2 %1053  ;;  %v301_v47 = vpop.xlane.xlu1 %300  ;;  %v1795_v28 = vsel %vm259_vm0, %v4103_v37, 0.0 }
 0x17e   : > { %417 = vmatpush.msra.mxu1 %v292_v43  ;;  %v4227_v39 = vpop.trf.xlu0 }
 0x17f   : > { %6434 = vst [vmem:[#allocation39_spill] sm:$0xff] %v4227_v39 }
 0x180   : > { %418 = vmatpush.msra.mxu1 %v291_v59 }
 0x182   : > { %1451 = vmax.xlane.f32.xlu2 %v1450_v54  ;;  %419 = vmatpush.msra.mxu1 %v290_v0  ;;  %v1801_v54 = vsel %vm259_vm0, %v4131_v56, 0.0 }
 0x183   : > { %1448 = vmax.xlane.f32.xlu1 %v1447_v3 }
 0x184   : > { %420 = vmatpush.msra.mxu1 %v289_v62 }
 0x185   : > { %v4212_v11 = vpop.xlane.xlu2 %1059  ;;  %1439 = vmax.xlane.f32.xlu0 %v1438_v7  ;;  %v307_v41 = vpop.xlane.xlu1 %306 }
 0x186   : > { %v4239_v0 = vpop.trf.xlu0 }
 0x187   : > { %6435 = vst [vmem:[#allocation40_spill] sm:$0xff] %v4239_v0 }
 0x18a   : > { %1787 = vadd.xlane.f32.xlu2 %v1786_v34  ;;  %v1817_v34 = vsel %vm259_vm0, %v4083_v27, -inf }
 0x18b   : > { %1454 = vmax.xlane.f32.xlu1 %v1453_v26  ;;  %v1820_v26 = vsel %vm259_vm0, %v4093_v32, -inf }
 0x18d   : > { %v4222_v29 = vpop.xlane.xlu2 %1072  ;;  %1790 = vadd.xlane.f32.xlu0 %v1789_v22  ;;  %v313_v33 = vpop.xlane.xlu1 %312 }
 0x18e   : > { %353 = vmatpush.msra.mxu0 %v313_v33 }
 0x190   : > { %354 = vmatpush.msra.mxu0 %v4147_v10  ;;  %v1798_v10 = vsel %vm259_vm0, %v4117_v44, 0.0 }
 0x192   : > { %1793 = vadd.xlane.f32.xlu2 %v1792_v38  ;;  %355 = vmatpush.msra.mxu0 %v307_v41  ;;  %v4248_v41 = vpop.trf.xlu0 }
 0x193   : > { %6436 = vst [vmem:[#allocation41_spill] sm:$0xff] %v4248_v41 }
 0x194   : > { %356 = vmatpush.msra.mxu0 %v4123_v49  ;;  %v1804_v49 = vsel %vm278_vm1, %v4145_v8, 0.0 }
 0x195   : > { %v4231_v43 = vpop.xlane.xlu2 %1078  ;;  %1796 = vadd.xlane.f32.xlu0 %v1795_v28  ;;  %v681_v59 = vpop.xlane.xlu1 %680  ;;  %v1823_v28 = vsel %vm259_vm0, %v4103_v37, -inf }
 0x196   : > { %357 = vmatpush.msra.mxu0 %v301_v47 }
 0x198   : > { %358 = vmatpush.msra.mxu0 %v4101_v36  ;;  %v1814_v36 = vsel %vm259_vm0, %v4069_v20, -inf }
 0x19a   : > { %1799 = vadd.xlane.f32.xlu2 %v1798_v10 }
 0x19d   : > { %v4241_v3 = vpop.xlane.xlu2 %1084  ;;  %1802 = vadd.xlane.f32.xlu0 %v1801_v54  ;;  %v684_v62 = vpop.xlane.xlu1 %683  ;;  %v1826_v54 = vsel %vm259_vm0, %v4117_v44, -inf }
 0x1a2   : > { %1805 = vadd.xlane.f32.xlu2 %v1804_v49 }
 0x1a5   : > { %v1091_v47 = vpop.xlane.xlu2 %1090  ;;  %1815 = vmax.xlane.f32.xlu0 %v1814_v36  ;;  %v687_v7 = vpop.xlane.xlu1 %686 }
 0x1a6   : > { %3403 = vmatpush.msk.msrb.mxu0 %vm339_vm2, %v1091_v47 }
 0x1aa   : > { %1818 = vmax.xlane.f32.xlu2 %v1817_v34  ;;  %v1829_v34 = vsel %vm259_vm0, %v4131_v56, -inf }
 0x1ad   : > { %v4254_v22 = vpop.xlane.xlu2 %1408  ;;  %1821 = vmax.xlane.f32.xlu0 %v1820_v26  ;;  %v690_v33 = vpop.xlane.xlu1 %689  ;;  %v2207_v26 = vsel %vm259_vm0, %v4239_v0, 0.0 }
 0x1ae   : > { %2208 = vadd.xlane.f32.xlu1 %v2207_v26  ;;  %v703_v56 = vmul.f32 %v690_v33, %v4184_v21 }
 0x1b0   : > { %v699_v38 = vpop.xlane.xlu0 %698 }
 0x1b1   : > { %v706_v10 = vmul.f32 %v699_v38, %v4184_v21  ;;  %v1832_v38 = vsel %vm278_vm1, %v4145_v8, -inf }
 0x1b2   : > { %1824 = vmax.xlane.f32.xlu2 %v1823_v28 }
 0x1b3   : > { %3372 = vmatpush.msk.msra.mxu3 %vm339_vm2, %v706_v10 }
 0x1b5   : > { %1827 = vmax.xlane.f32.xlu0 %v1826_v54  ;;  %v4262_v49 = vpop.xlane.xlu2 %1411  ;;  %v693_v36 = vpop.xlane.xlu1 %692 }
 0x1b6   : > { %v704_v54 = vmul.f32 %v693_v36, %v4184_v21  ;;  %v702_v36 = vmul.f32 %v687_v7, %v4184_v21 }
 0x1b8   : > { %v727_v47 = vpop.xlane.xlu0 %726 }
 0x1b9   : > { %3364 = vmatpush.msk.msra.mxu2 %vm339_vm2, %v727_v47  ;;  %v2235_v47 = vsel %vm259_vm0, %v4239_v0, -inf }
 0x1ba   : > { %1830 = vmax.xlane.f32.xlu2 %v1829_v34  ;;  %v2226_v34 = vsel %vm259_vm0, %v4200_v18, -inf  ;;  %2236 = vmax.xlane.f32.xlu1 %v2235_v47 }
 0x1bd   : > { %1833 = vmax.xlane.f32.xlu0 %v1832_v38  ;;  %v4271_v28 = vpop.xlane.xlu2 %1414  ;;  %v696_v10 = vpop.xlane.xlu1 %695  ;;  %v701_v38 = vmul.f32 %v684_v62, %v4184_v21 }
 0x1be   : > { %v705_v37 = vmul.f32 %v696_v10, %v4184_v21  ;;  %v700_v10 = vmul.f32 %v681_v59, %v4184_v21 }
 0x1c0   : > { %v1045_v27 = vpop.xlane.xlu0 %1044  ;;  %782 = vmatpush.msra.mxu3 %v705_v37 }
 0x1c2   : > { %2193 = vadd.xlane.f32.xlu2 %v2192_v12  ;;  %783 = vmatpush.msra.mxu3 %v704_v54  ;;  %v2195_v12 = vsel %vm259_vm0, %v4180_v13, 0.0 }
 0x1c4   : > { %784 = vmatpush.msra.mxu3 %v703_v56  ;;  %v2198_v56 = vsel %vm259_vm0, %v4200_v18, 0.0 }
 0x1c5   : > { %v4283_v26 = vpop.xlane.xlu2 %1417  ;;  %2227 = vmax.xlane.f32.xlu0 %v2226_v34  ;;  %v709_v33 = vpop.xlane.xlu1 %708 }
 0x1c6   : > { %785 = vmatpush.msra.mxu3 %v702_v36 }
 0x1c8   : > { %v1051_v37 = vpop.xlane.xlu0 %1050  ;;  %786 = vmatpush.msra.mxu3 %v701_v38 }
 0x1ca   : > { %2196 = vadd.xlane.f32.xlu2 %v2195_v12  ;;  %787 = vmatpush.msra.mxu3 %v700_v10  ;;  %v2201_v10 = vsel %vm259_vm0, %v4214_v25, 0.0  ;;  %v1069_v12 = vmul.f32 %v4212_v11, %v4184_v21  ;;  %v1065_v11 = vmul.f32 %v4182_v14, %v4184_v21 }
 0x1cd   : > { %v1424_v54 = vpop.xlane.xlu2 %1423  ;;  %v712_v47 = vpop.xlane.xlu1 %711 }
 0x1ce   : > { %v1433_v0 = vmul.f32 %v1424_v54, %v4184_v21  ;;  %v1067_v54 = vmul.f32 %v4196_v40, %v4184_v21  ;;  %v2210_v40 = vsel %vm278_vm1, %v4248_v41, 0.0 }
 0x1d0   : > { %v1057_v7 = vpop.xlane.xlu0 %1056 }
 0x1d2   : > { %2199 = vadd.xlane.f32.xlu2 %v2198_v56 }
 0x1d5   : > { %v1427_v34 = vpop.xlane.xlu2 %1426  ;;  %v718_v36 = vpop.xlane.xlu1 %717 }
 0x1d6   : > { %v1434_v62 = vmul.f32 %v1427_v34, %v4184_v21  ;;  %v1068_v34 = vmul.f32 %v1057_v7, %v4184_v21  ;;  %v1064_v7 = vmul.f32 %v1045_v27, %v4184_v21  ;;  %v2220_v27 = vsel %vm259_vm0, %v4168_v46, -inf }
 0x1d8   : > { %3450 = vmatpush.msk.msrb.mxu3 %vm339_vm2, %v1434_v62  ;;  %v1063_v59 = vpop.xlane.xlu0 %1062 }
 0x1d9   : > { %v1070_v38 = vmul.f32 %v1063_v59, %v4184_v21 }
 0x1da   : > { %2202 = vadd.xlane.f32.xlu2 %v2201_v10  ;;  %1510 = vmatpush.msrb.mxu3 %v1433_v0  ;;  %v2204_v0 = vsel %vm259_vm0, %v4227_v39, 0.0 }
 0x1db   : > { %3411 = vmatpush.msk.msrb.mxu1 %vm339_vm2, %v1070_v38  ;;  %v1066_v38 = vmul.f32 %v1051_v37, %v4184_v21 }
 0x1dd   : > { %v4300_v56 = vpop.xlane.xlu2 %1436  ;;  %1146 = vmatpush.msrb.mxu1 %v1069_v12  ;;  %v721_v62 = vpop.xlane.xlu1 %720 }
 0x1df   : > { %1147 = vmatpush.msrb.mxu1 %v1068_v34 }
 0x1e0   : > { %v1076_v59 = vpop.xlane.xlu0 %1075 }
 0x1e1   : > { %1148 = vmatpush.msrb.mxu1 %v1067_v54 }
 0x1e2   : > { %2205 = vadd.xlane.f32.xlu2 %v2204_v0 }
 0x1e3   : > { %1149 = vmatpush.msrb.mxu1 %v1066_v38  ;;  %v1429_v38 = vmul.f32 %v4262_v49, %v4184_v21  ;;  %v2223_v49 = vsel %vm259_vm0, %v4180_v13, -inf }
 0x1e5   : > { %v1443_v10 = vpop.xlane.xlu2 %1442  ;;  %1150 = vmatpush.msrb.mxu1 %v1065_v11  ;;  %v724_v12 = vpop.xlane.xlu1 %723 }
 0x1e6   : > { %741 = vmatpush.msra.mxu2 %v724_v12  ;;  %v2232_v12 = vsel %vm259_vm0, %v4227_v39, -inf }
 0x1e7   : > { %1151 = vmatpush.msrb.mxu1 %v1064_v7  ;;  %v2229_v7 = vsel %vm259_vm0, %v4214_v25, -inf }
 0x1e8   : > { %v1082_v34 = vpop.xlane.xlu0 %1081  ;;  %742 = vmatpush.msra.mxu2 %v721_v62  ;;  %v1431_v62 = vmul.f32 %v4283_v26, %v4184_v21 }
 0x1ea   : > { %2211 = vadd.xlane.f32.xlu2 %v2210_v40  ;;  %743 = vmatpush.msra.mxu2 %v718_v36 }
 0x1ec   : > { %744 = vmatpush.msra.mxu2 %v4172_v51  ;;  %v1430_v51 = vmul.f32 %v4271_v28, %v4184_v21  ;;  %v1428_v28 = vmul.f32 %v4254_v22, %v4184_v21 }
 0x1ed   : > { %v1446_v37 = vpop.xlane.xlu2 %1445 }
 0x1ee   : > { %v1421_v54 = vpop.xlane.xlu1 %1420  ;;  %745 = vmatpush.msra.mxu2 %v712_v47 }
 0x1ef   : > { %v1432_v14 = vmul.f32 %v1421_v54, %v4184_v21  ;;  %v2238_v54 = vsel %vm278_vm1, %v4248_v41, -inf }
 0x1f0   : > { %v1088_v0 = vpop.xlane.xlu0 %1087  ;;  %746 = vmatpush.msra.mxu2 %v709_v33  ;;  %v4327_v33 = vld [vmem:[%s6343_s0] sm:$0xff] }
 0x1f1   : > { %1105 = vmatpush.msrb.mxu0 %v1088_v0  ;;  %1511 = vmatpush.msrb.mxu3 %v1432_v14 }
 0x1f2   : > { %2221 = vmax.xlane.f32.xlu2 %v2220_v27  ;;  %3342 = vmatmul.msk.f32.vlgmr.msra.gmra.mxu1 %vm317_vm4, %v4327_v33 }
 0x1f3   : > { %1106 = vmatpush.msrb.mxu0 %v4241_v3  ;;  %1512 = vmatpush.msrb.mxu3 %v1431_v62 }
 0x1f4   : > { %3373 = vmatmul.msk.f32.vlgmr.msra.gmra.mxu3 %vm317_vm4, %v4327_v33 }
 0x1f5   : > { %v1452_v36 = vpop.xlane.xlu2 %1451  ;;  %1107 = vmatpush.msrb.mxu0 %v1082_v34  ;;  %1513 = vmatpush.msrb.mxu3 %v1430_v51  ;;  %v4348_v34 = vld [vmem:[%s6343_s0 + $0x38] sm:$0xff] }
 0x1f6   : > { %v1449_v47 = vpop.xlane.xlu1 %1448  ;;  %3334 = vmatmul.msk.f32.vlgmr.msra.gmra.mxu0 %vm317_vm4, %v4348_v34  ;;  %3365 = vmatmul.msk.f32.vlgmr.msra.gmra.mxu2 %vm317_vm4, %v4348_v34 }
 0x1f7   : > { %1108 = vmatpush.msrb.mxu0 %v4231_v43  ;;  %1514 = vmatpush.msrb.mxu3 %v1429_v38 }
 0x1f8   : > { %v1440_v3 = vpop.xlane.xlu0 %1439 }
 0x1f9   : > { %1109 = vmatpush.msrb.mxu0 %v1076_v59  ;;  %1515 = vmatpush.msrb.mxu3 %v1428_v28  ;;  %v3596_v28 = vld [vmem:[%s3971_s21 + $0xc0] sm:$0xff] }
 0x1fa   : > { %2224 = vmax.xlane.f32.xlu2 %v2223_v49  ;;  %2888 = vxpose.xlu1.b32.start [1/8] (short) (narrow) %v3596_v28, 56  ;;  %v4441_v28 = vld [vmem:[%s6343_s0 + $0x20] sm:$0xff] }
 0x1fb   : > { %1110 = vmatpush.msrb.mxu0 %v4222_v29 }
 0x1fd   : > { %v1788_v43 = vpop.xlane.xlu2 %1787 }
 0x1fe   : > { %v1455_v26 = vpop.xlane.xlu1 %1454  ;;  %v1807_v38 = vmul.f32 %v1788_v43, %v4184_v21  ;;  %v4373_v43 = vld [vmem:[%s6343_s0 + $0x40] sm:$0xff] }
 0x1ff   : > { %3442 = vmatpush.msk.msrb.mxu2 %vm339_vm2, %v1455_v26  ;;  %3335 = vmatmul.msk.f32.gmra.mxu0 %vm317_vm4, %v4373_v43 }
 0x200   : > { %v1791_v11 = vpop.xlane.xlu0 %1790  ;;  %3366 = vmatmul.msk.f32.gmra.mxu2 %vm317_vm4, %v4373_v43 }
 0x201   : > { %1469 = vmatpush.msrb.mxu2 %v1452_v36  ;;  %v1808_v36 = vmul.f32 %v1791_v11, %v4184_v21 }
 0x202   : > { %2230 = vmax.xlane.f32.xlu2 %v2229_v7  ;;  %v3597_v7 = vld [vmem:[%s3971_s21 + $0xc8] sm:$0xff] }
 0x203   : > { %1470 = vmatpush.msrb.mxu2 %v1449_v47  ;;  %2889 = vxpose.xlu1.b32.cont [2/8] (short) (narrow) %v3597_v7, 56  ;;  %v3561_v7 = vld [vmem:[%s3971_s21 + $0xa0] sm:$0xff] }
 0x205   : > { %v1794_v22 = vpop.xlane.xlu2 %1793  ;;  %1471 = vmatpush.msrb.mxu2 %v1446_v37 }
 0x206   : > { %v1809_v51 = vmul.f32 %v1794_v22, %v4184_v21  ;;  %v3598_v22 = vld [vmem:[%s3971_s21 + $0xd0] sm:$0xff] }
 0x207   : > { %1472 = vmatpush.msrb.mxu2 %v1443_v10 }
 0x208   : > { %v1797_v59 = vpop.xlane.xlu0 %1796 }
 0x209   : > { %1473 = vmatpush.msrb.mxu2 %v1440_v3  ;;  %v1810_v27 = vmul.f32 %v1797_v59, %v4184_v21 }
 0x20a   : > { %2233 = vmax.xlane.f32.xlu2 %v2232_v12  ;;  %v4378_v12 = vld [vmem:[%s6343_s0 + $0x8] sm:$0xff] }
 0x20b   : > { %1474 = vmatpush.msrb.mxu2 %v4300_v56  ;;  %2890 = vxpose.xlu1.b32.cont [3/8] (short) (narrow) %v3598_v22, 56  ;;  %v4461_v22 = vld [vmem:[%s6343_s0 + $0x28] sm:$0xff] }
 0x20c   : > { %3343 = vmatmul.msk.f32.gmra.mxu1 %vm317_vm4, %v4378_v12  ;;  %3374 = vmatmul.msk.f32.gmra.mxu3 %vm317_vm4, %v4378_v12 }
 0x20d   : > { %v1800_v29 = vpop.xlane.xlu2 %1799 }
 0x20e   : > { %v1811_v0 = vmul.f32 %v1800_v29, %v4184_v21  ;;  %v3557_v29 = vld [vmem:[%s3971_s21 + $0x80] sm:$0xff] }
 0x210   : > { %v1803_v40 = vpop.xlane.xlu0 %1802 }
 0x211   : > { %v1812_v37 = vmul.f32 %v1803_v40, %v4184_v21 }
 0x212   : > { %2239 = vmax.xlane.f32.xlu2 %v2238_v54  ;;  %v3599_v54 = vld [vmem:[%s3971_s21 + $0xd8] sm:$0xff] }
 0x213   : > { %2891 = vxpose.xlu1.b32.cont [4/8] (short) (narrow) %v3599_v54, 56  ;;  %v3603_v54 = vld [vmem:[%s3971_s21 + $0xf8] sm:$0xff] }
 0x215   : > { %v1806_v10 = vpop.xlane.xlu2 %1805 }
 0x216   : > { %v1813_v56 = vmul.f32 %v1806_v10, %v4184_v21  ;;  %v3558_v10 = vld [vmem:[%s3971_s21 + $0x88] sm:$0xff] }
 0x218   : > { %3495 = vmatpush.msk.msra.mxu1 %vm339_vm2, %v1813_v56  ;;  %v1816_v14 = vpop.xlane.xlu0 %1815  ;;  %v4396_v56 = vld [vmem:[%s6343_s0 + $0x48] sm:$0xff] }
 0x219   : > { %3336 = vmatmul.msk.f32.gmra.mxu0 %vm317_vm4, %v4396_v56  ;;  %3367 = vmatmul.msk.f32.gmra.mxu2 %vm317_vm4, %v4396_v56 }
 0x21a   : > { %1931 = vmatpush.msra.mxu1 %v1812_v37  ;;  %v4401_v37 = vld [vmem:[%s6343_s0 + $0x10] sm:$0xff] }
 0x21b   : > { %3344 = vmatmul.msk.f32.gmra.mxu1 %vm317_vm4, %v4401_v37  ;;  %3375 = vmatmul.msk.f32.gmra.mxu3 %vm317_vm4, %v4401_v37 }
 0x21c   : > { %1932 = vmatpush.msra.mxu1 %v1811_v0  ;;  %v3600_v0 = vld [vmem:[%s3971_s21 + $0xe0] sm:$0xff] }
 0x21d   : > { %v1819_v62 = vpop.xlane.xlu2 %1818  ;;  %2892 = vxpose.xlu1.b32.cont [5/8] (short) (narrow) %v3600_v0, 56 }
 0x21e   : > { %1933 = vmatpush.msra.mxu1 %v1810_v27  ;;  %v3559_v27 = vld [vmem:[%s3971_s21 + $0x90] sm:$0xff] }
 0x220   : > { %1934 = vmatpush.msra.mxu1 %v1809_v51  ;;  %v1822_v47 = vpop.xlane.xlu0 %1821  ;;  %v4421_v51 = vld [vmem:[%s6343_s0 + $0x18] sm:$0xff] }
 0x221   : > { %v2209_v0 = vpop.xlane.xlu1 %2208 }
 0x222   : > { %1935 = vmatpush.msra.mxu1 %v1808_v36 }
 0x223   : > { %3345 = vmatmul.msk.f32.gmra.mxu1 %vm317_vm4, %v4421_v51  ;;  %3376 = vmatmul.msk.f32.gmra.mxu3 %vm317_vm4, %v4421_v51 }
 0x224   : > { %1936 = vmatpush.msra.mxu1 %v1807_v38  ;;  %v3560_v38 = vld [vmem:[%s3971_s21 + $0x98] sm:$0xff] }
 0x225   : > { %v1825_v3 = vpop.xlane.xlu2 %1824 }
 0x228   : > { %v1828_v49 = vpop.xlane.xlu0 %1827 }
 0x22b   : > { %3346 = vmatmul.msk.f32.gmra.mxu1 %vm317_vm4, %v4441_v28  ;;  %3377 = vmatmul.msk.f32.gmra.mxu3 %vm317_vm4, %v4441_v28 }
 0x22d   : > { %v1831_v26 = vpop.xlane.xlu2 %1830 }
 0x230   : > { %v1834_v59 = vpop.xlane.xlu0 %1833 }
 0x231   : > { %3487 = vmatpush.msk.msra.mxu0 %vm339_vm2, %v1834_v59  ;;  %v4456_v59 = vld [vmem:[%s6343_s0 + $0x60] sm:$0xff] }
 0x233   : > { %1869 = vmatpush.msra.mxu0 %v1831_v26  ;;  %v3602_v26 = vld [vmem:[%s3971_s21 + $0xf0] sm:$0xff]  ;;  %3347 = vmatmul.msk.f32.gmra.mxu1 %vm317_vm4, %v4461_v22 }
 0x234   : > { %3378 = vmatmul.msk.f32.gmra.mxu3 %vm317_vm4, %v4461_v22 }
 0x235   : > { %v4367_v11 = vpop.xlane.xlu2 %2193  ;;  %1870 = vmatpush.msra.mxu0 %v1828_v49 }
 0x237   : > { %1871 = vmatpush.msra.mxu0 %v1825_v3  ;;  %v4436_v3 = vld [vmem:[%s6343_s0 + $0x58] sm:$0xff] }
 0x239   : > { %1872 = vmatpush.msra.mxu0 %v1822_v47  ;;  %v3601_v47 = vld [vmem:[%s3971_s21 + $0xe8] sm:$0xff] }
 0x23a   : > { %2893 = vxpose.xlu1.b32.cont [6/8] (short) (narrow) %v3601_v47, 56  ;;  %v3562_v47 = vld [vmem:[%s3971_s21 + $0xa8] sm:$0xff] }
 0x23b   : > { %2524 = vxpose.xlu2.b32.start [1/8] (short) (narrow) %v3557_v29, 56  ;;  %1873 = vmatpush.msra.mxu0 %v1819_v62  ;;  %v4416_v62 = vld [vmem:[%s6343_s0 + $0x50] sm:$0xff] }
 0x23c   : > { %3337 = vmatmul.msk.f32.gmra.mxu0 %vm317_vm4, %v4416_v62  ;;  %3368 = vmatmul.msk.f32.gmra.mxu2 %vm317_vm4, %v4416_v62 }
 0x23d   : > { %v4389_v40 = vpop.xlane.xlu2 %2196  ;;  %1874 = vmatpush.msra.mxu0 %v1816_v14 }
 0x242   : > { %2894 = vxpose.xlu1.b32.cont [7/8] (short) (narrow) %v3602_v26, 56  ;;  %v210_v26 = vld [vmem:[%s6343_s0 + $0x30] sm:$0x1] }
 0x243   : > { %2525 = vxpose.xlu2.b32.cont [2/8] (short) (narrow) %v3558_v10, 56  ;;  %3348 = vmatmul.msk.f32.gmra.mxu1 %vm317_vm4, %v210_v26 }
 0x244   : > { %3338 = vmatmul.msk.f32.gmra.mxu0 %vm317_vm4, %v4436_v3  ;;  %3369 = vmatmul.msk.f32.gmra.mxu2 %vm317_vm4, %v4436_v3 }
 0x245   : > { %v2200_v14 = vpop.xlane.xlu2 %2199  ;;  %3379 = vmatmul.msk.f32.gmra.mxu3 %vm317_vm4, %v210_v26 }
 0x24a   : > { %2895 = vxpose.xlu1.b32.end [8/8] (short) (narrow) %v3603_v54, 56 }
 0x24b   : > { %2526 = vxpose.xlu2.b32.cont [3/8] (short) (narrow) %v3559_v27, 56  ;;  %v2218_v27 = vmul.f32 %v2209_v0, %v4184_v21  ;;  %v3563_v0 = vld [vmem:[%s3971_s21 + $0xb0] sm:$0xff]  ;;  %3412 = vmatmul.msk.f32.vlgmr.msrb.gmra.mxu1 %vm317_vm4, %v4327_v33 }
 0x24c   : > { %3339 = vmatmul.msk.f32.gmra.mxu0 %vm317_vm4, %v4456_v59  ;;  %3370 = vmatmul.msk.f32.gmra.mxu2 %vm317_vm4, %v4456_v59 }
 0x24d   : > { %v2203_v36 = vpop.xlane.xlu2 %2202  ;;  %3451 = vmatmul.msk.f32.vlgmr.msrb.gmra.mxu3 %vm317_vm4, %v4327_v33 }
 0x253   : > { %2527 = vxpose.xlu2.b32.cont [4/8] (short) (narrow) %v3560_v38, 56  ;;  %v3332_v38 = vld [vmem:[%s6343_s0 + $0x68] sm:$0x1]  ;;  %3413 = vmatmul.msk.f32.gmra.mxu1 %vm317_vm4, %v4378_v12 }
 0x254   : > { %3340 = vmatmul.msk.f32.gmra.mxu0 %vm317_vm4, %v3332_v38  ;;  %3371 = vmatmul.msk.f32.gmra.mxu2 %vm317_vm4, %v3332_v38 }
 0x255   : > { %v2206_v49 = vpop.xlane.xlu2 %2205  ;;  %3452 = vmatmul.msk.f32.gmra.mxu3 %vm317_vm4, %v4378_v12  ;;  %v2228_v12 = vpop.xlane.xlu0 %2227 }
 0x25b   : > { %2528 = vxpose.xlu2.b32.cont [5/8] (short) (narrow) %v3561_v7, 56  ;;  %v2217_v7 = vmul.f32 %v2206_v49, %v4184_v21  ;;  %v2214_v49 = vmul.f32 %v4389_v40, %v4184_v21  ;;  %v3564_v40 = vld [vmem:[%s3971_s21 + $0xb8] sm:$0xff]  ;;  %3414 = vmatmul.msk.f32.gmra.mxu1 %vm317_vm4, %v4401_v37 }
 0x25c   : > { %3404 = vmatmul.msk.f32.vlgmr.msrb.gmra.mxu0 %vm317_vm4, %v4348_v34  ;;  %3443 = vmatmul.msk.f32.vlgmr.msrb.gmra.mxu2 %vm317_vm4, %v4348_v34 }
 0x25d   : > { %v2212_v29 = vpop.xlane.xlu2 %2211  ;;  %3453 = vmatmul.msk.f32.gmra.mxu3 %vm317_vm4, %v4401_v37  ;;  %v3473_v37 = vld [vmem:[%s6343_s0 + $0x70] sm:$0xff] }
 0x25e   : > { %v2219_v10 = vmul.f32 %v2212_v29, %v4184_v21  ;;  %v2216_v29 = vmul.f32 %v2203_v36, %v4184_v21  ;;  %v2213_v36 = vmul.f32 %v4367_v11, %v4184_v21 }
 0x260   : > { %3534 = vmatpush.msk.msra.mxu3 %vm339_vm2, %v2219_v10  ;;  %v2215_v10 = vmul.f32 %v2200_v14, %v4184_v21  ;;  %v3481_v14 = vld [vmem:[%s6343_s0 + $0xb0] sm:$0xff] }
 0x262   : > { %2295 = vmatpush.msra.mxu3 %v2218_v27 }
 0x263   : > { %2529 = vxpose.xlu2.b32.cont [6/8] (short) (narrow) %v3562_v47, 56  ;;  %3415 = vmatmul.msk.f32.gmra.mxu1 %vm317_vm4, %v4421_v51 }
 0x264   : > { %2296 = vmatpush.msra.mxu3 %v2217_v7  ;;  %3405 = vmatmul.msk.f32.gmra.mxu0 %vm317_vm4, %v4373_v43  ;;  %v3483_v7 = vld [vmem:[%s6343_s0 + $0xc0] sm:$0xff] }
 0x265   : > { %v2222_v54 = vpop.xlane.xlu2 %2221  ;;  %3444 = vmatmul.msk.f32.gmra.mxu2 %vm317_vm4, %v4373_v43  ;;  %3454 = vmatmul.msk.f32.gmra.mxu3 %vm317_vm4, %v4421_v51  ;;  %v2237_v43 = vpop.xlane.xlu1 %2236 }
 0x266   : > { %2297 = vmatpush.msra.mxu3 %v2216_v29  ;;  %v3476_v29 = vld [vmem:[%s6343_s0 + $0x88] sm:$0xff] }
 0x268   : > { %2298 = vmatpush.msra.mxu3 %v2215_v10 }
 0x26a   : > { %2299 = vmatpush.msra.mxu3 %v2214_v49 }
 0x26b   : > { %2530 = vxpose.xlu2.b32.cont [7/8] (short) (narrow) %v3563_v0, 56  ;;  %3416 = vmatmul.msk.f32.gmra.mxu1 %vm317_vm4, %v4441_v28 }
 0x26c   : > { %2300 = vmatpush.msra.mxu3 %v2213_v36  ;;  %3406 = vmatmul.msk.f32.gmra.mxu0 %vm317_vm4, %v4396_v56  ;;  %v3484_v36 = vld [vmem:[%s6343_s0 + $0xc8] sm:$0xff] }
 0x26d   : > { %v2225_v27 = vpop.xlane.xlu2 %2224  ;;  %3445 = vmatmul.msk.f32.gmra.mxu2 %vm317_vm4, %v4396_v56  ;;  %3455 = vmatmul.msk.f32.gmra.mxu3 %vm317_vm4, %v4441_v28  ;;  %v3480_v56 = vld [vmem:[%s6343_s0 + $0xa8] sm:$0xff]  ;;  %v3482_v28 = vld [vmem:[%s6343_s0 + $0xb8] sm:$0xff] }
 0x273   : > { %2531 = vxpose.xlu2.b32.end [8/8] (short) (narrow) %v3564_v40, 56  ;;  %3417 = vmatmul.msk.f32.gmra.mxu1 %vm317_vm4, %v4461_v22  ;;  %v4566_v51 = vpop.f32.mrf.mxu0 }
 0x274   : > { %3407 = vmatmul.msk.f32.gmra.mxu0 %vm317_vm4, %v4416_v62 }
 0x275   : > { %v2231_v11 = vpop.xlane.xlu2 %2230  ;;  %3446 = vmatmul.msk.f32.gmra.mxu2 %vm317_vm4, %v4416_v62  ;;  %3456 = vmatmul.msk.f32.gmra.mxu3 %vm317_vm4, %v4461_v22  ;;  %v3474_v62 = vld [vmem:[%s6343_s0 + $0x78] sm:$0xff] }
 0x277   : > { %v4582_v47 = vpop.f32.mrf.mxu3 }
 0x279   : > { %v4580_v22 = vpop.f32.mrf.mxu2 }
 0x27b   : > { %3418 = vmatmul.msk.f32.gmra.mxu1 %vm317_vm4, %v210_v26 }
 0x27c   : > { %3408 = vmatmul.msk.f32.gmra.mxu0 %vm317_vm4, %v4436_v3 }
 0x27d   : > { %v2234_v33 = vpop.xlane.xlu2 %2233  ;;  %3447 = vmatmul.msk.f32.gmra.mxu2 %vm317_vm4, %v4436_v3  ;;  %3457 = vmatmul.msk.f32.gmra.mxu3 %vm317_vm4, %v210_v26  ;;  %v4570_v3 = vpop.f32.mrf.mxu1 }
 0x283   : > { %3496 = vmatmul.msk.f32.vlgmr.msra.gmra.mxu1 %vm317_vm4, %v3473_v37 }
 0x284   : > { %3409 = vmatmul.msk.f32.gmra.mxu0 %vm317_vm4, %v4456_v59 }
 0x285   : > { %v2240_v34 = vpop.xlane.xlu2 %2239  ;;  %3448 = vmatmul.msk.f32.gmra.mxu2 %vm317_vm4, %v4456_v59  ;;  %3535 = vmatmul.msk.f32.vlgmr.msra.gmra.mxu3 %vm317_vm4, %v3473_v37  ;;  %v3475_v59 = vld [vmem:[%s6343_s0 + $0x80] sm:$0xff] }
 0x286   : > { %3526 = vmatpush.msk.msra.mxu2 %vm339_vm2, %v2240_v34 }
 0x288   : > { %2254 = vmatpush.msra.mxu2 %v2237_v43  ;;  %v3485_v43 = vld [vmem:[%s6343_s0 + $0xd0] sm:$0xff] }
 0x289   : > { %v4588_v26 = vpop.f32.mrf.mxu1 }
 0x28a   : > { %2255 = vmatpush.msra.mxu2 %v2234_v33 }
 0x28b   : > { %3497 = vmatmul.msk.f32.gmra.mxu1 %vm317_vm4, %v3474_v62 }
 0x28c   : > { %2256 = vmatpush.msra.mxu2 %v2231_v11  ;;  %3410 = vmatmul.msk.f32.gmra.mxu0 %vm317_vm4, %v3332_v38 }
 0x28d   : > { %3449 = vmatmul.msk.f32.gmra.mxu2 %vm317_vm4, %v3332_v38  ;;  %3536 = vmatmul.msk.f32.gmra.mxu3 %vm317_vm4, %v3474_v62  ;;  %v4586_v38 = vpop.f32.mrf.mxu0 }
 0x28e   : > { %2257 = vmatpush.msra.mxu2 %v2228_v12  ;;  %v3478_v12 = vld [vmem:[%s6343_s0 + $0x98] sm:$0xff] }
 0x28f   : > { %v4600_v10 = vpop.f32.mrf.mxu3 }
 0x290   : > { %2258 = vmatpush.msra.mxu2 %v2225_v27  ;;  %v3477_v27 = vld [vmem:[%s6343_s0 + $0x90] sm:$0xff] }
 0x292   : > { %2259 = vmatpush.msra.mxu2 %v2222_v54  ;;  %v4598_v54 = vpop.f32.mrf.mxu2 }
 0x293   : > { %3498 = vmatmul.msk.f32.gmra.mxu1 %vm317_vm4, %v3475_v59 }
 0x294   : > { %3488 = vmatmul.msk.f32.vlgmr.msra.gmra.mxu0 %vm317_vm4, %v3480_v56 }
 0x295   : > { %3527 = vmatmul.msk.f32.vlgmr.msra.gmra.mxu2 %vm317_vm4, %v3480_v56  ;;  %3537 = vmatmul.msk.f32.gmra.mxu3 %vm317_vm4, %v3475_v59  ;;  %v3486_v59 = vld [vmem:[%s6343_s0 + $0xd8] sm:$0x1] }
 0x296   : > { %v4604_v49 = vpop.f32.mrf.mxu0 }
 0x298   : > { %v4606_v0 = vpop.f32.mrf.mxu1 }
 0x29b   : > { %3499 = vmatmul.msk.f32.gmra.mxu1 %vm317_vm4, %v3476_v29 }
 0x29c   : > { %3489 = vmatmul.msk.f32.gmra.mxu0 %vm317_vm4, %v3481_v14  ;;  %v4618_v40 = vpop.f32.mrf.mxu2 }
 0x29d   : > { %3528 = vmatmul.msk.f32.gmra.mxu2 %vm317_vm4, %v3481_v14  ;;  %3538 = vmatmul.msk.f32.gmra.mxu3 %vm317_vm4, %v3476_v29  ;;  %6437 = vst [vmem:[#allocation42_spill] sm:$0xff] %v4618_v40 }
 0x29e   : > { %v4622_v33 = vpop.f32.mrf.mxu3 }
 0x29f   : > { %6438 = vst [vmem:[#allocation43_spill] sm:$0xff] %v4622_v33 }
 0x2a0   : > { %v4624_v34 = vpop.f32.mrf.mxu1 }
 0x2a3   : > { %3500 = vmatmul.msk.f32.gmra.mxu1 %vm317_vm4, %v3477_v27 }
 0x2a4   : > { %3490 = vmatmul.msk.f32.gmra.mxu0 %vm317_vm4, %v3482_v28 }
 0x2a5   : > { %3529 = vmatmul.msk.f32.gmra.mxu2 %vm317_vm4, %v3482_v28  ;;  %3539 = vmatmul.msk.f32.gmra.mxu3 %vm317_vm4, %v3477_v27 }
 0x2a6   : > { %v798_v14 = vpop.f32.mrf.mxu3 }
 0x2a8   : > { %v434_v62 = vpop.f32.mrf.mxu1 }
 0x2ab   : > { %3501 = vmatmul.msk.f32.gmra.mxu1 %vm317_vm4, %v3478_v12 }
 0x2ac   : > { %3491 = vmatmul.msk.f32.gmra.mxu0 %vm317_vm4, %v3483_v7 }
 0x2ad   : > { %3530 = vmatmul.msk.f32.gmra.mxu2 %vm317_vm4, %v3483_v7  ;;  %3540 = vmatmul.msk.f32.gmra.mxu3 %vm317_vm4, %v3478_v12  ;;  %v3479_v7 = vld [vmem:[%s6343_s0 + $0xa0] sm:$0x1] }
 0x2ae   : > { %v801_v27 = vpop.f32.mrf.mxu3 }
 0x2b0   : > { %v437_v12 = vpop.f32.mrf.mxu1 }
 0x2b3   : > { %3502 = vmatmul.msk.f32.gmra.mxu1 %vm317_vm4, %v3479_v7 }
 0x2b4   : > { %3492 = vmatmul.msk.f32.gmra.mxu0 %vm317_vm4, %v3484_v36 }
 0x2b5   : > { %3531 = vmatmul.msk.f32.gmra.mxu2 %vm317_vm4, %v3484_v36  ;;  %3541 = vmatmul.msk.f32.gmra.mxu3 %vm317_vm4, %v3479_v7 }
 0x2b7   : > { %v804_v5 = vpop.f32.mrf.mxu3 }
 0x2b9   : > { %v4620_v11 = vpop.f32.mrf.mxu0 }
 0x2bc   : > { %3493 = vmatmul.msk.f32.gmra.mxu0 %vm317_vm4, %v3485_v43 }
 0x2bd   : > { %3532 = vmatmul.msk.f32.gmra.mxu2 %vm317_vm4, %v3485_v43  ;;  %v4652_v43 = vpop.trf.xlu1 }
 0x2be   : > { %6440 = vst [vmem:[#allocation45_spill] sm:$0xff] %v4652_v43 }
 0x2bf   : > { %v4636_v56 = vpop.f32.mrf.mxu2 }
 0x2c0   : > { %v440_v17 = vpop.f32.mrf.mxu1  ;;  %v799_v50 = vadd.f32 %v798_v14, %v4636_v56 }
 0x2c1   : > { %v372_v37 = vpop.f32.mrf.mxu0 }
 0x2c2   : > { %v435_v63 = vadd.f32 %v434_v62, %v372_v37 }
 0x2c4   : > { %3494 = vmatmul.msk.f32.gmra.mxu0 %vm317_vm4, %v3486_v59  ;;  %v3353_v58 = vmul.f32 -1.442695, %v435_v63 }
 0x2c5   : > { %3533 = vmatmul.msk.f32.gmra.mxu2 %vm317_vm4, %v3486_v59  ;;  %v4658_v42 = vpop.trf.xlu1 }
 0x2c6   : > { %6442 = vst [vmem:[#allocation47_spill] sm:$0xff] %v4658_v42 }
 0x2c7   : > { %v760_v29 = vpop.f32.mrf.mxu2 }
 0x2c8   : > { %v4654_v41 = vadd.f32 %v801_v27, %v760_v29  ;;  %v807_v16 = vpop.f32.mrf.mxu3  ;;  %v1153_v31 = vpop.f32.mrf.mxu1  ;;  %v423_v29 = vadd.f32 %v4570_v3, %v4566_v51 }
 0x2c9   : > { %v4648_v36 = vpop.f32.mrf.mxu0 }
 0x2ca   : > { %6441 = vst [vmem:[#allocation46_spill] sm:$0xff] %v4654_v41  ;;  %v3349_v9 = vmul.f32 -1.442695, %v423_v29 }
 0x2cc   : > { %3656 = vpow2.f32 %v3349_v9  ;;  %v3903_v9 = vmov 0  }
 0x2cd   : > { %v4670_v52 = vpop.trf.xlu1  ;;  %3652 = vset.pattern.permute.xlu1 %v3903_v9  ;;  %3658 = vpow2.f32 %v3353_v58  ;;  %3651 = vset.pattern.permute.xlu0 %v3903_v9 }
 0x2cf   : > { %v763_v13 = vpop.f32.mrf.mxu2 }
 0x2d0   : > { %v1517_v35 = vpop.f32.mrf.mxu3  ;;  %v4674_v30 = vpop.f32.mrf.mxu1 }
 0x2d1   : > { %v378_v4 = vpop.f32.mrf.mxu0 }
 0x2d2   : > { %v3657_v3 = vpop.eup %3656 }
 0x2d4   : > { %v4638_v28 = vpop.trf.xlu2 }
 0x2d5   : > { %6439 = vst [vmem:[#allocation44_spill] sm:$0xff] %v4638_v28  ;;  %v4680_v51 = vpop.trf.xlu1  ;;  %3653 = vset.pattern.permute.xlu2 %v3903_v9 }
 0x2d7   : > { %v766_v23 = vpop.f32.mrf.mxu2 }
 0x2d8   : > { %v4662_v59 = vadd.f32 %v807_v16, %v766_v23  ;;  %v441_v23 = vadd.f32 %v440_v17, %v378_v4  ;;  %v4686_v29 = vpop.f32.mrf.mxu3  ;;  %v4690_v4 = vpop.f32.mrf.mxu1  ;;  %v790_v17 = vadd.f32 %v4582_v47, %v4580_v22 }
 0x2d9   : > { %v1112_v7 = vpop.f32.mrf.mxu0  ;;  %v3659_v22 = vpop.eup %3658 }
 0x2da   : > { %6443 = vst [vmem:[#allocation48_spill] sm:$0xff] %v4662_v59  ;;  %v4666_v27 = vadd.f32 %v1153_v31, %v1112_v7  ;;  %v426_v7 = vadd.f32 %v4588_v26, %v4586_v38  ;;  %v3355_v37 = vmul.f32 -1.442695, %v441_v23  ;;  %v432_v38 = vadd.f32 %v4624_v34, %v4620_v11 }
 0x2db   : > { %v2954_v26 = vsel %vm259_vm0, %v4670_v52, -inf  ;;  %v3380_v39 = vmul.f32 -1.442695, %v790_v17  ;;  %v438_v11 = vadd.f32 %v437_v12, %v4648_v36  ;;  %v3383_v34 = vmul.f32 -1.442695, %v799_v50 }
 0x2dc   : > { %v4656_v25 = vpop.trf.xlu2  ;;  %6444 = vst [vmem:[#allocation49_spill] sm:$0xff] %v4666_v27  ;;  %v3350_v23 = vmul.f32 -1.442695, %v426_v7  ;;  %3660 = vpow2.f32 %v3355_v37  ;;  %v3352_v47 = vmul.f32 -1.442695, %v432_v38  ;;  %v4711_v17 = vadd.f32 1.0, %v3659_v22 }
 0x2dd   : > { %v3354_v38 = vmul.f32 -1.442695, %v438_v11  ;;  %v4715_v8 = vpop.trf.xlu1 }
 0x2de   : > { %vm536_vm9 = vweird.f32 %v4711_v17 }
 0x2df   : > { %v1476_v6 = vpop.f32.mrf.mxu2 }
 0x2e0   : > { %v4709_v56 = vpop.f32.mrf.mxu3  ;;  %v1162_v37 = vpop.f32.mrf.mxu1 }
 0x2e1   : > { %v4672_v1 = vpop.f32.mrf.mxu0 }
 0x2e2   : > { %v3661_v18 = vpop.eup %3660 }
 0x2e3   : > { %v4721_v36 = vadd.f32 1.0, %v3661_v18  ;;  %v1157_v18 = vadd.f32 %v4674_v30, %v4672_v1 }
 0x2e4   : > { %v4660_v55 = vpop.trf.xlu2 }
 0x2e5   : > { %v3420_v1 = vmul.f32 -1.442695, %v1157_v18  ;;  %v4756_v46 = vpop.trf.xlu1  ;;  %vm566_vm12 = vweird.f32 %v4721_v36 }
 0x2e8   : > { %v4684_v62 = vpop.f32.mrf.mxu2  ;;  %v4734_v11 = vpop.f32.mrf.mxu3 }
 0x2e9   : > { %v4688_v63 = vpop.f32.mrf.mxu0 }
 0x2ec   : > { %v4668_v19 = vpop.trf.xlu2 }
 0x2f0   : > { %v4707_v7 = vpop.f32.mrf.mxu2 }
 0x2f1   : > { %v1121_v14 = vpop.f32.mrf.mxu0 }
 0x2f4   : > { %v4676_v16 = vpop.trf.xlu2 }
 0x2f5   : > { %6445 = vst [vmem:[#allocation50_spill] sm:$0xff] %v4676_v16  ;;  %v2596_v31 = vsel %vm259_vm0, %v4676_v16, -inf }
 0x2f6   : > { %2597 = vmax.xlane.f32.xlu1 %v2596_v31  ;;  %v4694_v31 = vadd.f32 1.0, %v3657_v3  ;;  %v805_v3 = vadd.f32 %v804_v5, %v763_v13 }
 0x2f8   : > { %3662 = vrcp.f32 %v4694_v31  ;;  %v3385_v50 = vmul.f32 -1.442695, %v805_v3  ;;  %vm476_vm5 = vweird.f32 %v4694_v31 }
 0x2f9   : > { %3664 = vpow2.f32 %v3350_v23 }
 0x2fa   : > { %3666 = vpow2.f32 %v3380_v39  ;;  %v2951_v39 = vsel %vm259_vm0, %v4658_v42, -inf }
 0x2fb   : > { %3668 = vpow2.f32 %v3352_v47  ;;  %v4732_v47 = vpop.f32.mrf.mxu2 }
 0x2fc   : > { %v4701_v58 = vpop.trf.xlu2  ;;  %3670 = vpow2.f32 %v3383_v34 }
 0x2fd   : > { %6446 = vst [vmem:[#allocation51_spill] sm:$0xff] %v4701_v58  ;;  %v2599_v9 = vsel %vm259_vm0, %v4701_v58, -inf  ;;  %3672 = vrcp.f32 %v4711_v17 }
 0x2fe   : > { %2955 = vmax.xlane.f32.xlu1 %v2954_v26  ;;  %2600 = vmax.xlane.f32.xlu2 %v2599_v9  ;;  %v1518_v26 = vadd.f32 %v1517_v35, %v1476_v6  ;;  %v4713_v9 = vadd.f32 %v1162_v37, %v1121_v14  ;;  %v4719_v13 = vpop.eup %3662  ;;  %v2587_v6 = vsel %vm259_vm0, %v4656_v25, -inf  ;;  %3674 = vpow2.f32 %v3354_v38  ;;  %v4741_v37 = vpop.f32.mrf.mxu0 }
 0x2ff   : > { %v3665_v12 = vpop.eup %3664  ;;  %3676 = vpow2.f32 %v3385_v50  ;;  %v472_v14 = vmul.f32 %v4719_v13, %v4694_v31  ;;  %vm477_vm6 = vweird.f32 %v4719_v13 }
 0x300   : > { %6447 = vst [vmem:[#allocation52_spill] sm:$0xff] %v4713_v9  ;;  %v3458_v23 = vmul.f32 -1.442695, %v1518_v26  ;;  %v3667_v22 = vpop.eup %3666  ;;  %v4736_v3 = vadd.f32 1.0, %v3665_v12  ;;  %3678 = vrcp.f32 %v4721_v36  ;;  %v4743_v26 = vpop.f32.mrf.mxu1  ;;  %v2584_v12 = vsel %vm259_vm0, %v4638_v28, -inf  ;;  %vm4807_vm7 = vmor %vm476_vm5, %vm477_vm6 }
 0x301   : > { %v3669_v34 = vpop.eup %3668  ;;  %v4747_v50 = vadd.f32 1.0, %v3667_v22  ;;  %v473_v44 = vsub.f32 1.0, %v472_v14  ;;  %v2571_v22 = vsel %vm259_vm0, %v4701_v58, 0.0  ;;  %v4769_v14 = vpop.f32.mrf.mxu3  ;;  %v1166_v60 = vadd.f32 %v4743_v26, %v4741_v37 }
 0x302   : > { %v3671_v38 = vpop.eup %3670  ;;  %3680 = vpow2.f32 %v3458_v23  ;;  %v4841_v37 = vsel %vm259_vm0, %v4676_v16, 0.0  ;;  %vm491_vm14 = vweird.f32 %v4736_v3 }
 0x303   : > { %v4745_v30 = vpop.eup %3672  ;;  %3682 = vrcp.f32 %v4736_v3  ;;  %v4758_v18 = vadd.f32 1.0, %v3671_v38  ;;  %v4767_v20 = vpop.f32.mrf.mxu2  ;;  %v3423_v16 = vmul.f32 -1.442695, %v1166_v60  ;;  %v572_v60 = vand.u32 2147483648, %v4721_v36 }
 0x304   : > { %v4717_v5 = vpop.trf.xlu2  ;;  %3684 = vpow2.f32 %v3420_v1  ;;  %v532_v1 = vmul.f32 %v4745_v30, %v4711_v17  ;;  %vm537_vm10 = vweird.f32 %v4745_v30 }
 0x305   : > { %6448 = vst [vmem:[#allocation53_spill] sm:$0xff] %v4717_v5  ;;  %v2574_v35 = vsel %vm278_vm1, %v4717_v5, 0.0  ;;  %3686 = vrcp.f32 %v4747_v50  ;;  %v2602_v27 = vsel %vm278_vm1, %v4717_v5, -inf  ;;  %v1527_v5 = vadd.f32 %v4734_v11, %v4732_v47  ;;  %vm4867_vm11 = vmor %vm536_vm9, %vm537_vm10 }
 0x306   : > { %2952 = vmax.xlane.f32.xlu1 %v2951_v39  ;;  %2588 = vmax.xlane.f32.xlu2 %v2587_v6  ;;  %v1521_v39 = vadd.f32 %v4686_v29, %v4684_v62  ;;  %v3675_v6 = vpop.eup %3674  ;;  %v1160_v29 = vadd.f32 %v4690_v4, %v4688_v63  ;;  %v1524_v63 = vadd.f32 %v4709_v56, %v4707_v7  ;;  %v482_v7 = vand.u32 2147483648, %v4694_v31 }
 0x307   : > { %2575 = vadd.xlane.f32.xlu0 %v2574_v35  ;;  %v4752_v35 = vadd.f32 1.0, %v3669_v34  ;;  %v3677_v23 = vpop.eup %3676  ;;  %v4772_v38 = vadd.f32 1.0, %v3675_v6  ;;  %v570_v47 = vand.u32 2147483647, %v4721_v36 }
 0x308   : > { %v4762_v32 = vpop.eup %3678  ;;  %v3459_v34 = vmul.f32 -1.442695, %v1521_v39  ;;  %v1168_v58 = vpop.f32.mrf.mxu1  ;;  %v4778_v9 = vadd.f32 1.0, %v3677_v23  ;;  %v2948_v23 = vsel %vm259_vm0, %v4652_v43, -inf  ;;  %v3421_v24 = vmul.f32 -1.442695, %v1160_v29 }
 0x309   : > { %v3681_v62 = vpop.eup %3680  ;;  %3688 = vrcp.f32 %v4752_v35  ;;  %v4828_v41 = vpop.f32.mrf.mxu3  ;;  %vm567_vm13 = vweird.f32 %v4762_v32 }
 0x30a   : > { %3690 = vrcp.f32 %v4758_v18  ;;  %v4784_v39 = vpop.eup %3682  ;;  %v4786_v6 = vadd.f32 1.0, %v3681_v62  ;;  %v480_v62 = vand.u32 2147483647, %v4694_v31  ;;  %vm4896_vm5 = vmor %vm566_vm12, %vm567_vm13  ;;  %vm521_vm12 = vweird.f32 %v4752_v35 }
 0x30b   : > { %3692 = vpow2.f32 %v3459_v34  ;;  %v3460_v34 = vmul.f32 -1.442695, %v1524_v63  ;;  %v483_v63 = vor.u32 1.1754944e-38, %v482_v7  ;;  %v4826_v43 = vpop.f32.mrf.mxu2  ;;  %vm492_vm15 = vweird.f32 %v4784_v39 }
 0x30c   : > { %3694 = vrcp.f32 %v4772_v38  ;;  %vm4833_vm8 = vcmp.eq.f32.partialorder %v480_v62, 8.507059e+37  ;;  %vm4920_vm6 = vmor %vm491_vm14, %vm492_vm15 }
 0x30d   : > { %3696 = vrcp.f32 %v4778_v9 }
 0x30e   : > { %2585 = vmax.xlane.f32.xlu2 %v2584_v12  ;;  %v474_v12 = vmul.f32 %v4719_v13, %v473_v44  ;;  %v562_v44 = vmul.f32 %v4762_v32, %v4721_v36  ;;  %3698 = vrcp.f32 %v4786_v6  ;;  %v495_v36 = vand.u32 2147483647, %v4736_v3 }
 0x30f   : > { %2572 = vadd.xlane.f32.xlu0 %v2571_v22  ;;  %v1127_v22 = vpop.f32.mrf.mxu0  ;;  %3700 = vpow2.f32 %v3421_v24  ;;  %v542_v24 = vand.u32 2147483648, %v4711_v17 }
 0x310   : > { %v4782_v4 = vadd.f32 %v1168_v58, %v1127_v22  ;;  %v3685_v58 = vpop.eup %3684  ;;  %v475_v56 = vadd.f32 %v4719_v13, %v474_v12  ;;  %v533_v22 = vsub.f32 1.0, %v532_v1  ;;  %v487_v12 = vmul.f32 %v4784_v39, %v4736_v3  ;;  %v1171_v7 = vpop.f32.mrf.mxu1 }
 0x311   : > { %v563_v15 = vsub.f32 1.0, %v562_v44  ;;  %v4822_v59 = vadd.f32 1.0, %v3685_v58  ;;  %3702 = vpow2.f32 %v3460_v34  ;;  %v543_v42 = vor.u32 1.1754944e-38, %v542_v24 }
 0x312   : > { %6449 = vst [vmem:[#allocation54_spill] sm:$0xff] %v4782_v4  ;;  %v4798_v4 = vpop.eup %3686  ;;  %v534_v11 = vmul.f32 %v4745_v30, %v533_v22  ;;  %v488_v26 = vsub.f32 1.0, %v487_v12  ;;  %vm4936_vm10 = vcmp.eq.f32.partialorder %v495_v36, 8.507059e+37 }
 0x313   : > { %v4813_v1 = vpop.eup %3688  ;;  %v564_v62 = vmul.f32 %v4762_v32, %v563_v15  ;;  %v839_v22 = vmul.f32 %v4798_v4, %v4747_v50  ;;  %3704 = vrcp.f32 %v4822_v59  ;;  %vm844_vm9 = vweird.f32 %v4798_v4 }
 0x314   : > { %v4820_v31 = vpop.eup %3690  ;;  %v535_v15 = vadd.f32 %v4745_v30, %v534_v11  ;;  %v517_v24 = vmul.f32 %v4813_v1, %v4752_v35  ;;  %vm522_vm13 = vweird.f32 %v4813_v1 }
 0x315   : > { %v3693_v58 = vpop.eup %3692  ;;  %vm4987_vm15 = vmor %vm521_vm12, %vm522_vm13  ;;  %vm918_vm13 = vweird.f32 %v4778_v9 }
 0x316   : > { %2949 = vmax.xlane.f32.xlu2 %v2948_v23  ;;  %v4816_v23 = vpop.trf.xlu1  ;;  %v4859_v2 = vadd.f32 1.0, %v3693_v58  ;;  %v4881_v58 = vpop.f32.mrf.mxu2 }
 0x317   : > { %2603 = vmax.xlane.f32.xlu0 %v2602_v27  ;;  %6452 = vst [vmem:[#allocation55_spill] sm:$0xff] %v4816_v23  ;;  %v479_v27 = vsel %vm4807_vm7, %v4719_v13, %v475_v56  ;;  %v1130_v44 = vpop.f32.mrf.mxu0  ;;  %v4844_v13 = vpop.eup %3694  ;;  %v3461_v56 = vmul.f32 -1.442695, %v1527_v5  ;;  %v2938_v34 = vsel %vm278_vm1, %v4816_v23, 0.0  ;;  %v540_v5 = vand.u32 2147483647, %v4711_v17 }
 0x318   : > { %v4850_v29 = vpop.eup %3696  ;;  %v484_v12 = vsel %vm4833_vm8, %v483_v63, %v479_v27  ;;  %v489_v63 = vmul.f32 %v4784_v39, %v488_v26  ;;  %v565_v27 = vadd.f32 %v4762_v32, %v564_v62  ;;  %v840_v17 = vsub.f32 1.0, %v839_v22  ;;  %v4883_v26 = vpop.f32.mrf.mxu3 }
 0x319   : > { %v4857_v61 = vpop.eup %3698  ;;  %3706 = vpow2.f32 %v3461_v56  ;;  %v539_v56 = vsel %vm4867_vm11, %v4745_v30, %v535_v15  ;;  %vm4888_vm3 = vcmp.eq.f32.partialorder %v540_v5, 8.507059e+37  ;;  %v1530_v22 = vadd.f32 %v4769_v14, %v4767_v20  ;;  %v4905_v57 = vpop.f32.mrf.mxu1 }
 0x31a   : > { %v3701_v53 = vpop.eup %3700  ;;  %3708 = vpow2.f32 %v3423_v16  ;;  %v490_v5 = vadd.f32 %v4784_v39, %v489_v63  ;;  %v1172_v33 = vadd.f32 %v1171_v7, %v1130_v44  ;;  %v573_v20 = vor.u32 1.1754944e-38, %v572_v60 }
 0x31b   : > { %v3703_v11 = vpop.eup %3702  ;;  %v4909_v15 = vadd.f32 1.0, %v3701_v53  ;;  %3710 = vrcp.f32 %v4859_v2  ;;  %v841_v53 = vmul.f32 %v4798_v4, %v840_v17  ;;  %v544_v63 = vsel %vm4888_vm3, %v543_v42, %v539_v56 }
 0x31c   : > { %v4907_v30 = vpop.eup %3704  ;;  %v4914_v40 = vadd.f32 1.0, %v3703_v11  ;;  %v569_v44 = vsel %vm4896_vm5, %v4762_v32, %v565_v27  ;;  %vm571_vm7 = vcmp.eq.f32.partialorder %v570_v47, 8.507059e+37  ;;  %v518_v7 = vsub.f32 1.0, %v517_v24 }
 0x31d   : > { %v3462_v11 = vmul.f32 -1.442695, %v1530_v22  ;;  %vm843_vm8 = vweird.f32 %v4747_v50  ;;  %3712 = vrcp.f32 %v4909_v15  ;;  %v494_v42 = vsel %vm4920_vm6, %v4784_v39, %v490_v5 }
 0x31e   : > { %v3425_v32 = vmul.f32 -1.442695, %v1172_v33  ;;  %3714 = vrcp.f32 %v4914_v40  ;;  %v574_v27 = vsel %vm571_vm7, %v573_v20, %v569_v44  ;;  %v842_v47 = vadd.f32 %v4798_v4, %v841_v53  ;;  %vm4946_vm11 = vmor %vm843_vm8, %vm844_vm9 }
 0x31f   : > { %2939 = vadd.xlane.f32.xlu0 %v2938_v34  ;;  %578 = vperm.xlu1 %3652, %v484_v12   ;;  %v497_v34 = vand.u32 2147483648, %v4736_v3  ;;  %v4903_v12 = vpop.f32.mrf.mxu0  ;;  %v3707_v60 = vpop.eup %3706  ;;  %v849_v24 = vand.u32 2147483648, %v4747_v50  ;;  %v847_v39 = vand.u32 2147483647, %v4747_v50  ;;  %v519_v33 = vmul.f32 %v4813_v1, %v518_v7 }
 0x320   : > { %v3709_v3 = vpop.eup %3708  ;;  %v4944_v56 = vadd.f32 1.0, %v3707_v60  ;;  %v547_v16 = vmul.f32 %v4844_v13, %v4772_v38  ;;  %v4956_v22 = vpop.f32.mrf.mxu3  ;;  %3716 = vpow2.f32 %v3462_v11  ;;  %v884_v50 = vmul.f32 %v4820_v31, %v4758_v18 }
 0x321   : > { %v498_v28 = vor.u32 1.1754944e-38, %v497_v34  ;;  %v4958_v34 = vpop.eup %3710  ;;  %v4960_v5 = vadd.f32 1.0, %v3709_v3  ;;  %v1941_v14 = vpop.f32.mrf.mxu1  ;;  %3718 = vpow2.f32 %v3425_v32  ;;  %v850_v44 = vor.u32 1.1754944e-38, %v849_v24 }
 0x322   : > { %v527_v7 = vand.u32 2147483648, %v4752_v35  ;;  %vm4978_vm14 = vcmp.eq.f32.partialorder %v847_v39, 8.507059e+37  ;;  %v520_v3 = vadd.f32 %v4813_v1, %v519_v33  ;;  %v548_v17 = vsub.f32 1.0, %v547_v16 }
 0x323   : > { %v499_v36 = vsel %vm4936_vm10, %v498_v28, %v494_v42  ;;  %v1533_v28 = vadd.f32 %v4828_v41, %v4826_v43  ;;  %v4976_v60 = vpop.eup %3712  ;;  %v525_v42 = vand.u32 2147483647, %v4752_v35  ;;  %3720 = vrcp.f32 %v4944_v56 }
 0x324   : > { %v4984_v32 = vpop.eup %3714  ;;  %v885_v41 = vsub.f32 1.0, %v884_v50  ;;  %v914_v43 = vmul.f32 %v4850_v29, %v4778_v9  ;;  %3722 = vrcp.f32 %v4960_v5  ;;  %v2966_v35 = vsel %vm278_vm1, %v4816_v23, -inf }
 0x325   : > { %v5000_v24 = vsel %vm259_vm0, %v4668_v19, 0.0  ;;  %v3463_v33 = vmul.f32 -1.442695, %v1533_v28  ;;  %v528_v16 = vor.u32 1.1754944e-38, %v527_v7  ;;  %vm888_vm3 = vweird.f32 %v4758_v18 }
 0x326   : > { %v3717_v62 = vpop.eup %3716  ;;  %vm526_vm5 = vcmp.eq.f32.partialorder %v525_v42, 8.507059e+37  ;;  %v894_v28 = vand.u32 2147483648, %v4758_v18  ;;  %v915_v7 = vsub.f32 1.0, %v914_v43  ;;  %vm551_vm6 = vweird.f32 %v4772_v38 }
 0x327   : > { %2569 = vadd.xlane.f32.xlu0 %v4841_v37  ;;  %598 = vperm.xlu1 %3652, %v544_v63   ;;  %v4954_v37 = vpop.f32.mrf.mxu2  ;;  %v1879_v20 = vpop.f32.mrf.mxu0  ;;  %v846_v63 = vsel %vm4946_vm11, %v4798_v4, %v842_v47  ;;  %v2935_v47 = vsel %vm259_vm0, %v4756_v46, 0.0  ;;  %vm552_vm7 = vweird.f32 %v4844_v13  ;;  %v557_v11 = vand.u32 2147483648, %v4772_v38 }
 0x328   : > { %v4968_v53 = vadd.f32 %v1941_v14, %v1879_v20  ;;  %v851_v39 = vsel %vm4978_vm14, %v850_v44, %v846_v63  ;;  %v3719_v50 = vpop.eup %3718  ;;  %v524_v20 = vsel %vm4987_vm15, %v4813_v1, %v520_v3  ;;  %v1218_v14 = vmul.f32 %v4907_v30, %v4822_v59  ;;  %vm5043_vm10 = vmor %vm551_vm6, %vm552_vm7 }
 0x329   : > { %v886_v63 = vmul.f32 %v4820_v31, %v885_v41  ;;  %v892_v44 = vand.u32 2147483647, %v4758_v18  ;;  %v1536_v1 = vadd.f32 %v4883_v26, %v4881_v58  ;;  %v5023_v3 = vpop.eup %3720  ;;  %v5025_v42 = vadd.f32 1.0, %v3719_v50 }
 0x32a   : > { %6467 = vst [vmem:[#allocation56_spill] sm:$0xff] %v4968_v53  ;;  %vm889_vm8 = vweird.f32 %v4820_v31  ;;  %v555_v4 = vand.u32 2147483647, %v4772_v38  ;;  %v5029_v41 = vpop.eup %3722  ;;  %v5031_v43 = vadd.f32 1.0, %v3717_v62  ;;  %3724 = vpow2.f32 %v3463_v33 }
 0x32b   : > { %v1219_v26 = vsub.f32 1.0, %v1218_v14  ;;  %v887_v23 = vadd.f32 %v4820_v31, %v886_v63  ;;  %vm5035_vm9 = vcmp.eq.f32.partialorder %v892_v44, 8.507059e+37  ;;  %v895_v50 = vor.u32 1.1754944e-38, %v894_v28  ;;  %vm5050_vm11 = vmor %vm888_vm3, %vm889_vm8  ;;  %v1944_v28 = vpop.f32.mrf.mxu1 }
 0x32c   : > { %v916_v62 = vmul.f32 %v4850_v29, %v915_v7  ;;  %v558_v14 = vor.u32 1.1754944e-38, %v557_v11  ;;  %v2303_v38 = vadd.f32 %v4956_v22, %v4954_v37  ;;  %3726 = vrcp.f32 %v5025_v42 }
 0x32d   : > { %vm5059_vm12 = vcmp.eq.f32.partialorder %v555_v4, 8.507059e+37  ;;  %v1233_v18 = vmul.f32 %v4976_v60, %v4909_v15  ;;  %vm919_vm14 = vweird.f32 %v4850_v29  ;;  %v1263_v37 = vmul.f32 %v5029_v41, %v4960_v5 }
 0x32e   : > { %583 = vperm.xlu2 %3653, %v499_v36   ;;  %v549_v36 = vmul.f32 %v4844_v13, %v548_v17  ;;  %v529_v17 = vsel %vm526_vm5, %v528_v16, %v524_v20  ;;  %v3464_v20 = vmul.f32 -1.442695, %v1536_v1  ;;  %v917_v7 = vadd.f32 %v4850_v29, %v916_v62  ;;  %vm5091_vm5 = vmor %vm918_vm13, %vm919_vm14 }
 0x32f   : > { %2936 = vadd.xlane.f32.xlu0 %v2935_v47  ;;  %608 = vperm.xlu1 %3652, %v574_v27   ;;  %v5011_v47 = vpop.f32.mrf.mxu2  ;;  %v5013_v27 = vpop.f32.mrf.mxu3  ;;  %v922_v1 = vand.u32 2147483647, %v4778_v9  ;;  %vm1222_vm15 = vweird.f32 %v4822_v59  ;;  %vm1223_vm3 = vweird.f32 %v4907_v30  ;;  %v1234_v16 = vsub.f32 1.0, %v1233_v18 }
 0x330   : > { %v550_v58 = vadd.f32 %v4844_v13, %v549_v36  ;;  %v1939_v36 = vadd.f32 %v4905_v57, %v4903_v12  ;;  %v1882_v44 = vpop.f32.mrf.mxu0  ;;  %v1220_v57 = vmul.f32 %v4907_v30, %v1219_v26  ;;  %v3725_v11 = vpop.eup %3724  ;;  %v1228_v26 = vand.u32 2147483648, %v4822_v59  ;;  %vm5113_vm7 = vmor %vm1222_vm15, %vm1223_vm3 }
 0x331   : > { %v1945_v4 = vadd.f32 %v1944_v28, %v1882_v44  ;;  %3728 = vrcp.f32 %v5031_v43  ;;  %vm5105_vm6 = vcmp.eq.f32.partialorder %v922_v1, 8.507059e+37  ;;  %v1235_v28 = vmul.f32 %v4976_v60, %v1234_v16 }
 0x332   : > { %v554_v12 = vsel %vm5043_vm10, %v4844_v13, %v550_v58  ;;  %v924_v13 = vand.u32 2147483648, %v4778_v9  ;;  %v1221_v33 = vadd.f32 %v4907_v30, %v1220_v57  ;;  %v5103_v9 = vadd.f32 1.0, %v3725_v11 }
 0x333   : > { %v559_v58 = vsel %vm5059_vm12, %v558_v14, %v554_v12  ;;  %v1264_v14 = vsub.f32 1.0, %v1263_v37  ;;  %3730 = vpow2.f32 %v3464_v20  ;;  %v3503_v63 = vmul.f32 -1.442695, %v1939_v36  ;;  %v1947_v57 = vpop.f32.mrf.mxu1 }
 0x334   : > { %v925_v18 = vor.u32 1.1754944e-38, %v924_v13  ;;  %v3505_v20 = vmul.f32 -1.442695, %v1945_v4  ;;  %vm1238_vm10 = vweird.f32 %v4976_v60  ;;  %v1243_v1 = vand.u32 2147483648, %v4909_v15 }
 0x335   : > { %v1265_v37 = vmul.f32 %v5029_v41, %v1264_v14  ;;  %vm1268_vm12 = vweird.f32 %v5029_v41  ;;  %v1273_v16 = vand.u32 2147483648, %v4960_v5  ;;  %v5167_v44 = vsel %vm259_vm0, %v4660_v55, 0.0 }
 0x336   : > { %593 = vperm.xlu2 %3653, %v529_v17   ;;  %v3542_v17 = vmul.f32 -1.442695, %v2303_v38  ;;  %v5101_v38 = vpop.eup %3726 }
 0x337   : > { %2967 = vmax.xlane.f32.xlu0 %v2966_v35  ;;  %945 = vperm.xlu1 %3652, %v851_v39   ;;  %v5073_v22 = vpop.f32.mrf.mxu2  ;;  %v5075_v35 = vpop.f32.mrf.mxu3  ;;  %v891_v39 = vsel %vm5050_vm11, %v4820_v31, %v887_v23  ;;  %v1226_v31 = vand.u32 2147483647, %v4822_v59  ;;  %v1229_v59 = vor.u32 1.1754944e-38, %v1228_v26  ;;  %vm1267_vm11 = vweird.f32 %v4960_v5 }
 0x338   : > { %v896_v62 = vsel %vm5035_vm9, %v895_v50, %v891_v39  ;;  %v921_v50 = vsel %vm5091_vm5, %v4850_v29, %v917_v7  ;;  %3732 = vpow2.f32 %v3542_v17  ;;  %vm1237_vm9 = vweird.f32 %v4909_v15  ;;  %v1885_v12 = vpop.f32.mrf.mxu0  ;;  %v5140_v4 = vpop.eup %3728  ;;  %vm5173_vm14 = vmor %vm1267_vm11, %vm1268_vm12 }
 0x339   : > { %vm5121_vm8 = vcmp.eq.f32.partialorder %v1226_v31, 8.507059e+37  ;;  %v1225_v29 = vsel %vm5113_vm7, %v4907_v30, %v1221_v33  ;;  %v1293_v39 = vmul.f32 %v5101_v38, %v5025_v42  ;;  %v1241_v7 = vand.u32 2147483647, %v4909_v15  ;;  %vm5157_vm13 = vmor %vm1237_vm9, %vm1238_vm10 }
 0x33a   : > { %v5138_v13 = vadd.f32 %v1947_v57, %v1885_v12  ;;  %3734 = vpow2.f32 %v3505_v20  ;;  %v1230_v23 = vsel %vm5121_vm8, %v1229_v59, %v1225_v29  ;;  %v1236_v31 = vadd.f32 %v4976_v60, %v1235_v28 }
 0x33b   : > { %v1271_v26 = vand.u32 2147483647, %v4960_v5  ;;  %v926_v33 = vsel %vm5105_vm6, %v925_v18, %v921_v50  ;;  %v1266_v53 = vadd.f32 %v5029_v41, %v1265_v37  ;;  %v1294_v36 = vsub.f32 1.0, %v1293_v39  ;;  %v1950_v29 = vpop.f32.mrf.mxu1 }
 0x33c   : > { %3736 = vrcp.f32 %v5103_v9  ;;  %v2932_v59 = vsel %vm259_vm0, %v4715_v8, 0.0  ;;  %v2309_v50 = vadd.f32 %v5075_v35, %v5073_v22  ;;  %vm5181_vm15 = vcmp.eq.f32.partialorder %v1241_v7, 8.507059e+37 }
 0x33d   : > { %3738 = vpow2.f32 %v3503_v63  ;;  %v1612_v12 = vmul.f32 %v5023_v3, %v4944_v56  ;;  %v1240_v5 = vsel %vm5157_vm13, %v4976_v60, %v1236_v31  ;;  %v1244_v57 = vor.u32 1.1754944e-38, %v1243_v1 }
 0x33e   : > { %603 = vperm.xlu2 %3653, %v559_v58   ;;  %v3731_v58 = vpop.eup %3730  ;;  %vm5190_vm3 = vcmp.eq.f32.partialorder %v1271_v26, 8.507059e+37  ;;  %v1274_v35 = vor.u32 1.1754944e-38, %v1273_v16  ;;  %v1295_v7 = vmul.f32 %v5101_v38, %v1294_v36  ;;  %v1567_v60 = vmul.f32 %v4857_v61, %v4786_v6 }
 0x33f   : > { %2566 = vadd.xlane.f32.xlu0 %v5000_v24  ;;  %960 = vperm.xlu1 %3652, %v896_v62   ;;  %v1582_v24 = vmul.f32 %v4958_v34, %v4859_v2  ;;  %v2270_v11 = vpop.f32.mrf.mxu2  ;;  %v2311_v17 = vpop.f32.mrf.mxu3  ;;  %v5179_v18 = vadd.f32 1.0, %v3731_v58  ;;  %vm1586_vm5 = vweird.f32 %v4859_v2  ;;  %v1590_v1 = vand.u32 2147483647, %v4859_v2 }
 0x340   : > { %v5144_v30 = vadd.f32 %v2311_v17, %v2270_v11  ;;  %v3733_v62 = vpop.eup %3732  ;;  %v1888_v63 = vpop.f32.mrf.mxu0  ;;  %v1592_v11 = vand.u32 2147483648, %v4859_v2  ;;  %v3544_v17 = vmul.f32 -1.442695, %v2309_v50  ;;  %vm1297_vm6 = vweird.f32 %v5025_v42 }
 0x341   : > { %v1583_v20 = vsub.f32 1.0, %v1582_v24  ;;  %v3735_v37 = vpop.eup %3734  ;;  %v1270_v24 = vsel %vm5173_vm14, %v5029_v41, %v1266_v53  ;;  %vm1298_vm7 = vweird.f32 %v5101_v38  ;;  %v1303_v41 = vand.u32 2147483648, %v5025_v42 }
 0x342   : > { %v1613_v58 = vsub.f32 1.0, %v1612_v12  ;;  %v5209_v31 = vadd.f32 1.0, %v3735_v37  ;;  %v1275_v26 = vsel %vm5190_vm3, %v1274_v35, %v1270_v24  ;;  %vm1587_vm8 = vweird.f32 %v4958_v34  ;;  %vm5228_vm9 = vmor %vm1297_vm6, %vm1298_vm7 }
 0x343   : > { %v1584_v39 = vmul.f32 %v4958_v34, %v1583_v20  ;;  %v1301_v16 = vand.u32 2147483647, %v5025_v42  ;;  %3740 = vrcp.f32 %v5179_v18  ;;  %v1245_v14 = vsel %vm5181_vm15, %v1244_v57, %v1240_v5  ;;  %vm5234_vm10 = vmor %vm1586_vm5, %vm1587_vm8  ;;  %v1953_v35 = vpop.f32.mrf.mxu1 }
 0x344   : > { %v1296_v53 = vadd.f32 %v5101_v38, %v1295_v7  ;;  %v1568_v20 = vsub.f32 1.0, %v1567_v60  ;;  %v5219_v36 = vadd.f32 1.0, %v3733_v62  ;;  %3742 = vpow2.f32 %v3544_v17 }
 0x345   : > { %v1585_v15 = vadd.f32 %v4958_v34, %v1584_v39  ;;  %vm5238_vm11 = vcmp.eq.f32.partialorder %v1590_v1, 8.507059e+37  ;;  %v1593_v12 = vor.u32 1.1754944e-38, %v1592_v11  ;;  %v1304_v5 = vor.u32 1.1754944e-38, %v1303_v41 }
 0x346   : > { %1314 = vperm.xlu2 %3653, %v1230_v23   ;;  %v5207_v23 = vpop.eup %3736  ;;  %v1614_v57 = vmul.f32 %v5023_v3, %v1613_v58  ;;  %3744 = vrcp.f32 %v5209_v31  ;;  %vm5244_vm12 = vcmp.eq.f32.partialorder %v1301_v16, 8.507059e+37  ;;  %vm1616_vm13 = vweird.f32 %v4944_v56 }
 0x347   : > { %2933 = vadd.xlane.f32.xlu0 %v2932_v59  ;;  %970 = vperm.xlu1 %3652, %v926_v33   ;;  %v3739_v33 = vpop.eup %3738  ;;  %v2963_v59 = vsel %vm259_vm0, %v4756_v46, -inf  ;;  %v1642_v2 = vmul.f32 %v5207_v23, %v5103_v9  ;;  %v1300_v37 = vsel %vm5228_vm9, %v5101_v38, %v1296_v53  ;;  %vm1617_vm14 = vweird.f32 %v5023_v3  ;;  %v2273_v39 = vpop.f32.mrf.mxu2 }
 0x348   : > { %v1891_v22 = vpop.f32.mrf.mxu0  ;;  %v1569_v24 = vmul.f32 %v4857_v61, %v1568_v20  ;;  %v2314_v7 = vpop.f32.mrf.mxu3  ;;  %v1597_v60 = vmul.f32 %v4984_v32, %v4914_v40  ;;  %v1589_v1 = vsel %vm5234_vm10, %v4958_v34, %v1585_v15  ;;  %v1620_v11 = vand.u32 2147483647, %v4944_v56  ;;  %vm5276_vm5 = vmor %vm1616_vm13, %vm1617_vm14 }
 0x349   : > { %v1622_v17 = vand.u32 2147483648, %v4944_v56  ;;  %vm1571_vm15 = vweird.f32 %v4786_v6  ;;  %v5264_v38 = vpop.eup %3740  ;;  %v1615_v41 = vadd.f32 %v5023_v3, %v1614_v57  ;;  %vm1572_vm3 = vweird.f32 %v4857_v61 }
 0x34a   : > { %v1951_v58 = vadd.f32 %v1950_v29, %v1888_v63  ;;  %v3743_v16 = vpop.eup %3742  ;;  %v1577_v53 = vand.u32 2147483648, %v4786_v6  ;;  %v1643_v20 = vsub.f32 1.0, %v1642_v2  ;;  %v1594_v63 = vsel %vm5238_vm11, %v1593_v12, %v1589_v1  ;;  %vm5300_vm7 = vmor %vm1571_vm15, %vm1572_vm3 }
 0x34b   : > { %v1570_v29 = vadd.f32 %v4857_v61, %v1569_v24  ;;  %v1575_v15 = vand.u32 2147483647, %v4786_v6  ;;  %v1598_v50 = vsub.f32 1.0, %v1597_v60  ;;  %3746 = vrcp.f32 %v5219_v36 }
 0x34c   : > { %v5285_v62 = vpop.eup %3744  ;;  %v2306_v56 = vadd.f32 %v5013_v27, %v5011_v47  ;;  %vm5292_vm6 = vcmp.eq.f32.partialorder %v1620_v11, 8.507059e+37  ;;  %v5304_v12 = vadd.f32 1.0, %v3743_v16  ;;  %v1623_v47 = vor.u32 1.1754944e-38, %v1622_v17 }
 0x34d   : > { %v3507_v27 = vmul.f32 -1.442695, %v1951_v58  ;;  %v1578_v42 = vor.u32 1.1754944e-38, %v1577_v53  ;;  %v1644_v2 = vmul.f32 %v5207_v23, %v1643_v20  ;;  %vm1646_vm8 = vweird.f32 %v5103_v9 }
 0x34e   : > { %1329 = vperm.xlu2 %3653, %v1275_v26   ;;  %v5268_v26 = vadd.f32 %v1953_v35, %v1891_v22  ;;  %v1956_v35 = vpop.f32.mrf.mxu1  ;;  %vm1576_vm9 = vcmp.eq.f32.partialorder %v1575_v15, 8.507059e+37  ;;  %v1627_v24 = vmul.f32 %v5140_v4, %v5031_v43  ;;  %vm1647_vm10 = vweird.f32 %v5207_v23 }
 0x34f   : > { %2964 = vmax.xlane.f32.xlu0 %v2963_v59  ;;  %1319 = vperm.xlu1 %3652, %v1245_v14   ;;  %v1305_v14 = vsel %vm5244_vm12, %v1304_v5, %v1300_v37  ;;  %v2315_v59 = vadd.f32 %v2314_v7, %v2273_v39  ;;  %v5287_v5 = vadd.f32 1.0, %v3739_v33  ;;  %v1619_v33 = vsel %vm5276_vm5, %v5023_v3, %v1615_v41  ;;  %vm5333_vm13 = vmor %vm1646_vm8, %vm1647_vm10 }
 0x350   : > { %v1894_v22 = vpop.f32.mrf.mxu0  ;;  %v1574_v37 = vsel %vm5300_vm7, %v4857_v61, %v1570_v29  ;;  %v1599_v3 = vmul.f32 %v4984_v32, %v1598_v50  ;;  %v1652_v39 = vand.u32 2147483648, %v5103_v9  ;;  %v2018_v7 = vmul.f32 %v5285_v62, %v5209_v31 }
 0x351   : > { %v3546_v6 = vmul.f32 -1.442695, %v2315_v59  ;;  %3748 = vpow2.f32 %v3507_v27  ;;  %vm1601_vm11 = vweird.f32 %v4914_v40  ;;  %vm1602_vm12 = vweird.f32 %v4984_v32  ;;  %v5325_v60 = vpop.eup %3746 }
 0x352   : > { %v1957_v61 = vadd.f32 %v1956_v35, %v1894_v22  ;;  %v1579_v1 = vsel %vm1576_vm9, %v1578_v42, %v1574_v37  ;;  %v1645_v11 = vadd.f32 %v5207_v23, %v1644_v2  ;;  %v1607_v17 = vand.u32 2147483648, %v4914_v40  ;;  %vm5344_vm14 = vmor %vm1601_vm11, %vm1602_vm12 }
 0x353   : > { %3750 = vpow2.f32 %v3546_v6  ;;  %v1624_v41 = vsel %vm5292_vm6, %v1623_v47, %v1619_v33  ;;  %v1600_v16 = vadd.f32 %v4984_v32, %v1599_v3  ;;  %v1628_v34 = vsub.f32 1.0, %v1627_v24 }
 0x354   : > { %3752 = vrcp.f32 %v5287_v5  ;;  %v2593_v53 = vsel %vm259_vm0, %v4668_v19, -inf  ;;  %v3543_v59 = vmul.f32 -1.442695, %v2306_v56  ;;  %v3509_v29 = vmul.f32 -1.442695, %v1957_v61 }
 0x355   : > { %3754 = vrcp.f32 %v5304_v12  ;;  %v1653_v15 = vor.u32 1.1754944e-38, %v1652_v39  ;;  %v1608_v50 = vor.u32 1.1754944e-38, %v1607_v17  ;;  %vm2022_vm3 = vweird.f32 %v5209_v31 }
 0x356   : > { %1339 = vperm.xlu2 %3653, %v1305_v14   ;;  %v1605_v14 = vand.u32 2147483647, %v4914_v40  ;;  %v1649_v40 = vsel %vm5333_vm13, %v5207_v23, %v1645_v11  ;;  %v1604_v56 = vsel %vm5344_vm14, %v4984_v32, %v1600_v16  ;;  %v1629_v28 = vmul.f32 %v5140_v4, %v1628_v34  ;;  %v2276_v34 = vpop.f32.mrf.mxu2 }
 0x357   : > { %2563 = vadd.xlane.f32.xlu0 %v5167_v44  ;;  %1678 = vperm.xlu1 %3652, %v1594_v63   ;;  %v1650_v44 = vand.u32 2147483647, %v5103_v9  ;;  %v2019_v9 = vsub.f32 1.0, %v2018_v7  ;;  %v3749_v57 = vpop.eup %3748  ;;  %v1657_v33 = vmul.f32 %v5264_v38, %v5179_v18  ;;  %vm2023_vm6 = vweird.f32 %v5285_v62 }
 0x358   : > { %vm1606_vm5 = vcmp.eq.f32.partialorder %v1605_v14, 8.507059e+37  ;;  %v2026_v23 = vand.u32 2147483647, %v5209_v31  ;;  %v2352_v42 = vmul.f32 %v5325_v60, %v5219_v36  ;;  %v2028_v2 = vand.u32 2147483648, %v5209_v31  ;;  %vm5395_vm10 = vmor %vm2022_vm3, %vm2023_vm6  ;;  %v2317_v31 = vpop.f32.mrf.mxu3 }
 0x359   : > { %vm5349_vm15 = vcmp.eq.f32.partialorder %v1650_v44, 8.507059e+37  ;;  %v3751_v47 = vpop.eup %3750  ;;  %v2020_v27 = vmul.f32 %v5285_v62, %v2019_v9  ;;  %vm1631_vm7 = vweird.f32 %v5031_v43  ;;  %vm1632_vm8 = vweird.f32 %v5140_v4 }
 0x35a   : > { %3756 = vpow2.f32 %v3509_v29  ;;  %v5371_v32 = vpop.eup %3752  ;;  %v5373_v6 = vadd.f32 1.0, %v3749_v57  ;;  %v1609_v22 = vsel %vm1606_vm5, %v1608_v50, %v1604_v56  ;;  %v1635_v35 = vand.u32 2147483647, %v5031_v43  ;;  %vm5385_vm9 = vmor %vm1631_vm7, %vm1632_vm8 }
 0x35b   : > { %v1637_v37 = vand.u32 2147483648, %v5031_v43  ;;  %v5377_v3 = vpop.eup %3754  ;;  %v1654_v24 = vsel %vm5349_vm15, %v1653_v15, %v1649_v40  ;;  %v5381_v44 = vadd.f32 1.0, %v3751_v47  ;;  %v1630_v39 = vadd.f32 %v5140_v4, %v1629_v28 }
 0x35c   : > { %v1658_v7 = vsub.f32 1.0, %v1657_v33  ;;  %v2021_v61 = vadd.f32 %v5285_v62, %v2020_v27  ;;  %v2353_v11 = vsub.f32 1.0, %v2352_v42  ;;  %3758 = vpow2.f32 %v3543_v59 }
 0x35d   : > { %v2929_v43 = vsel %vm259_vm0, %v4680_v51, 0.0  ;;  %vm5399_vm11 = vcmp.eq.f32.partialorder %v2026_v23, 8.507059e+37  ;;  %3760 = vrcp.f32 %v5373_v6  ;;  %v2029_v58 = vor.u32 1.1754944e-38, %v2028_v2 }
 0x35e   : > { %1673 = vperm.xlu2 %3653, %v1579_v1   ;;  %vm5404_vm12 = vcmp.eq.f32.partialorder %v1635_v35, 8.507059e+37  ;;  %v1638_v14 = vor.u32 1.1754944e-38, %v1637_v37  ;;  %3762 = vrcp.f32 %v5381_v44  ;;  %v1634_v20 = vsel %vm5385_vm9, %v5140_v4, %v1630_v39 }
 0x35f   : > { %2594 = vmax.xlane.f32.xlu0 %v2593_v53  ;;  %1688 = vperm.xlu1 %3652, %v1624_v41   ;;  %v1659_v9 = vmul.f32 %v5264_v38, %v1658_v7  ;;  %v1988_v59 = vmul.f32 %v5371_v32, %v5287_v5  ;;  %v2025_v63 = vsel %vm5395_vm10, %v5285_v62, %v2021_v61  ;;  %vm2356_vm13 = vweird.f32 %v5219_v36 }
 0x360   : > { %v3757_v53 = vpop.eup %3756  ;;  %v2354_v29 = vmul.f32 %v5325_v60, %v2353_v11  ;;  %v2382_v40 = vmul.f32 %v5377_v3, %v5304_v12  ;;  %vm2357_vm14 = vweird.f32 %v5325_v60  ;;  %vm1661_vm15 = vweird.f32 %v5179_v18 }
 0x361   : > { %vm1662_vm3 = vweird.f32 %v5264_v38  ;;  %v2318_v4 = vadd.f32 %v2317_v31, %v2276_v34  ;;  %v1639_v15 = vsel %vm5404_vm12, %v1638_v14, %v1634_v20  ;;  %v2362_v50 = vand.u32 2147483648, %v5219_v36  ;;  %vm5453_vm6 = vmor %vm2356_vm13, %vm2357_vm14 }
 0x362   : > { %v5428_v62 = vadd.f32 1.0, %v3757_v53  ;;  %v1667_v57 = vand.u32 2147483648, %v5179_v18  ;;  %v3759_v56 = vpop.eup %3758  ;;  %v2030_v28 = vsel %vm5399_vm11, %v2029_v58, %v2025_v63  ;;  %v1660_v33 = vadd.f32 %v5264_v38, %v1659_v9  ;;  %vm5441_vm5 = vmor %vm1661_vm15, %vm1662_vm3 }
 0x363   : > { %v1665_v47 = vand.u32 2147483647, %v5179_v18  ;;  %v1989_v27 = vsub.f32 1.0, %v1988_v59  ;;  %v5435_v23 = vpop.eup %3760  ;;  %v2355_v42 = vadd.f32 %v5325_v60, %v2354_v29  ;;  %v2360_v2 = vand.u32 2147483647, %v5219_v36 }
 0x364   : > { %v2383_v35 = vsub.f32 1.0, %v2382_v40  ;;  %v5445_v37 = vpop.eup %3762  ;;  %v3547_v18 = vmul.f32 -1.442695, %v2318_v4  ;;  %v5457_v7 = vadd.f32 1.0, %v3759_v56  ;;  %v2363_v61 = vor.u32 1.1754944e-38, %v2362_v50 }
 0x365   : > { %3764 = vrcp.f32 %v5428_v62  ;;  %v1668_v1 = vor.u32 1.1754944e-38, %v1667_v57  ;;  %v1664_v11 = vsel %vm5441_vm5, %v5264_v38, %v1660_v33  ;;  %vm1666_vm7 = vcmp.eq.f32.partialorder %v1665_v47, 8.507059e+37 }
 0x366   : > { %1683 = vperm.xlu2 %3653, %v1609_v22   ;;  %v1990_v36 = vmul.f32 %v5371_v32, %v1989_v27  ;;  %v2359_v41 = vsel %vm5453_vm6, %v5325_v60, %v2355_v42  ;;  %vm2361_vm8 = vcmp.eq.f32.partialorder %v2360_v2, 8.507059e+37  ;;  %v2384_v58 = vmul.f32 %v5377_v3, %v2383_v35 }
 0x367   : > { %2930 = vadd.xlane.f32.xlu0 %v2929_v43  ;;  %1698 = vperm.xlu1 %3652, %v1654_v24   ;;  %v2960_v24 = vsel %vm259_vm0, %v4715_v8, -inf  ;;  %v2048_v43 = vmul.f32 %v5435_v23, %v5373_v6  ;;  %v2412_v16 = vmul.f32 %v5445_v37, %v5381_v44  ;;  %vm2386_vm9 = vweird.f32 %v5304_v12 }
 0x368   : > { %vm1992_vm10 = vweird.f32 %v5287_v5  ;;  %vm1993_vm11 = vweird.f32 %v5371_v32  ;;  %3766 = vpow2.f32 %v3547_v18  ;;  %v1669_v38 = vsel %vm1666_vm7, %v1668_v1, %v1664_v11 }
 0x369   : > { %vm2387_vm12 = vweird.f32 %v5377_v3  ;;  %v2392_v14 = vand.u32 2147483648, %v5304_v12  ;;  %v1998_v60 = vand.u32 2147483648, %v5287_v5  ;;  %v2364_v34 = vsel %vm2361_vm8, %v2363_v61, %v2359_v41  ;;  %v5484_v59 = vpop.xlane.xlu1 %2597  ;;  %vm5490_vm13 = vmor %vm1992_vm10, %vm1993_vm11 }
 0x36a   : > { %v1991_v31 = vadd.f32 %v5371_v32, %v1990_v36  ;;  %v1996_v53 = vand.u32 2147483647, %v5287_v5  ;;  %v2049_v20 = vsub.f32 1.0, %v2048_v43  ;;  %v2385_v63 = vadd.f32 %v5377_v3, %v2384_v58  ;;  %vm5500_vm14 = vmor %vm2386_vm9, %vm2387_vm12 }
 0x36b   : > { %v5482_v9 = vpop.eup %3764  ;;  %v2390_v29 = vand.u32 2147483647, %v5304_v12  ;;  %v2413_v4 = vsub.f32 1.0, %v2412_v16  ;;  %3768 = vrcp.f32 %v5457_v7  ;;  %v2393_v5 = vor.u32 1.1754944e-38, %v2392_v14 }
 0x36c   : > { %v1999_v57 = vor.u32 1.1754944e-38, %v1998_v60  ;;  %vm1997_vm15 = vcmp.eq.f32.partialorder %v1996_v53, 8.507059e+37  ;;  %v2050_v33 = vmul.f32 %v5435_v23, %v2049_v20  ;;  %v2078_v12 = vmul.f32 %v5482_v9, %v5428_v62 }
 0x36d   : > { %v2389_v27 = vsel %vm5500_vm14, %v5377_v3, %v2385_v63  ;;  %vm2391_vm3 = vcmp.eq.f32.partialorder %v2390_v29, 8.507059e+37  ;;  %v2414_v42 = vmul.f32 %v5445_v37, %v2413_v4  ;;  %vm2416_vm5 = vweird.f32 %v5381_v44 }
 0x36e   : > { %1693 = vperm.xlu2 %3653, %v1639_v15   ;;  %v2559_v15 = vsel %vm259_vm0, %v4656_v25, 0.0  ;;  %v3767_v56 = vpop.eup %3766  ;;  %vm2417_vm6 = vweird.f32 %v5445_v37  ;;  %vm2052_vm7 = vweird.f32 %v5373_v6  ;;  %vm2053_vm8 = vweird.f32 %v5435_v23 }
 0x36f   : > { %2961 = vmax.xlane.f32.xlu0 %v2960_v24  ;;  %2104 = vperm.xlu1 %3652, %v2030_v28   ;;  %v1995_v28 = vsel %vm5490_vm13, %v5371_v32, %v1991_v31  ;;  %v2422_v32 = vand.u32 2147483648, %v5381_v44  ;;  %v5523_v24 = vadd.f32 1.0, %v3767_v56  ;;  %v2058_v3 = vand.u32 2147483648, %v5373_v6  ;;  %vm5533_vm9 = vmor %vm2052_vm7, %vm2053_vm8 }
 0x370   : > { %v2000_v35 = vsel %vm1997_vm15, %v1999_v57, %v1995_v28  ;;  %v2394_v39 = vsel %vm2391_vm3, %v2393_v5, %v2389_v27  ;;  %v2051_v18 = vadd.f32 %v5435_v23, %v2050_v33  ;;  %v2056_v61 = vand.u32 2147483647, %v5373_v6  ;;  %vm5543_vm10 = vmor %vm2416_vm5, %vm2417_vm6 }
 0x371   : > { %v5466_v17 = vpop.xlane.xlu2 %2600  ;;  %v2079_v1 = vsub.f32 1.0, %v2078_v12  ;;  %v5528_v11 = vpop.eup %3768  ;;  %v2415_v36 = vadd.f32 %v5445_v37, %v2414_v42  ;;  %v2420_v43 = vand.u32 2147483647, %v5381_v44  ;;  %v2590_v58 = vsel %vm259_vm0, %v4660_v55, -inf }
 0x372   : > { %v5547_v16 = vpop.xlane.xlu1 %2955  ;;  %3770 = vrcp.f32 %v5523_v24  ;;  %v2059_v14 = vor.u32 1.1754944e-38, %v2058_v3  ;;  %v2055_v60 = vsel %vm5533_vm9, %v5435_v23, %v2051_v18  ;;  %vm2057_vm11 = vcmp.eq.f32.partialorder %v2056_v61, 8.507059e+37 }
 0x373   : > { %v2367_v44 = vmul.f32 %v5528_v11, %v5457_v7  ;;  %v2419_v53 = vsel %vm5543_vm10, %v5445_v37, %v2415_v36  ;;  %vm2421_vm12 = vcmp.eq.f32.partialorder %v2420_v43, 8.507059e+37  ;;  %vm2082_vm13 = vweird.f32 %v5428_v62  ;;  %v6546_v37 = vld [vmem:[#allocation3_spill] sm:$0xff] }
 0x374   : > { %vm2083_vm14 = vweird.f32 %v5482_v9  ;;  %v2060_v63 = vsel %vm2057_vm11, %v2059_v14, %v2055_v60  ;;  %v2088_v29 = vand.u32 2147483648, %v5428_v62  ;;  %v2926_v57 = vsel %vm259_vm0, %v4670_v52, 0.0 }
 0x375   : > { %v2368_v50 = vsub.f32 1.0, %v2367_v44  ;;  %vm5569_vm15 = vmor %vm2082_vm13, %vm2083_vm14  ;;  %v429_v56 = vadd.f32 %v4606_v0, %v4604_v49  ;;  %vm2371_vm5 = vweird.f32 %v5457_v7  ;;  %vm2372_vm6 = vweird.f32 %v5528_v11 }
 0x376   : > { %1703 = vperm.xlu2 %3653, %v1669_v38   ;;  %v2423_v38 = vor.u32 1.1754944e-38, %v2422_v32  ;;  %v2089_v28 = vor.u32 1.1754944e-38, %v2088_v29  ;;  %v793_v3 = vadd.f32 %v4600_v10, %v4598_v54  ;;  %vm5596_vm7 = vmor %vm2371_vm5, %vm2372_vm6  ;;  %v2957_v18 = vsel %vm259_vm0, %v4680_v51, -inf }
 0x377   : > { %2560 = vadd.xlane.f32.xlu0 %v2559_v15  ;;  %2458 = vperm.xlu1 %3652, %v2364_v34   ;;  %v2080_v34 = vmul.f32 %v5482_v9, %v2079_v1  ;;  %v2086_v15 = vand.u32 2147483647, %v5428_v62  ;;  %v2369_v33 = vmul.f32 %v5528_v11, %v2368_v50  ;;  %v3351_v49 = vmul.f32 -1.442695, %v429_v56 }
 0x378   : > { %v2424_v40 = vsel %vm2421_vm12, %v2423_v38, %v2419_v53  ;;  %v5567_v5 = vpop.eup %3770  ;;  %vm2431_vm9 = vweird.f32 %v5523_v24  ;;  %vm625_vm11 = vcmask 519168   ;;  %v2435_v38 = vand.u32 2147483647, %v5523_v24  ;;  %v6543_v53 = vld [vmem:[#allocation42_spill] sm:$0xff] }
 0x379   : > { %v5511_v47 = vpop.xlane.xlu2 %2588  ;;  %v2081_v4 = vadd.f32 %v5482_v9, %v2080_v34  ;;  %vm2087_vm3 = vcmp.eq.f32.partialorder %v2086_v15, 8.507059e+37  ;;  %v2427_v12 = vmul.f32 %v5567_v5, %v5523_v24  ;;  %v2370_v32 = vadd.f32 %v5528_v11, %v2369_v33  ;;  %v6542_v34 = vld [vmem:[#allocation44_spill] sm:$0xff]  ;;  %v6545_v15 = vld [vmem:[#allocation5_spill] sm:$0xff] }
 0x37a   : > { %v2576_v2 = vpop.xlane.xlu0 %2575  ;;  %v5583_v27 = vpop.xlane.xlu1 %2952  ;;  %3772 = vpow2.f32 %v3351_v49  ;;  %vm2432_vm10 = vweird.f32 %v5567_v5  ;;  %v2556_v44 = vsel %vm259_vm0, %v6542_v34, 0.0  ;;  %vm2436_vm13 = vcmp.eq.f32.partialorder %v2435_v38, 8.507059e+37 }
 0x37b   : > { %v2583_v22 = vmul.f32 %v2576_v2, %v4184_v21  ;;  %v2085_v62 = vsel %vm5569_vm15, %v5482_v9, %v2081_v4  ;;  %v2377_v9 = vand.u32 2147483648, %v5457_v7  ;;  %v2374_v54 = vsel %vm5596_vm7, %v5528_v11, %v2370_v32  ;;  %vm5622_vm12 = vmor %vm2431_vm9, %vm2432_vm10 }
 0x37c   : > { %v2090_v0 = vsel %vm2087_vm3, %v2089_v28, %v2085_v62  ;;  %vm633_vm14 = vsmask.f32 256 }
 0x37d   : > { %3573 = vmatpush.msk.msrb.mxu1 %vm339_vm2, %v2583_v22  ;;  %v2375_v22 = vand.u32 2147483647, %v5457_v7  ;;  %v2378_v7 = vor.u32 1.1754944e-38, %v2377_v9  ;;  %vm5657_vm15 = vmand %vm278_vm1, %vm633_vm14 }
 0x37e   : > { %2094 = vperm.xlu2 %3653, %v2000_v35   ;;  %v2428_v35 = vsub.f32 1.0, %v2427_v12 }
 0x37f   : > { %2591 = vmax.xlane.f32.xlu0 %v2590_v58  ;;  %2468 = vperm.xlu1 %3652, %v2394_v39   ;;  %vm2376_vm8 = vcmp.eq.f32.partialorder %v2375_v22, 8.507059e+37 }
 0x380   : > { %v2429_v10 = vmul.f32 %v5567_v5, %v2428_v35  ;;  %v2379_v11 = vsel %vm2376_vm8, %v2378_v7, %v2374_v54  ;;  %v3773_v14 = vpop.eup %3772 }
 0x381   : > { %v5556_v31 = vpop.xlane.xlu2 %2585 }
 0x382   : > { %v2573_v20 = vpop.xlane.xlu0 %2572  ;;  %v2430_v6 = vadd.f32 %v5567_v5, %v2429_v10  ;;  %v6550_v10 = vld [vmem:[#allocation46_spill] sm:$0xff] }
 0x383   : > { %v2582_v23 = vmul.f32 %v2573_v20, %v4184_v21  ;;  %v6544_v20 = vld [vmem:[#allocation43_spill] sm:$0xff] }
 0x384   : > { %v2434_v29 = vsel %vm5622_vm12, %v5567_v5, %v2430_v6  ;;  %v6547_v5 = vld [vmem:[#allocation47_spill] sm:$0xff] }
 0x385   : > { %2659 = vmatpush.msrb.mxu1 %v2582_v23  ;;  %v796_v23 = vadd.f32 %v6544_v20, %v6543_v53  ;;  %v6554_v53 = vld [vmem:[#allocation7_spill] sm:$0xff] }
 0x386   : > { %2114 = vperm.xlu2 %3653, %v2060_v63   ;;  %v5634_v63 = vadd.f32 1.0, %v3773_v14 }
 0x387   : > { %2927 = vadd.xlane.f32.xlu0 %v2926_v57  ;;  %2478 = vperm.xlu1 %3652, %v2424_v40   ;;  %v3382_v28 = vmul.f32 -1.442695, %v796_v23 }
 0x389   : > { %v5585_v42 = vpop.xlane.xlu2 %2949 }
 0x38a   : > { %v2604_v2 = vpop.xlane.xlu0 %2603 }
 0x38b   : > { %3565 = vmatpush.msk.msrb.mxu0 %vm339_vm2, %v2604_v2 }
 0x38d   : > { %2618 = vmatpush.msrb.mxu0 %v5466_v17  ;;  %v3381_v17 = vmul.f32 -1.442695, %v793_v3  ;;  %v6548_v3 = vld [vmem:[#allocation11_spill] sm:$0xff] }
 0x38e   : > { %2124 = vperm.xlu2 %3653, %v2090_v0   ;;  %v2923_v0 = vsel %vm259_vm0, %v6547_v5, 0.0 }
 0x38f   : > { %2958 = vmax.xlane.f32.xlu0 %v2957_v18  ;;  %2619 = vmatpush.msrb.mxu0 %v5484_v59  ;;  %3774 = vpow2.f32 %v3381_v17  ;;  %v6549_v18 = vld [vmem:[#allocation8_spill] sm:$0xff]  ;;  %v3384_v17 = vmul.f32 -1.442695, %v6550_v10 }
 0x390   : > { %3776 = vrcp.f32 %v5634_v63 }
 0x391   : > { %v579_v61 = vpop.permute.xlu1 %578  ;;  %v584_v1 = vpop.permute.xlu2 %583  ;;  %3778 = vpow2.f32 %v3382_v28 }
 0x392   : > { %v611_v36 = vmul.f32 %v579_v61, %v3994_v45  ;;  %v612_v43 = vmul.f32 %v584_v1, %v3999_v48  ;;  %v2940_v41 = vpop.xlane.xlu0 %2939  ;;  %v2437_v45 = vand.u32 2147483648, %v5523_v24  ;;  %v635_v1 = vld [vmem:[%s5615_s30 + $0x18] sm:$0x1] }
 0x393   : > { %v2947_v59 = vmul.f32 %v2940_v41, %v4184_v21 }
 0x394   : > { %v618_v58 = vpack.c.bf16 %v611_v36, %v611_v36  ;;  %v619_v48 = vpack.c.bf16 %v612_v43, %v612_v43  ;;  %v2438_v24 = vor.u32 1.1754944e-38, %v2437_v45 }
 0x395   : > { %3612 = vmatpush.msk.msrb.mxu3 %vm339_vm2, %v2947_v59  ;;  %v3775_v49 = vpop.eup %3774 }
 0x396   : > { %626 = vst.msk [vmem:[%s5615_s30] sm:$0xf] %vm625_vm11, %v618_v58  ;;  %2463 = vperm.xlu2 %3653, %v2379_v11   ;;  %v2439_v33 = vsel %vm2436_vm13, %v2438_v24, %v2434_v29  ;;  %v5649_v9 = vadd.f32 1.0, %v3775_v49  ;;  %v5651_v35 = vpop.eup %3776  ;;  %v6553_v58 = vld [vmem:[#allocation45_spill] sm:$0xff]  ;;  %v6555_v24 = vld [vmem:[#allocation48_spill] sm:$0xff] }
 0x397   : > { %627 = vst.msk [vmem:[%s5615_s30 + $0x4] sm:$0xf] %vm625_vm11, %v619_v48  ;;  %2557 = vadd.xlane.f32.xlu0 %v2556_v44  ;;  %v3779_v59 = vpop.eup %3778  ;;  %v502_v11 = vmul.f32 %v5651_v35, %v5634_v63  ;;  %v2920_v48 = vsel %vm259_vm0, %v6553_v58, 0.0  ;;  %v3386_v29 = vmul.f32 -1.442695, %v6555_v24  ;;  %vm506_vm0 = vweird.f32 %v5634_v63  ;;  %v6556_v49 = vld [vmem:[#allocation16_spill] sm:$0xff] }
 0x398   : > { %3780 = vrcp.f32 %v5649_v9  ;;  %v5673_v6 = vadd.f32 1.0, %v3779_v59  ;;  %vm507_vm1 = vweird.f32 %v5651_v35  ;;  %vm858_vm5 = vweird.f32 %v5649_v9  ;;  %v6563_v24 = vld [vmem:[#allocation52_spill] sm:$0xff] }
 0x399   : > { %v599_v40 = vpop.permute.xlu1 %598  ;;  %v594_v4 = vpop.permute.xlu2 %593  ;;  %3782 = vpow2.f32 %v3384_v17  ;;  %v503_v60 = vsub.f32 1.0, %v502_v11 }
 0x39a   : > { %v615_v50 = vmul.f32 %v599_v40, %v6545_v15  ;;  %v614_v57 = vmul.f32 %v594_v4, %v6546_v37  ;;  %v2570_v56 = vpop.xlane.xlu0 %2569  ;;  %3784 = vrcp.f32 %v5673_v6  ;;  %vm873_vm9 = vweird.f32 %v5673_v6 }
 0x39b   : > { %v2581_v62 = vmul.f32 %v2570_v56, %v4184_v21  ;;  %v504_v15 = vmul.f32 %v5651_v35, %v503_v60  ;;  %3786 = vpow2.f32 %v3386_v29  ;;  %v6560_v60 = vld [vmem:[#allocation21_spill] sm:$0xff]  ;;  %v3422_v29 = vmul.f32 -1.442695, %v6563_v24  ;;  %v6569_v24 = vld [vmem:[#allocation56_spill] sm:$0xff] }
 0x39c   : > { %v622_v12 = vpack.c.bf16 %v615_v50, %v615_v50  ;;  %v621_v2 = vpack.c.bf16 %v614_v57, %v614_v57  ;;  %v512_v57 = vand.u32 2147483648, %v5634_v63 }
 0x39d   : > { %2660 = vmatpush.msrb.mxu1 %v2581_v62  ;;  %v505_v62 = vadd.f32 %v5651_v35, %v504_v15 }
 0x39e   : > { %630 = vst.msk [vmem:[%s5615_s30 + $0x10] sm:$0xf] %vm625_vm11, %v622_v12  ;;  %2483 = vperm.xlu2 %3653, %v2439_v33   ;;  %v5677_v44 = vpop.eup %3780  ;;  %v510_v33 = vand.u32 2147483647, %v5634_v63 }
 0x39f   : > { %629 = vst.msk [vmem:[%s5615_s30 + $0xc] sm:$0xf] %vm625_vm11, %v621_v2  ;;  %2924 = vadd.xlane.f32.xlu0 %v2923_v0  ;;  %v3783_v4 = vpop.eup %3782  ;;  %v854_v50 = vmul.f32 %v5677_v44, %v5649_v9  ;;  %vm859_vm6 = vweird.f32 %v5677_v44 }
 0x3a0   : > { %v5690_v37 = vadd.f32 1.0, %v3783_v4  ;;  %v5697_v2 = vpop.eup %3784  ;;  %vm511_vm3 = vcmp.eq.f32.partialorder %v510_v33, 8.507059e+37  ;;  %vm5727_vm7 = vmor %vm858_vm5, %vm859_vm6 }
 0x3a1   : > { %v609_v32 = vpop.permute.xlu1 %608  ;;  %v604_v22 = vpop.permute.xlu2 %603  ;;  %v855_v12 = vsub.f32 1.0, %v854_v50  ;;  %vm874_vm10 = vweird.f32 %v5697_v2 }
 0x3a2   : > { %v617_v39 = vmul.f32 %v609_v32, %v6548_v3  ;;  %v616_v7 = vmul.f32 %v604_v22, %v6549_v18  ;;  %v2937_v54 = vpop.xlane.xlu0 %2936  ;;  %v6559_v3 = vld [vmem:[#allocation49_spill] sm:$0xff]  ;;  %3788 = vrcp.f32 %v5690_v37  ;;  %v3787_v63 = vpop.eup %3786  ;;  %vm5755_vm12 = vmor %vm873_vm9, %vm874_vm10  ;;  %vm903_vm14 = vweird.f32 %v5690_v37 }
 0x3a3   : > { %v2946_v36 = vmul.f32 %v2937_v54, %v4184_v21  ;;  %v513_v54 = vor.u32 1.1754944e-38, %v512_v57  ;;  %v856_v17 = vmul.f32 %v5677_v44, %v855_v12  ;;  %v879_v12 = vand.u32 2147483648, %v5673_v6 }
 0x3a4   : > { %v624_v43 = vpack.c.bf16 %v617_v39, %v617_v39  ;;  %v623_v41 = vpack.c.bf16 %v616_v7, %v616_v7  ;;  %v3419_v39 = vmul.f32 -1.442695, %v6559_v3 }
 0x3a5   : > { %3023 = vmatpush.msrb.mxu3 %v2946_v36  ;;  %v5717_v36 = vadd.f32 1.0, %v3787_v63  ;;  %v857_v11 = vadd.f32 %v5677_v44, %v856_v17  ;;  %v880_v63 = vor.u32 1.1754944e-38, %v879_v12 }
 0x3a6   : > { %v636_v45 = vsel %vm5657_vm15, %v624_v43, %v635_v1  ;;  %631 = vst.msk [vmem:[%s5615_s30 + $0x14] sm:$0xf] %vm625_vm11, %v623_v41  ;;  %v869_v1 = vmul.f32 %v5697_v2, %v5673_v6  ;;  %3790 = vpow2.f32 %v3419_v39  ;;  %v864_v41 = vand.u32 2147483648, %v5649_v9 }
 0x3a7   : > { %637 = vst [vmem:[%s5615_s30 + $0x18] sm:$0x1] %v636_v45  ;;  %2921 = vadd.xlane.f32.xlu0 %v2920_v48  ;;  %v862_v45 = vand.u32 2147483647, %v5649_v9  ;;  %3792 = vrcp.f32 %v5717_v36  ;;  %v861_v50 = vsel %vm5727_vm7, %v5677_v44, %v857_v11 }
 0x3a8   : > { %v870_v48 = vsub.f32 1.0, %v869_v1  ;;  %v865_v9 = vor.u32 1.1754944e-38, %v864_v41  ;;  %3794 = vpow2.f32 %v3422_v29  ;;  %v3504_v29 = vmul.f32 -1.442695, %v6569_v24 }
 0x3a9   : > { %v946_v38 = vpop.permute.xlu1 %945  ;;  %v5675_v14 = vpop.permute.xlu2 %1314  ;;  %vm863_vm8 = vcmp.eq.f32.partialorder %v862_v45, 8.507059e+37 }
 0x3aa   : > { %v978_v20 = vmul.f32 %v946_v38, %v6554_v53  ;;  %v2968_v23 = vpop.xlane.xlu0 %2967  ;;  %v5724_v38 = vpop.eup %3788  ;;  %v871_v57 = vmul.f32 %v5697_v2, %v870_v48  ;;  %v866_v33 = vsel %vm863_vm8, %v865_v9, %v861_v50  ;;  %v907_v48 = vand.u32 2147483647, %v5690_v37 }
 0x3ab   : > { %3604 = vmatpush.msk.msrb.mxu2 %vm339_vm2, %v2968_v23  ;;  %vm5700_vm2 = vmor %vm506_vm0, %vm507_vm1  ;;  %vm904_vm0 = vweird.f32 %v5724_v38 }
 0x3ac   : > { %v985_v40 = vpack.c.bf16 %v978_v20, %v978_v20  ;;  %v509_v10 = vsel %vm5700_vm2, %v5651_v35, %v505_v62  ;;  %v3791_v15 = vpop.eup %3790  ;;  %vm5780_vm1 = vmor %vm903_vm14, %vm904_vm0  ;;  %vm908_vm2 = vcmp.eq.f32.partialorder %v907_v48, 8.507059e+37 }
 0x3ad   : > { %v514_v43 = vsel %vm511_vm3, %v513_v54, %v509_v10  ;;  %v5744_v62 = vadd.f32 1.0, %v3791_v15  ;;  %v5753_v3 = vpop.eup %3792  ;;  %vm933_vm3 = vweird.f32 %v5717_v36 }
 0x3ae   : > { %3387 = vst.msk [vmem:[%s5615_s30 + $0x38] sm:$0xf] %vm625_vm11, %v985_v40  ;;  %v3795_v10 = vpop.eup %3794  ;;  %v929_v1 = vmul.f32 %v5753_v3, %v5717_v36  ;;  %vm934_vm5 = vweird.f32 %v5753_v3 }
 0x3af   : > { %3796 = vrcp.f32 %v5744_v62  ;;  %vm5806_vm6 = vmor %vm933_vm3, %vm934_vm5  ;;  %vm1207_vm8 = vweird.f32 %v5744_v62  ;;  %v1211_v48 = vand.u32 2147483647, %v5744_v62 }
 0x3b1   : > { %v961_v56 = vpop.permute.xlu1 %960  ;;  %v5693_v28 = vpop.permute.xlu2 %1329 }
 0x3b2   : > { %v981_v0 = vmul.f32 %v961_v56, %v6556_v49  ;;  %v2567_v32 = vpop.xlane.xlu0 %2566  ;;  %v899_v56 = vmul.f32 %v5724_v38, %v5690_v37 }
 0x3b3   : > { %v2580_v18 = vmul.f32 %v2567_v32, %v4184_v21  ;;  %v877_v32 = vand.u32 2147483647, %v5673_v6 }
 0x3b4   : > { %v988_v7 = vpack.c.bf16 %v981_v0, %v981_v0  ;;  %v872_v0 = vadd.f32 %v5697_v2, %v871_v57  ;;  %v900_v22 = vsub.f32 1.0, %v899_v56 }
 0x3b5   : > { %2661 = vmatpush.msrb.mxu1 %v2580_v18  ;;  %vm878_vm13 = vcmp.eq.f32.partialorder %v877_v32, 8.507059e+37  ;;  %v937_v32 = vand.u32 2147483647, %v5717_v36 }
 0x3b6   : > { %3390 = vst.msk [vmem:[%s5615_s30 + $0x44] sm:$0xf] %vm625_vm11, %v988_v7  ;;  %v6566_v7 = vld [vmem:[#allocation54_spill] sm:$0xff]  ;;  %v876_v6 = vsel %vm5755_vm12, %v5697_v2, %v872_v0  ;;  %v901_v17 = vmul.f32 %v5724_v38, %v900_v22  ;;  %vm1212_vm12 = vcmp.eq.f32.partialorder %v1211_v48, 8.507059e+37  ;;  %v2320_v48 = vpop.f32.mrf.mxu3 }
 0x3b7   : > { %v3424_v54 = vmul.f32 -1.442695, %v6566_v7  ;;  %v881_v41 = vsel %vm878_vm13, %v880_v63, %v876_v6  ;;  %vm938_vm7 = vcmp.eq.f32.partialorder %v937_v32, 8.507059e+37  ;;  %v6574_v7 = vld [vmem:[#allocation19_spill] sm:$0xff] }
 0x3b8   : > { %v902_v2 = vadd.f32 %v5724_v38, %v901_v17 }
 0x3b9   : > { %v971_v59 = vpop.permute.xlu1 %970  ;;  %v5720_v35 = vpop.permute.xlu2 %1339  ;;  %3798 = vpow2.f32 %v3424_v54  ;;  %v3506_v54 = vmul.f32 -1.442695, %v5138_v13 }
 0x3ba   : > { %v983_v53 = vmul.f32 %v971_v59, %v6560_v60  ;;  %v2934_v20 = vpop.xlane.xlu0 %2933  ;;  %v909_v59 = vand.u32 2147483648, %v5690_v37  ;;  %v930_v60 = vsub.f32 1.0, %v929_v1  ;;  %v906_v37 = vsel %vm5780_vm1, %v5724_v38, %v902_v2 }
 0x3bb   : > { %v2945_v40 = vmul.f32 %v2934_v20, %v4184_v21  ;;  %588 = vperm.xlu0 %3651, %v514_v43   ;;  %v5769_v43 = vadd.f32 1.0, %v3795_v10 }
 0x3bc   : > { %v990_v4 = vpack.c.bf16 %v983_v53, %v983_v53  ;;  %v5778_v53 = vpop.eup %3796  ;;  %v931_v15 = vmul.f32 %v5753_v3, %v930_v60 }
 0x3bd   : > { %3024 = vmatpush.msrb.mxu3 %v2945_v40  ;;  %3800 = vrcp.f32 %v5769_v43  ;;  %v1203_v50 = vmul.f32 %v5778_v53, %v5744_v62  ;;  %vm1208_vm9 = vweird.f32 %v5778_v53  ;;  %vm1252_vm13 = vweird.f32 %v5769_v43 }
 0x3be   : > { %3392 = vst.msk [vmem:[%s5615_s30 + $0x4c] sm:$0xf] %vm625_vm11, %v990_v4  ;;  %v910_v4 = vor.u32 1.1754944e-38, %v909_v59  ;;  %3802 = vpow2.f32 %v3504_v29  ;;  %v932_v38 = vadd.f32 %v5753_v3, %v931_v15  ;;  %vm5831_vm10 = vmor %vm1207_vm8, %vm1208_vm9  ;;  %v3508_v29 = vmul.f32 -1.442695, %v5268_v26 }
 0x3bf   : > { %v3799_v9 = vpop.eup %3798  ;;  %v1204_v22 = vsub.f32 1.0, %v1203_v50  ;;  %v1256_v32 = vand.u32 2147483647, %v5769_v43 }
 0x3c0   : > { %v5795_v57 = vadd.f32 1.0, %v3799_v9  ;;  %v911_v56 = vsel %vm908_vm2, %v910_v4, %v906_v37 }
 0x3c1   : > { %v5747_v49 = vpop.permute.xlu1 %1319  ;;  %v5749_v44 = vpop.permute.xlu2 %1673  ;;  %v1205_v6 = vmul.f32 %v5778_v53, %v1204_v22  ;;  %vm1257_vm1 = vcmp.eq.f32.partialorder %v1256_v32, 8.507059e+37 }
 0x3c2   : > { %v2965_v39 = vpop.xlane.xlu0 %2964  ;;  %3804 = vrcp.f32 %v5795_v57  ;;  %vm1282_vm2 = vweird.f32 %v5795_v57 }
 0x3c3   : > { %950 = vperm.xlu0 %3651, %v866_v33   ;;  %2982 = vmatpush.msrb.mxu2 %v2965_v39  ;;  %v939_v33 = vand.u32 2147483648, %v5717_v36  ;;  %v5804_v39 = vpop.eup %3800  ;;  %v936_v36 = vsel %vm5806_vm6, %v5753_v3, %v932_v38  ;;  %3806 = vpow2.f32 %v3506_v54  ;;  %v1206_v3 = vadd.f32 %v5778_v53, %v1205_v6 }
 0x3c4   : > { %v3803_v10 = vpop.eup %3802  ;;  %v1248_v17 = vmul.f32 %v5804_v39, %v5769_v43  ;;  %vm1253_vm14 = vweird.f32 %v5804_v39 }
 0x3c5   : > { %v940_v63 = vor.u32 1.1754944e-38, %v939_v33  ;;  %v5820_v13 = vadd.f32 1.0, %v3803_v10  ;;  %vm5855_vm0 = vmor %vm1252_vm13, %vm1253_vm14 }
 0x3c6   : > { %v1249_v60 = vsub.f32 1.0, %v1248_v17  ;;  %v3545_v17 = vmul.f32 -1.442695, %v5144_v30 }
 0x3c7   : > { %v941_v1 = vsel %vm938_vm7, %v940_v63, %v936_v36  ;;  %3808 = vrcp.f32 %v5820_v13  ;;  %v6575_v63 = vld [vmem:[#allocation25_spill] sm:$0xff]  ;;  %vm2007_vm7 = vweird.f32 %v5820_v13 }
 0x3c8   : > { %v1250_v37 = vmul.f32 %v5804_v39, %v1249_v60  ;;  %3810 = vpow2.f32 %v3508_v29 }
 0x3c9   : > { %v5772_v11 = vpop.permute.xlu1 %1678  ;;  %v5774_v45 = vpop.permute.xlu2 %1683 }
 0x3ca   : > { %v2564_v20 = vpop.xlane.xlu0 %2563 }
 0x3cb   : > { %v2579_v40 = vmul.f32 %v2564_v20, %v4184_v21  ;;  %955 = vperm.xlu0 %3651, %v881_v41   ;;  %v1213_v41 = vand.u32 2147483648, %v5744_v62  ;;  %v5829_v20 = vpop.eup %3804  ;;  %v1210_v62 = vsel %vm5831_vm10, %v5778_v53, %v1206_v3  ;;  %v1251_v53 = vadd.f32 %v5804_v39, %v1250_v37  ;;  %v2279_v3 = vpop.f32.mrf.mxu2 }
 0x3cc   : > { %v3807_v9 = vpop.eup %3806  ;;  %v1278_v15 = vmul.f32 %v5829_v20, %v5795_v57  ;;  %vm1283_vm3 = vweird.f32 %v5829_v20  ;;  %v2321_v29 = vadd.f32 %v2320_v48, %v2279_v3 }
 0x3cd   : > { %2662 = vmatpush.msrb.mxu1 %v2579_v40  ;;  %v1214_v4 = vor.u32 1.1754944e-38, %v1213_v41  ;;  %v5846_v26 = vadd.f32 1.0, %v3807_v9  ;;  %vm5884_vm5 = vmor %vm1282_vm2, %vm1283_vm3 }
 0x3ce   : > { %v1279_v22 = vsub.f32 1.0, %v1278_v15  ;;  %v1286_v15 = vand.u32 2147483647, %v5795_v57 }
 0x3cf   : > { %v1215_v50 = vsel %vm1212_vm12, %v1214_v4, %v1210_v62  ;;  %3812 = vrcp.f32 %v5846_v26  ;;  %vm2037_vm12 = vweird.f32 %v5846_v26 }
 0x3d0   : > { %v1280_v24 = vmul.f32 %v5829_v20, %v1279_v22  ;;  %3814 = vpow2.f32 %v3545_v17  ;;  %vm1287_vm6 = vcmp.eq.f32.partialorder %v1286_v15, 8.507059e+37 }
 0x3d1   : > { %v5798_v12 = vpop.permute.xlu1 %1688  ;;  %v5800_v0 = vpop.permute.xlu2 %1693 }
 0x3d2   : > { %v2595_v18 = vpop.xlane.xlu0 %2594  ;;  %v1281_v37 = vadd.f32 %v5829_v20, %v1280_v24  ;;  %v2011_v24 = vand.u32 2147483647, %v5820_v13 }
 0x3d3   : > { %965 = vperm.xlu0 %3651, %v911_v56   ;;  %2620 = vmatpush.msrb.mxu0 %v2595_v18  ;;  %v1258_v56 = vand.u32 2147483648, %v5769_v43  ;;  %v5851_v18 = vpop.eup %3808 }
 0x3d4   : > { %v3811_v60 = vpop.eup %3810  ;;  %v2003_v30 = vmul.f32 %v5851_v18, %v5820_v13  ;;  %vm2008_vm8 = vweird.f32 %v5851_v18  ;;  %vm2012_vm10 = vcmp.eq.f32.partialorder %v2011_v24, 8.507059e+37 }
 0x3d5   : > { %v1259_v41 = vor.u32 1.1754944e-38, %v1258_v56  ;;  %v5878_v56 = vpop.eup %3812  ;;  %vm5913_vm9 = vmor %vm2007_vm7, %vm2008_vm8 }
 0x3d6   : > { %v3815_v17 = vpop.eup %3814  ;;  %vm2038_vm13 = vweird.f32 %v5878_v56 }
 0x3d7   : > { %vm2039_vm14 = vmor %vm2037_vm12, %vm2038_vm13 }
 0x3d9   : > { %v5823_v59 = vpop.permute.xlu1 %1698  ;;  %v5825_v2 = vpop.permute.xlu2 %1703 }
 0x3da   : > { %v2931_v23 = vpop.xlane.xlu0 %2930 }
 0x3db   : > { %v2944_v40 = vmul.f32 %v2931_v23, %v4184_v21  ;;  %975 = vperm.xlu0 %3651, %v941_v1   ;;  %v1255_v23 = vsel %vm5855_vm0, %v5804_v39, %v1251_v53  ;;  %v1288_v39 = vand.u32 2147483648, %v5795_v57  ;;  %v6579_v53 = vld [vmem:[#allocation35_spill] sm:$0xff]  ;;  %v1285_v57 = vsel %vm5884_vm5, %v5829_v20, %v1281_v37 }
 0x3dc   : > { %v1260_v4 = vsel %vm1257_vm1, %v1259_v41, %v1255_v23  ;;  %v5902_v41 = vadd.f32 1.0, %v3815_v17  ;;  %v2013_v20 = vand.u32 2147483648, %v5820_v13 }
 0x3dd   : > { %3025 = vmatpush.msrb.mxu3 %v2944_v40  ;;  %v5873_v40 = vadd.f32 1.0, %v3811_v60  ;;  %v1289_v6 = vor.u32 1.1754944e-38, %v1288_v39 }
 0x3df   : > { %3816 = vrcp.f32 %v5873_v40  ;;  %v1290_v3 = vsel %vm1287_vm6, %v1289_v6, %v1285_v57  ;;  %vm2067_vm1 = vweird.f32 %v5873_v40  ;;  %vm2401_vm6 = vweird.f32 %v5902_v41 }
 0x3e1   : > { %v2095_v33 = vpop.permute.xlu2 %2094  ;;  %v2105_v38 = vpop.permute.xlu1 %2104 }
 0x3e2   : > { %v2127_v54 = vmul.f32 %v2095_v33, %v6574_v7  ;;  %v2129_v10 = vmul.f32 %v2105_v38, %v6575_v63  ;;  %v2962_v36 = vpop.xlane.xlu0 %2961  ;;  %v6578_v33 = vld [vmem:[#allocation29_spill] sm:$0xff]  ;;  %v3548_v63 = vmul.f32 -1.442695, %v2321_v29 }
 0x3e3   : > { %1309 = vperm.xlu0 %3651, %v1215_v50   ;;  %2983 = vmatpush.msrb.mxu2 %v2962_v36  ;;  %v2004_v50 = vsub.f32 1.0, %v2003_v30 }
 0x3e4   : > { %v2134_v43 = vpack.c.bf16 %v2127_v54, %v2127_v54  ;;  %v2136_v1 = vpack.c.bf16 %v2129_v10, %v2129_v10  ;;  %3818 = vpow2.f32 %v3548_v63  ;;  %v2043_v63 = vand.u32 2147483648, %v5846_v26 }
 0x3e5   : > { %v5907_v29 = vpop.eup %3816  ;;  %3820 = vrcp.f32 %v5902_v41 }
 0x3e6   : > { %3510 = vst.msk [vmem:[%s5615_s30 + $0x1c] sm:$0xf] %vm625_vm11, %v2134_v43  ;;  %v2005_v43 = vmul.f32 %v5851_v18, %v2004_v50  ;;  %v3516_v50 = vld [vmem:[%s5615_s30 + $0x34] sm:$0x1]  ;;  %v2063_v7 = vmul.f32 %v5907_v29, %v5873_v40  ;;  %vm2068_vm2 = vweird.f32 %v5907_v29 }
 0x3e7   : > { %3512 = vst.msk [vmem:[%s5615_s30 + $0x24] sm:$0xf] %vm625_vm11, %v2136_v1  ;;  %v2033_v1 = vmul.f32 %v5878_v56, %v5846_v26  ;;  %vm2069_vm3 = vmor %vm2067_vm1, %vm2068_vm2 }
 0x3e8   : > { %v2006_v23 = vadd.f32 %v5851_v18, %v2005_v43  ;;  %v2064_v17 = vsub.f32 1.0, %v2063_v7  ;;  %v6586_v43 = vld [vmem:[#allocation39_spill] sm:$0xff] }
 0x3e9   : > { %v2115_v9 = vpop.permute.xlu2 %2114  ;;  %v2459_v62 = vpop.permute.xlu1 %2458  ;;  %v2034_v30 = vsub.f32 1.0, %v2033_v1 }
 0x3ea   : > { %v2131_v38 = vmul.f32 %v2115_v9, %v6578_v33  ;;  %v2491_v32 = vmul.f32 %v2459_v62, %v6579_v53  ;;  %v2561_v22 = vpop.xlane.xlu0 %2560  ;;  %v6583_v9 = vld [vmem:[#allocation37_spill] sm:$0xff]  ;;  %v2014_v53 = vor.u32 1.1754944e-38, %v2013_v20  ;;  %v2010_v13 = vsel %vm5913_vm9, %v5851_v18, %v2006_v23 }
 0x3eb   : > { %v2578_v54 = vmul.f32 %v2561_v22, %v4184_v21  ;;  %1324 = vperm.xlu0 %3651, %v1260_v4   ;;  %v6582_v4 = vld [vmem:[#allocation33_spill] sm:$0xff]  ;;  %v2035_v22 = vmul.f32 %v5878_v56, %v2034_v30 }
 0x3ec   : > { %v2138_v10 = vpack.c.bf16 %v2131_v38, %v2131_v38  ;;  %v2498_v36 = vpack.c.bf16 %v2491_v32, %v2491_v32  ;;  %v3819_v32 = vpop.eup %3818 }
 0x3ed   : > { %2663 = vmatpush.msrb.mxu1 %v2578_v54  ;;  %v5934_v18 = vadd.f32 1.0, %v3819_v32  ;;  %v2036_v6 = vadd.f32 %v5878_v56, %v2035_v22  ;;  %v3821_v57 = vpop.eup %3820  ;;  %v2407_v32 = vand.u32 2147483648, %v5902_v41 }
 0x3ee   : > { %3514 = vst.msk [vmem:[%s5615_s30 + $0x2c] sm:$0xf] %vm625_vm11, %v2138_v10  ;;  %v3880_v10 = vld [vmem:[%s6343_s0 + $0xa8] sm:$0xff]  ;;  %v2397_v24 = vmul.f32 %v3821_v57, %v5902_v41  ;;  %vm2402_vm7 = vweird.f32 %v3821_v57 }
 0x3ef   : > { %3549 = vst.msk [vmem:[%s5615_s30 + $0x54] sm:$0xf] %vm625_vm11, %v2498_v36  ;;  %3822 = vrcp.f32 %v5934_v18  ;;  %v2040_v23 = vsel %vm2039_vm14, %v5878_v56, %v2036_v6  ;;  %vm2403_vm8 = vmor %vm2401_vm6, %vm2402_vm7 }
 0x3f1   : > { %v2125_v48 = vpop.permute.xlu2 %2124  ;;  %v2469_v60 = vpop.permute.xlu1 %2468 }
 0x3f2   : > { %v2133_v39 = vmul.f32 %v2125_v48, %v6582_v4  ;;  %v2493_v62 = vmul.f32 %v2469_v60, %v6583_v9  ;;  %v2592_v37 = vpop.xlane.xlu0 %2591  ;;  %v2044_v60 = vor.u32 1.1754944e-38, %v2043_v63  ;;  %v2073_v4 = vand.u32 2147483648, %v5873_v40 }
 0x3f3   : > { %1334 = vperm.xlu0 %3651, %v1290_v3   ;;  %2621 = vmatpush.msrb.mxu0 %v2592_v37  ;;  %v2071_v9 = vand.u32 2147483647, %v5873_v40 }
 0x3f4   : > { %v2140_v33 = vpack.c.bf16 %v2133_v39, %v2133_v39  ;;  %v2500_v38 = vpack.c.bf16 %v2493_v62, %v2493_v62  ;;  %v3881_v39 = vld [vmem:[%s6343_s0 + $0xb0] sm:$0xff]  ;;  %v2398_v62 = vsub.f32 1.0, %v2397_v24  ;;  %v3890_v24 = vld [vmem:[%s6343_s0 + $0xd8] sm:$0x1] }
 0x3f5   : > { %2622 = vmatpush.msrb.mxu0 %v5511_v47  ;;  %v2015_v47 = vsel %vm2012_vm10, %v2014_v53, %v2010_v13  ;;  %v3823_v37 = vpop.eup %3822  ;;  %vm2072_vm5 = vcmp.eq.f32.partialorder %v2071_v9, 8.507059e+37  ;;  %v3882_v13 = vld [vmem:[%s6343_s0 + $0xb8] sm:$0xff]  ;;  %vm2446_vm10 = vweird.f32 %v5934_v18 }
 0x3f6   : > { %v2149_v54 = vsel %vm5657_vm15, %v2140_v33, %v3516_v50  ;;  %3551 = vst.msk [vmem:[%s5615_s30 + $0x5c] sm:$0xf] %vm625_vm11, %v2500_v38  ;;  %v2074_v50 = vor.u32 1.1754944e-38, %v2073_v4  ;;  %v2399_v38 = vmul.f32 %v3821_v57, %v2398_v62  ;;  %v2442_v53 = vmul.f32 %v3823_v37, %v5934_v18  ;;  %v6587_v4 = vld [vmem:[#allocation2_spill] sm:$0xff] }
 0x3f7   : > { %3517 = vst [vmem:[%s5615_s30 + $0x34] sm:$0x1] %v2149_v54  ;;  %2623 = vmatpush.msrb.mxu0 %v5556_v31  ;;  %v2041_v31 = vand.u32 2147483647, %v5846_v26  ;;  %v2065_v26 = vmul.f32 %v5907_v29, %v2064_v17  ;;  %v2408_v54 = vor.u32 1.1754944e-38, %v2407_v32  ;;  %vm2447_vm12 = vweird.f32 %v3823_v37  ;;  %v6588_v62 = vld [vmem:[#allocation6_spill] sm:$0xff] }
 0x3f8   : > { %3566 = vmatmul.msk.f32.vlgmr.msrb.gmra.mxu0 %vm317_vm4, %v3880_v10  ;;  %v2443_v22 = vsub.f32 1.0, %v2442_v53  ;;  %vm2448_vm13 = vmor %vm2446_vm10, %vm2447_vm12 }
 0x3f9   : > { %v2479_v36 = vpop.permute.xlu1 %2478  ;;  %vm2042_vm0 = vcmp.eq.f32.partialorder %v2041_v31, 8.507059e+37  ;;  %v2066_v56 = vadd.f32 %v5907_v29, %v2065_v26  ;;  %v2450_v31 = vand.u32 2147483647, %v5934_v18  ;;  %v3888_v26 = vld [vmem:[%s6343_s0 + $0xd0] sm:$0xff] }
 0x3fa   : > { %v2495_v1 = vmul.f32 %v2479_v36, %v6586_v43  ;;  %v2928_v3 = vpop.xlane.xlu0 %2927  ;;  %v2045_v30 = vsel %vm2042_vm0, %v2044_v60, %v2040_v23  ;;  %v2444_v63 = vmul.f32 %v3823_v37, %v2443_v22  ;;  %v3884_v36 = vld [vmem:[%s6343_s0 + $0xc0] sm:$0xff] }
 0x3fb   : > { %v2943_v20 = vmul.f32 %v2928_v3, %v4184_v21  ;;  %2099 = vperm.xlu0 %3651, %v2015_v47   ;;  %v2070_v33 = vsel %vm2069_vm3, %v5907_v29, %v2066_v56  ;;  %v2405_v29 = vand.u32 2147483647, %v5902_v41  ;;  %vm2451_vm14 = vcmp.eq.f32.partialorder %v2450_v31, 8.507059e+37  ;;  %v3885_v3 = vld [vmem:[%s6343_s0 + $0x78] sm:$0xff]  ;;  %v3887_v23 = vld [vmem:[%s6343_s0 + $0x80] sm:$0xff]  ;;  %v3891_v56 = vld [vmem:[%s6343_s0 + $0x90] sm:$0xff] }
 0x3fc   : > { %v2502_v48 = vpack.c.bf16 %v2495_v1, %v2495_v1  ;;  %v2075_v40 = vsel %vm2072_vm5, %v2074_v50, %v2070_v33  ;;  %v2445_v6 = vadd.f32 %v3823_v37, %v2444_v63  ;;  %v6589_v50 = vld [vmem:[#allocation23_spill] sm:$0xff]  ;;  %v6592_v22 = vld [vmem:[#allocation26_spill] sm:$0xff] }
 0x3fd   : > { %3026 = vmatpush.msrb.mxu3 %v2943_v20  ;;  %vm2406_vm9 = vcmp.eq.f32.partialorder %v2405_v29, 8.507059e+37  ;;  %v1707_v33 = vmul.f32 %v5772_v11, %v6589_v50  ;;  %v6596_v31 = vld [vmem:[#allocation18_spill] sm:$0xff] }
 0x3fe   : > { %3553 = vst.msk [vmem:[%s5615_s30 + $0x64] sm:$0xf] %vm625_vm11, %v2502_v48  ;;  %v2449_v1 = vsel %vm2448_vm13, %v3823_v37, %v2445_v6  ;;  %v1343_v37 = vmul.f32 %v5675_v14, %v6588_v62  ;;  %v6591_v14 = vld [vmem:[#allocation9_spill] sm:$0xff]  ;;  %v3432_v62 = vld [vmem:[%s5615_s30 + $0x88] sm:$0x1]  ;;  %v6602_v50 = vld [vmem:[#allocation34_spill] sm:$0xff] }
 0x3ff   : > { %v1344_v11 = vmul.f32 %v5747_v49, %v6591_v14  ;;  %v6604_v14 = vld [vmem:[#allocation32_spill] sm:$0xff] }
 0x400   : > { %3567 = vmatmul.msk.f32.gmra.mxu0 %vm317_vm4, %v3881_v39 }
 0x402   : > { %v2959_v15 = vpop.xlane.xlu0 %2958 }
 0x403   : > { %2109 = vperm.xlu0 %3651, %v2045_v30   ;;  %2984 = vmatpush.msrb.mxu2 %v2959_v15 }
 0x405   : > { %2985 = vmatpush.msrb.mxu2 %v5547_v16  ;;  %v2400_v16 = vadd.f32 %v3821_v57, %v2399_v38  ;;  %v6590_v38 = vld [vmem:[#allocation10_spill] sm:$0xff] }
 0x407   : > { %2986 = vmatpush.msrb.mxu2 %v5583_v27  ;;  %v2404_v47 = vsel %vm2403_vm8, %v3821_v57, %v2400_v16  ;;  %v1714_v16 = vpack.c.bf16 %v1707_v33, %v1707_v33  ;;  %v1712_v33 = vmul.f32 %v5825_v2, %v6602_v50  ;;  %v1711_v2 = vmul.f32 %v5823_v59, %v6604_v14 }
 0x408   : > { %3568 = vmatmul.msk.f32.gmra.mxu0 %vm317_vm4, %v3882_v13  ;;  %v2409_v41 = vsel %vm2406_vm9, %v2408_v54, %v2404_v47  ;;  %v3893_v47 = vld [vmem:[%s6343_s0 + $0xa0] sm:$0x1] }
 0x409   : > { %2987 = vmatpush.msrb.mxu2 %v5585_v42  ;;  %v3883_v42 = vld [vmem:[%s6343_s0 + $0x70] sm:$0xff]  ;;  %3466 = vst.msk [vmem:[%s5615_s30 + $0xac] sm:$0xf] %vm625_vm11, %v1714_v16  ;;  %v3471_v16 = vld [vmem:[%s5615_s30 + $0xc0] sm:$0x1] }
 0x40a   : > { %v2558_v7 = vpop.xlane.xlu0 %2557  ;;  %3605 = vmatmul.msk.f32.vlgmr.msrb.gmra.mxu2 %vm317_vm4, %v3880_v10  ;;  %v2452_v10 = vand.u32 2147483648, %v5934_v18  ;;  %v3886_v18 = vld [vmem:[%s6343_s0 + $0xc8] sm:$0xff] }
 0x40b   : > { %v2577_v27 = vmul.f32 %v2558_v7, %v4184_v21  ;;  %2119 = vperm.xlu0 %3651, %v2075_v40   ;;  %v3892_v40 = vld [vmem:[%s6343_s0 + $0x98] sm:$0xff]  ;;  %v1708_v7 = vmul.f32 %v5774_v45, %v6592_v22  ;;  %v6594_v45 = vld [vmem:[#allocation14_spill] sm:$0xff] }
 0x40c   : > { %v2453_v43 = vor.u32 1.1754944e-38, %v2452_v10 }
 0x40d   : > { %2664 = vmatpush.msrb.mxu1 %v2577_v27  ;;  %v6593_v27 = vld [vmem:[#allocation13_spill] sm:$0xff]  ;;  %v1715_v49 = vpack.c.bf16 %v1708_v7, %v1708_v7 }
 0x40e   : > { %3574 = vmatmul.msk.f32.vlgmr.msrb.gmra.mxu1 %vm317_vm4, %v3883_v42  ;;  %v2454_v20 = vsel %vm2451_vm14, %v2453_v43, %v2449_v1 }
 0x40f   : > { %3467 = vst.msk [vmem:[%s5615_s30 + $0xb0] sm:$0xf] %vm625_vm11, %v1715_v49  ;;  %v6607_v49 = vld [vmem:[#allocation22_spill] sm:$0xff] }
 0x410   : > { %3569 = vmatmul.msk.f32.gmra.mxu0 %vm317_vm4, %v3884_v36 }
 0x412   : > { %v2925_v17 = vpop.xlane.xlu0 %2924  ;;  %3606 = vmatmul.msk.f32.gmra.mxu2 %vm317_vm4, %v3881_v39 }
 0x413   : > { %v2942_v57 = vmul.f32 %v2925_v17, %v4184_v21  ;;  %2473 = vperm.xlu0 %3651, %v2409_v41   ;;  %v1346_v41 = vmul.f32 %v5693_v28, %v6594_v45 }
 0x415   : > { %3027 = vmatpush.msrb.mxu3 %v2942_v57  ;;  %v1353_v43 = vpack.c.bf16 %v1346_v41, %v1346_v41 }
 0x416   : > { %3575 = vmatmul.msk.f32.gmra.mxu1 %vm317_vm4, %v3885_v3 }
 0x417   : > { %3430 = vst.msk [vmem:[%s5615_s30 + $0x80] sm:$0xf] %vm625_vm11, %v1353_v43 }
 0x418   : > { %3570 = vmatmul.msk.f32.gmra.mxu0 %vm317_vm4, %v3886_v18 }
 0x41a   : > { %v2922_v48 = vpop.xlane.xlu0 %2921  ;;  %3607 = vmatmul.msk.f32.gmra.mxu2 %vm317_vm4, %v3882_v13  ;;  %v1350_v13 = vpack.c.bf16 %v1343_v37, %v1343_v37 }
 0x41b   : > { %v2941_v60 = vmul.f32 %v2922_v48, %v4184_v21  ;;  %2488 = vperm.xlu0 %3651, %v2454_v20   ;;  %v3889_v21 = vld [vmem:[%s6343_s0 + $0x88] sm:$0xff] }
 0x41c   : > { %3427 = vst.msk [vmem:[%s5615_s30 + $0x74] sm:$0xf] %vm625_vm11, %v1350_v13  ;;  %v1719_v13 = vpack.c.bf16 %v1712_v33, %v1712_v33 }
 0x41d   : > { %3028 = vmatpush.msrb.mxu3 %v2941_v60  ;;  %v6598_v60 = vld [vmem:[#allocation17_spill] sm:$0xff] }
 0x41e   : > { %3576 = vmatmul.msk.f32.gmra.mxu1 %vm317_vm4, %v3887_v23  ;;  %3613 = vmatmul.msk.f32.vlgmr.msrb.gmra.mxu3 %vm317_vm4, %v3883_v42  ;;  %v1351_v42 = vpack.c.bf16 %v1344_v11, %v1344_v11 }
 0x420   : > { %3571 = vmatmul.msk.f32.gmra.mxu0 %vm317_vm4, %v3888_v26  ;;  %3428 = vst.msk [vmem:[%s5615_s30 + $0x78] sm:$0xf] %vm625_vm11, %v1351_v42 }
 0x422   : > { %3608 = vmatmul.msk.f32.gmra.mxu2 %vm317_vm4, %v3884_v36  ;;  %v6595_v36 = vld [vmem:[#allocation30_spill] sm:$0xff] }
 0x423   : > { %v1710_v6 = vmul.f32 %v5800_v0, %v6595_v36  ;;  %v6608_v36 = vld [vmem:[#allocation27_spill] sm:$0xff] }
 0x425   : > { %v1717_v1 = vpack.c.bf16 %v1710_v6, %v1710_v6 }
 0x426   : > { %3577 = vmatmul.msk.f32.gmra.mxu1 %vm317_vm4, %v3889_v21  ;;  %3614 = vmatmul.msk.f32.gmra.mxu3 %vm317_vm4, %v3885_v3  ;;  %v6597_v3 = vld [vmem:[#allocation24_spill] sm:$0xff] }
 0x427   : > { %3469 = vst.msk [vmem:[%s5615_s30 + $0xb8] sm:$0xf] %vm625_vm11, %v1717_v1 }
 0x428   : > { %3572 = vmatmul.msk.f32.gmra.mxu0 %vm317_vm4, %v3890_v24 }
 0x42a   : > { %3609 = vmatmul.msk.f32.gmra.mxu2 %vm317_vm4, %v3886_v18  ;;  %v3393_v18 = vld [vmem:[%s5615_s30 + $0x50] sm:$0x1] }
 0x42d   : > { %v589_v30 = vpop.permute.xlu0 %588 }
 0x42e   : > { %v613_v39 = vmul.f32 %v589_v30, %v6587_v4  ;;  %3578 = vmatmul.msk.f32.gmra.mxu1 %vm317_vm4, %v3891_v56  ;;  %3615 = vmatmul.msk.f32.gmra.mxu3 %vm317_vm4, %v3887_v23  ;;  %v1348_v23 = vmul.f32 %v5720_v35, %v6598_v60  ;;  %v6600_v30 = vld [vmem:[#allocation4_spill] sm:$0xff]  ;;  %v6611_v60 = vld [vmem:[#allocation38_spill] sm:$0xff] }
 0x42f   : > { %v6601_v35 = vld [vmem:[#allocation28_spill] sm:$0xff] }
 0x430   : > { %v620_v9 = vpack.c.bf16 %v613_v39, %v613_v39 }
 0x432   : > { %628 = vst.msk [vmem:[%s5615_s30 + $0x8] sm:$0xf] %vm625_vm11, %v620_v9  ;;  %3610 = vmatmul.msk.f32.gmra.mxu2 %vm317_vm4, %v3888_v26  ;;  %v6599_v26 = vld [vmem:[#allocation20_spill] sm:$0xff] }
 0x435   : > { %v951_v15 = vpop.permute.xlu0 %950 }
 0x436   : > { %v979_v53 = vmul.f32 %v951_v15, %v6590_v38  ;;  %3579 = vmatmul.msk.f32.gmra.mxu1 %vm317_vm4, %v3892_v40  ;;  %3616 = vmatmul.msk.f32.gmra.mxu3 %vm317_vm4, %v3889_v21  ;;  %v1706_v21 = vmul.f32 %v5749_v44, %v6599_v26  ;;  %v1709_v44 = vmul.f32 %v5798_v12, %v6601_v35  ;;  %v6603_v38 = vld [vmem:[#allocation12_spill] sm:$0xff] }
 0x437   : > { %v1728_v12 = vsel %vm5657_vm15, %v1719_v13, %v3471_v16 }
 0x438   : > { %v986_v32 = vpack.c.bf16 %v979_v53, %v979_v53  ;;  %v1713_v9 = vpack.c.bf16 %v1706_v21, %v1706_v21  ;;  %3472 = vst [vmem:[%s5615_s30 + $0xc0] sm:$0x1] %v1728_v12 }
 0x43a   : > { %3388 = vst.msk [vmem:[%s5615_s30 + $0x3c] sm:$0xf] %vm625_vm11, %v986_v32  ;;  %3611 = vmatmul.msk.f32.gmra.mxu2 %vm317_vm4, %v3890_v24  ;;  %v1716_v32 = vpack.c.bf16 %v1709_v44, %v1709_v44 }
 0x43b   : > { %3465 = vst.msk [vmem:[%s5615_s30 + $0xa8] sm:$0xf] %vm625_vm11, %v1713_v9 }
 0x43c   : > { %3468 = vst.msk [vmem:[%s5615_s30 + $0xb4] sm:$0xf] %vm625_vm11, %v1716_v32 }
 0x43d   : > { %v956_v29 = vpop.permute.xlu0 %955 }
 0x43e   : > { %v980_v54 = vmul.f32 %v956_v29, %v6593_v27  ;;  %3580 = vmatmul.msk.f32.gmra.mxu1 %vm317_vm4, %v3893_v47  ;;  %3617 = vmatmul.msk.f32.gmra.mxu3 %vm317_vm4, %v3891_v56  ;;  %v1355_v56 = vpack.c.bf16 %v1348_v23, %v1348_v23  ;;  %v6605_v29 = vld [vmem:[#allocation15_spill] sm:$0xff]  ;;  %v1718_v27 = vpack.c.bf16 %v1711_v2, %v1711_v2 }
 0x440   : > { %v987_v63 = vpack.c.bf16 %v980_v54, %v980_v54  ;;  %v1364_v37 = vsel %vm5657_vm15, %v1355_v56, %v3432_v62  ;;  %v2464_v54 = vpop.permute.xlu2 %2463  ;;  %3470 = vst.msk [vmem:[%s5615_s30 + $0xbc] sm:$0xf] %vm625_vm11, %v1718_v27  ;;  %v6612_v56 = vld [vmem:[#allocation41_spill] sm:$0xff] }
 0x441   : > { %3433 = vst [vmem:[%s5615_s30 + $0x88] sm:$0x1] %v1364_v37  ;;  %v3555_v37 = vld [vmem:[%s5615_s30 + $0x6c] sm:$0x1] }
 0x442   : > { %3389 = vst.msk [vmem:[%s5615_s30 + $0x40] sm:$0xf] %vm625_vm11, %v987_v63 }
 0x445   : > { %v966_v10 = vpop.permute.xlu0 %965 }
 0x446   : > { %v982_v17 = vmul.f32 %v966_v10, %v6596_v31  ;;  %3618 = vmatmul.msk.f32.gmra.mxu3 %vm317_vm4, %v3892_v40 }
 0x448   : > { %v989_v57 = vpack.c.bf16 %v982_v17, %v982_v17  ;;  %v2484_v17 = vpop.permute.xlu2 %2483 }
 0x44a   : > { %3391 = vst.msk [vmem:[%s5615_s30 + $0x48] sm:$0xf] %vm625_vm11, %v989_v57  ;;  %v6609_v57 = vld [vmem:[#allocation40_spill] sm:$0xff] }
 0x44b   : > { %v2496_v43 = vmul.f32 %v2484_v17, %v6609_v57 }
 0x44d   : > { %v976_v28 = vpop.permute.xlu0 %975 }
 0x44e   : > { %v984_v20 = vmul.f32 %v976_v28, %v6597_v3  ;;  %3619 = vmatmul.msk.f32.gmra.mxu3 %vm317_vm4, %v3893_v47  ;;  %v6606_v47 = vld [vmem:[#allocation36_spill] sm:$0xff]  ;;  %v6610_v3 = vld [vmem:[#allocation31_spill] sm:$0xff] }
 0x44f   : > { %v2492_v63 = vmul.f32 %v2464_v54, %v6606_v47 }
 0x450   : > { %v991_v0 = vpack.c.bf16 %v984_v20, %v984_v20 }
 0x451   : > { %v2499_v59 = vpack.c.bf16 %v2492_v63, %v2492_v63 }
 0x452   : > { %v1000_v48 = vsel %vm5657_vm15, %v991_v0, %v3393_v18  ;;  %v2503_v18 = vpack.c.bf16 %v2496_v43, %v2496_v43 }
 0x453   : > { %3394 = vst [vmem:[%s5615_s30 + $0x50] sm:$0x1] %v1000_v48 }
 0x454   : > { %3550 = vst.msk [vmem:[%s5615_s30 + $0x58] sm:$0xf] %vm625_vm11, %v2499_v59 }
 0x455   : > { %v1310_v24 = vpop.permute.xlu0 %1309  ;;  %3554 = vst.msk [vmem:[%s5615_s30 + $0x68] sm:$0xf] %vm625_vm11, %v2503_v18 }
 0x456   : > { %v1342_v4 = vmul.f32 %v1310_v24, %v6600_v30 }
 0x458   : > { %v1349_v39 = vpack.c.bf16 %v1342_v4, %v1342_v4 }
 0x45a   : > { %3426 = vst.msk [vmem:[%s5615_s30 + $0x70] sm:$0xf] %vm625_vm11, %v1349_v39 }
 0x45d   : > { %v1325_v15 = vpop.permute.xlu0 %1324 }
 0x45e   : > { %v1345_v53 = vmul.f32 %v1325_v15, %v6603_v38 }
 0x460   : > { %v1352_v40 = vpack.c.bf16 %v1345_v53, %v1345_v53 }
 0x462   : > { %3429 = vst.msk [vmem:[%s5615_s30 + $0x7c] sm:$0xf] %vm625_vm11, %v1352_v40 }
 0x465   : > { %v1335_v11 = vpop.permute.xlu0 %1334 }
 0x466   : > { %v1347_v22 = vmul.f32 %v1335_v11, %v6605_v29 }
 0x468   : > { %v1354_v7 = vpack.c.bf16 %v1347_v22, %v1347_v22 }
 0x46a   : > { %3431 = vst.msk [vmem:[%s5615_s30 + $0x84] sm:$0xf] %vm625_vm11, %v1354_v7 }
 0x46d   : > { %v2100_v42 = vpop.permute.xlu0 %2099 }
 0x46e   : > { %v2128_v45 = vmul.f32 %v2100_v42, %v6607_v49 }
 0x470   : > { %v2135_v41 = vpack.c.bf16 %v2128_v45, %v2128_v45 }
 0x472   : > { %3511 = vst.msk [vmem:[%s5615_s30 + $0x20] sm:$0xf] %vm625_vm11, %v2135_v41 }
 0x475   : > { %v2110_v10 = vpop.permute.xlu0 %2109  ;;  %v2625_v28 = vpop.f32.mrf.mxu0 }
 0x476   : > { %v2130_v6 = vmul.f32 %v2110_v10, %v6608_v36 }
 0x478   : > { %v2137_v31 = vpack.c.bf16 %v2130_v6, %v2130_v6 }
 0x47a   : > { %3513 = vst.msk [vmem:[%s5615_s30 + $0x28] sm:$0xf] %vm625_vm11, %v2137_v31 }
 0x47d   : > { %v2120_v1 = vpop.permute.xlu0 %2119  ;;  %v2628_v26 = vpop.f32.mrf.mxu0 }
 0x47e   : > { %v2132_v20 = vmul.f32 %v2120_v1, %v6610_v3 }
 0x480   : > { %v2139_v0 = vpack.c.bf16 %v2132_v20, %v2132_v20 }
 0x482   : > { %3515 = vst.msk [vmem:[%s5615_s30 + $0x30] sm:$0xf] %vm625_vm11, %v2139_v0 }
 0x485   : > { %v2474_v48 = vpop.permute.xlu0 %2473  ;;  %v2631_v35 = vpop.f32.mrf.mxu0 }
 0x486   : > { %v2494_v23 = vmul.f32 %v2474_v48, %v6611_v60 }
 0x488   : > { %v2501_v21 = vpack.c.bf16 %v2494_v23, %v2494_v23 }
 0x48a   : > { %3552 = vst.msk [vmem:[%s5615_s30 + $0x60] sm:$0xf] %vm625_vm11, %v2501_v21 }
 0x48b   : > { %v2666_v24 = vpop.f32.mrf.mxu1 }
 0x48c   : > { %v2667_v30 = vadd.f32 %v2666_v24, %v2625_v28 }
 0x48d   : > { %v2489_v4 = vpop.permute.xlu0 %2488  ;;  %v2989_v50 = vpop.f32.mrf.mxu2 }
 0x48e   : > { %v3581_v39 = vmul.f32 -1.442695, %v2667_v30  ;;  %v2497_v9 = vmul.f32 %v2489_v4, %v6612_v56  ;;  %v2634_v13 = vpop.f32.mrf.mxu0 }
 0x490   : > { %3824 = vpow2.f32 %v3581_v39  ;;  %v2504_v62 = vpack.c.bf16 %v2497_v9, %v2497_v9 }
 0x492   : > { %v2513_v44 = vsel %vm5657_vm15, %v2504_v62, %v3555_v37 }
 0x493   : > { %3556 = vst [vmem:[%s5615_s30 + $0x6c] sm:$0x1] %v2513_v44  ;;  %v2669_v15 = vpop.f32.mrf.mxu1 }
 0x494   : > { %v2670_v33 = vadd.f32 %v2669_v15, %v2628_v26 }
 0x495   : > { %v2992_v12 = vpop.f32.mrf.mxu2 }
 0x496   : > { %v3825_v38 = vpop.eup %3824  ;;  %v3582_v53 = vmul.f32 -1.442695, %v2670_v33  ;;  %v2637_v59 = vpop.f32.mrf.mxu0 }
 0x497   : > { %v2708_v40 = vadd.f32 1.0, %v3825_v38 }
 0x498   : > { %3826 = vpow2.f32 %v3582_v53 }
 0x499   : > { %3828 = vrcp.f32 %v2708_v40  ;;  %vm2720_vm4 = vweird.f32 %v2708_v40  ;;  %v2724_v63 = vand.u32 2147483647, %v2708_v40  ;;  %v2726_v42 = vand.u32 2147483648, %v2708_v40 }
 0x49b   : > { %v2672_v32 = vpop.f32.mrf.mxu1  ;;  %v2727_v57 = vor.u32 1.1754944e-38, %v2726_v42  ;;  %vm2725_vm2 = vcmp.eq.f32.partialorder %v2724_v63, 8.507059e+37 }
 0x49c   : > { %v2673_v16 = vadd.f32 %v2672_v32, %v2631_v35 }
 0x49d   : > { %v2995_v43 = vpop.f32.mrf.mxu2 }
 0x49e   : > { %v3827_v14 = vpop.eup %3826  ;;  %v3583_v2 = vmul.f32 -1.442695, %v2673_v16  ;;  %v2640_v44 = vpop.f32.mrf.mxu0 }
 0x49f   : > { %v3829_v11 = vpop.eup %3828  ;;  %v2709_v29 = vadd.f32 1.0, %v3827_v14 }
 0x4a0   : > { %3830 = vpow2.f32 %v3583_v2  ;;  %v2716_v22 = vmul.f32 %v3829_v11, %v2708_v40  ;;  %vm2721_vm0 = vweird.f32 %v3829_v11 }
 0x4a1   : > { %3832 = vrcp.f32 %v2709_v29  ;;  %v3030_v7 = vpop.f32.mrf.mxu3  ;;  %vm2722_vm1 = vmor %vm2720_vm4, %vm2721_vm0  ;;  %vm2735_vm3 = vweird.f32 %v2709_v29  ;;  %v2739_v60 = vand.u32 2147483647, %v2709_v29  ;;  %v2741_v23 = vand.u32 2147483648, %v2709_v29 }
 0x4a2   : > { %v3031_v27 = vadd.f32 %v3030_v7, %v2989_v50  ;;  %v2717_v54 = vsub.f32 1.0, %v2716_v22 }
 0x4a3   : > { %v2675_v47 = vpop.f32.mrf.mxu1  ;;  %v2742_v35 = vor.u32 1.1754944e-38, %v2741_v23  ;;  %vm2740_vm7 = vcmp.eq.f32.partialorder %v2739_v60, 8.507059e+37 }
 0x4a4   : > { %v3620_v49 = vmul.f32 -1.442695, %v3031_v27  ;;  %v2676_v45 = vadd.f32 %v2675_v47, %v2634_v13  ;;  %v2718_v41 = vmul.f32 %v3829_v11, %v2717_v54 }
 0x4a5   : > { %v2998_v53 = vpop.f32.mrf.mxu2 }
 0x4a6   : > { %v3831_v10 = vpop.eup %3830  ;;  %3834 = vpow2.f32 %v3620_v49  ;;  %v3584_v36 = vmul.f32 -1.442695, %v2676_v45  ;;  %v2719_v6 = vadd.f32 %v3829_v11, %v2718_v41 }
 0x4a7   : > { %v3833_v31 = vpop.eup %3832  ;;  %v6133_v17 = vadd.f32 1.0, %v3831_v10 }
 0x4a8   : > { %3836 = vpow2.f32 %v3584_v36  ;;  %v2723_v1 = vsel %vm2722_vm1, %v3829_v11, %v2719_v6  ;;  %v2731_v28 = vmul.f32 %v3833_v31, %v2709_v29  ;;  %vm2736_vm5 = vweird.f32 %v3833_v31  ;;  %v2643_v36 = vpop.f32.mrf.mxu0 }
 0x4a9   : > { %3838 = vrcp.f32 %v6133_v17  ;;  %v3033_v3 = vpop.f32.mrf.mxu3  ;;  %v2728_v20 = vsel %vm2725_vm2, %v2727_v57, %v2723_v1  ;;  %vm2737_vm6 = vmor %vm2735_vm3, %vm2736_vm5  ;;  %vm2750_vm8 = vweird.f32 %v6133_v17  ;;  %v2754_v16 = vand.u32 2147483647, %v6133_v17 }
 0x4aa   : > { %v3034_v0 = vadd.f32 %v3033_v3, %v2992_v12  ;;  %2822 = vperm.xlu1 %3652, %v2728_v20   ;;  %v2732_v18 = vsub.f32 1.0, %v2731_v28  ;;  %v2756_v12 = vand.u32 2147483648, %v6133_v17 }
 0x4ab   : > { %v2678_v48 = vpop.f32.mrf.mxu1  ;;  %vm2755_vm12 = vcmp.eq.f32.partialorder %v2754_v16, 8.507059e+37 }
 0x4ac   : > { %v3835_v26 = vpop.eup %3834  ;;  %v3621_v21 = vmul.f32 -1.442695, %v3034_v0  ;;  %v2679_v24 = vadd.f32 %v2678_v48, %v2637_v59  ;;  %v2733_v30 = vmul.f32 %v3833_v31, %v2732_v18  ;;  %v2757_v42 = vor.u32 1.1754944e-38, %v2756_v12 }
 0x4ad   : > { %v6136_v62 = vadd.f32 1.0, %v3835_v26  ;;  %v3001_v57 = vpop.f32.mrf.mxu2 }
 0x4ae   : > { %v3837_v4 = vpop.eup %3836  ;;  %3840 = vpow2.f32 %v3621_v21  ;;  %v3585_v39 = vmul.f32 -1.442695, %v2679_v24  ;;  %v2734_v56 = vadd.f32 %v3833_v31, %v2733_v30 }
 0x4af   : > { %v3839_v9 = vpop.eup %3838  ;;  %v6138_v37 = vadd.f32 1.0, %v3837_v4 }
 0x4b0   : > { %3842 = vpow2.f32 %v3585_v39  ;;  %v2738_v15 = vsel %vm2737_vm6, %v3833_v31, %v2734_v56  ;;  %v2746_v50 = vmul.f32 %v3839_v9, %v6133_v17  ;;  %vm2751_vm9 = vweird.f32 %v3839_v9 }
 0x4b1   : > { %3844 = vrcp.f32 %v6138_v37  ;;  %v3036_v33 = vpop.f32.mrf.mxu3  ;;  %v2743_v38 = vsel %vm2740_vm7, %v2742_v35, %v2738_v15  ;;  %vm2752_vm10 = vmor %vm2750_vm8, %vm2751_vm9  ;;  %vm2765_vm13 = vweird.f32 %v6138_v37  ;;  %v2771_v1 = vand.u32 2147483648, %v6138_v37 }
 0x4b2   : > { %v3037_v40 = vadd.f32 %v3036_v33, %v2995_v43  ;;  %2827 = vperm.xlu0 %3651, %v2743_v38   ;;  %v2747_v32 = vsub.f32 1.0, %v2746_v50  ;;  %3846 = vrcp.f32 %v6136_v62  ;;  %v2769_v43 = vand.u32 2147483647, %v6138_v37 }
 0x4b3   : > { %v2681_v13 = vpop.f32.mrf.mxu1  ;;  %v2772_v24 = vor.u32 1.1754944e-38, %v2771_v1  ;;  %vm3084_vm7 = vweird.f32 %v6136_v62 }
 0x4b4   : > { %v3841_v14 = vpop.eup %3840  ;;  %v3622_v2 = vmul.f32 -1.442695, %v3037_v40  ;;  %v2682_v11 = vadd.f32 %v2681_v13, %v2640_v44  ;;  %v2748_v29 = vmul.f32 %v3839_v9, %v2747_v32  ;;  %vm2770_vm0 = vcmp.eq.f32.partialorder %v2769_v43, 8.507059e+37 }
 0x4b5   : > { %v6147_v47 = vadd.f32 1.0, %v3841_v14  ;;  %v3004_v13 = vpop.f32.mrf.mxu2 }
 0x4b6   : > { %v3843_v22 = vpop.eup %3842  ;;  %v3586_v7 = vmul.f32 -1.442695, %v2682_v11  ;;  %v2749_v27 = vadd.f32 %v3839_v9, %v2748_v29  ;;  %3848 = vpow2.f32 %v3622_v2  ;;  %v3088_v11 = vand.u32 2147483647, %v6136_v62 }
 0x4b7   : > { %v3845_v54 = vpop.eup %3844  ;;  %v6149_v63 = vadd.f32 1.0, %v3843_v22  ;;  %v3103_v43 = vand.u32 2147483647, %v6147_v47 }
 0x4b8   : > { %3850 = vpow2.f32 %v3586_v7  ;;  %v2753_v49 = vsel %vm2752_vm10, %v3839_v9, %v2749_v27  ;;  %v2761_v45 = vmul.f32 %v3845_v54, %v6138_v37  ;;  %v6154_v41 = vpop.eup %3846  ;;  %vm2766_vm14 = vweird.f32 %v3845_v54 }
 0x4b9   : > { %3852 = vrcp.f32 %v6149_v63  ;;  %v3039_v59 = vpop.f32.mrf.mxu3  ;;  %v2758_v10 = vsel %vm2755_vm12, %v2757_v42, %v2753_v49  ;;  %v3080_v18 = vmul.f32 %v6154_v41, %v6136_v62  ;;  %vm2767_vm4 = vmor %vm2765_vm13, %vm2766_vm14  ;;  %vm2780_vm1 = vweird.f32 %v6149_v63 }
 0x4ba   : > { %v3040_v6 = vadd.f32 %v3039_v59, %v2998_v53  ;;  %2832 = vperm.xlu2 %3653, %v2758_v10   ;;  %v2762_v31 = vsub.f32 1.0, %v2761_v45  ;;  %3854 = vrcp.f32 %v6147_v47  ;;  %v2786_v37 = vand.u32 2147483648, %v6149_v63 }
 0x4bb   : > { %v2684_v17 = vpop.f32.mrf.mxu1  ;;  %v3081_v44 = vsub.f32 1.0, %v3080_v18  ;;  %v2784_v40 = vand.u32 2147483647, %v6149_v63  ;;  %v3090_v27 = vand.u32 2147483648, %v6136_v62  ;;  %vm3085_vm6 = vweird.f32 %v6154_v41 }
 0x4bc   : > { %v3623_v28 = vmul.f32 -1.442695, %v3040_v6  ;;  %v2685_v3 = vadd.f32 %v2684_v17, %v2643_v36  ;;  %v2763_v20 = vmul.f32 %v3845_v54, %v2762_v31  ;;  %v3849_v0 = vpop.eup %3848  ;;  %v2787_v7 = vor.u32 1.1754944e-38, %v2786_v37  ;;  %vm6206_vm12 = vmor %vm3084_vm7, %vm3085_vm6 }
 0x4bd   : > { %v6170_v56 = vadd.f32 1.0, %v3849_v0  ;;  %v3082_v16 = vmul.f32 %v6154_v41, %v3081_v44  ;;  %vm2785_vm5 = vcmp.eq.f32.partialorder %v2784_v40, 8.507059e+37  ;;  %vm6194_vm8 = vcmp.eq.f32.partialorder %v3088_v11, 8.507059e+37 }
 0x4be   : > { %v3851_v48 = vpop.eup %3850  ;;  %3856 = vpow2.f32 %v3623_v28  ;;  %v3587_v60 = vmul.f32 -1.442695, %v2685_v3  ;;  %v2764_v23 = vadd.f32 %v3845_v54, %v2763_v20  ;;  %vm3099_vm13 = vweird.f32 %v6147_v47 }
 0x4bf   : > { %v3853_v26 = vpop.eup %3852  ;;  %v6163_v21 = vadd.f32 1.0, %v3851_v48  ;;  %v3083_v59 = vadd.f32 %v6154_v41, %v3082_v16  ;;  %v3120_v62 = vand.u32 2147483648, %v6170_v56 }
 0x4c0   : > { %3858 = vpow2.f32 %v3587_v60  ;;  %v2768_v30 = vsel %vm2767_vm4, %v3845_v54, %v2764_v23  ;;  %v2776_v4 = vmul.f32 %v3853_v26, %v6149_v63  ;;  %v6168_v39 = vpop.eup %3854  ;;  %vm2781_vm2 = vweird.f32 %v3853_v26 }
 0x4c1   : > { %3860 = vrcp.f32 %v6163_v21  ;;  %v3042_v9 = vpop.f32.mrf.mxu3  ;;  %v2773_v35 = vsel %vm2770_vm0, %v2772_v24, %v2768_v30  ;;  %v3095_v12 = vmul.f32 %v6168_v39, %v6147_v47  ;;  %vm2782_vm3 = vmor %vm2780_vm1, %vm2781_vm2  ;;  %vm2795_vm9 = vweird.f32 %v6163_v21 }
 0x4c2   : > { %v3043_v15 = vadd.f32 %v3042_v9, %v3001_v57  ;;  %2837 = vperm.xlu1 %3652, %v2773_v35   ;;  %v2777_v50 = vsub.f32 1.0, %v2776_v4  ;;  %3862 = vrcp.f32 %v6170_v56  ;;  %v2801_v17 = vand.u32 2147483648, %v6163_v21  ;;  %v3007_v4 = vpop.f32.mrf.mxu2 }
 0x4c3   : > { %v3096_v10 = vsub.f32 1.0, %v3095_v12  ;;  %v3091_v57 = vor.u32 1.1754944e-38, %v3090_v27  ;;  %v2799_v20 = vand.u32 2147483647, %v6163_v21  ;;  %v3087_v48 = vsel %vm6206_vm12, %v6154_v41, %v3083_v59 }
 0x4c4   : > { %v3857_v33 = vpop.eup %3856  ;;  %v3624_v38 = vmul.f32 -1.442695, %v3043_v15  ;;  %v2778_v53 = vmul.f32 %v3853_v26, %v2777_v50  ;;  %v2802_v41 = vor.u32 1.1754944e-38, %v2801_v17  ;;  %vm3100_vm4 = vweird.f32 %v6168_v39 }
 0x4c5   : > { %v6177_v32 = vadd.f32 1.0, %v3857_v33  ;;  %v3097_v60 = vmul.f32 %v6168_v39, %v3096_v10  ;;  %v3105_v9 = vand.u32 2147483648, %v6147_v47  ;;  %vm2800_vm0 = vcmp.eq.f32.partialorder %v2799_v20, 8.507059e+37  ;;  %vm6247_vm6 = vmor %vm3099_vm13, %vm3100_vm4 }
 0x4c6   : > { %v3859_v14 = vpop.eup %3858  ;;  %3864 = vpow2.f32 %v3624_v38  ;;  %v2779_v2 = vadd.f32 %v3853_v26, %v2778_v53  ;;  %vm6230_vm1 = vcmp.eq.f32.partialorder %v3103_v43, 8.507059e+37  ;;  %vm3114_vm4 = vweird.f32 %v6170_v56 }
 0x4c7   : > { %v3861_v29 = vpop.eup %3860  ;;  %3866 = vrcp.f32 %v6177_v32  ;;  %v6184_v22 = vadd.f32 1.0, %v3859_v14  ;;  %v3098_v38 = vadd.f32 %v6168_v39, %v3097_v60  ;;  %vm3129_vm7 = vweird.f32 %v6177_v32 }
 0x4c8   : > { %v2783_v54 = vsel %vm2782_vm3, %v3853_v26, %v2779_v2  ;;  %v2791_v42 = vmul.f32 %v3861_v29, %v6163_v21  ;;  %v6198_v31 = vpop.eup %3862  ;;  %vm2796_vm10 = vweird.f32 %v3861_v29  ;;  %v3092_v21 = vsel %vm6194_vm8, %v3091_v57, %v3087_v48 }
 0x4c9   : > { %3868 = vrcp.f32 %v6184_v22  ;;  %v3045_v49 = vpop.f32.mrf.mxu3  ;;  %v2788_v45 = vsel %vm2785_vm5, %v2787_v7, %v2783_v54  ;;  %v3110_v24 = vmul.f32 %v6198_v31, %v6170_v56  ;;  %vm2797_vm14 = vmor %vm2795_vm9, %vm2796_vm10  ;;  %vm2810_vm2 = vweird.f32 %v6184_v22 }
 0x4ca   : > { %v3046_v36 = vadd.f32 %v3045_v49, %v3004_v13  ;;  %2842 = vperm.xlu0 %3651, %v2788_v45   ;;  %v2792_v63 = vsub.f32 1.0, %v2791_v42  ;;  %v2814_v12 = vand.u32 2147483647, %v6184_v22  ;;  %v2816_v14 = vand.u32 2147483648, %v6184_v22 }
 0x4cb   : > { %v3111_v16 = vsub.f32 1.0, %v3110_v24  ;;  %v3135_v2 = vand.u32 2147483648, %v6177_v32  ;;  %v3102_v45 = vsel %vm6247_vm6, %v6168_v39, %v3098_v38  ;;  %v3133_v59 = vand.u32 2147483647, %v6177_v32 }
 0x4cc   : > { %v3865_v1 = vpop.eup %3864  ;;  %v3625_v28 = vmul.f32 -1.442695, %v3046_v36  ;;  %v2793_v3 = vmul.f32 %v3861_v29, %v2792_v63  ;;  %v2817_v39 = vor.u32 1.1754944e-38, %v2816_v14  ;;  %v3106_v6 = vor.u32 1.1754944e-38, %v3105_v9 }
 0x4cd   : > { %v6210_v0 = vpop.eup %3866  ;;  %v6212_v18 = vadd.f32 1.0, %v3865_v1  ;;  %v3112_v36 = vmul.f32 %v6198_v31, %v3111_v16  ;;  %vm2815_vm10 = vcmp.eq.f32.partialorder %v2814_v12, 8.507059e+37  ;;  %v3136_v57 = vor.u32 1.1754944e-38, %v3135_v2 }
 0x4ce   : > { %3870 = vpow2.f32 %v3625_v28  ;;  %v2794_v23 = vadd.f32 %v3861_v29, %v2793_v3  ;;  %v3125_v26 = vmul.f32 %v6210_v0, %v6177_v32  ;;  %vm3130_vm3 = vweird.f32 %v6210_v0 }
 0x4cf   : > { %v3869_v30 = vpop.eup %3868  ;;  %3872 = vrcp.f32 %v6212_v18  ;;  %vm6261_vm8 = vmor %vm3129_vm7, %vm3130_vm3  ;;  %v3107_v28 = vsel %vm6230_vm1, %v3106_v6, %v3102_v45  ;;  %vm3134_vm12 = vcmp.eq.f32.partialorder %v3133_v59, 8.507059e+37  ;;  %vm3115_vm13 = vweird.f32 %v6198_v31 }
 0x4d0   : > { %v2798_v35 = vsel %vm2797_vm14, %v3861_v29, %v2794_v23  ;;  %v2806_v44 = vmul.f32 %v3869_v30, %v6184_v22  ;;  %v3126_v50 = vsub.f32 1.0, %v3125_v26  ;;  %vm2811_vm5 = vweird.f32 %v3869_v30 }
 0x4d1   : > { %v3048_v37 = vpop.f32.mrf.mxu3  ;;  %v2803_v33 = vsel %vm2800_vm0, %v2802_v41, %v2798_v35  ;;  %vm2812_vm9 = vmor %vm2810_vm2, %vm2811_vm5  ;;  %v3113_v3 = vadd.f32 %v6198_v31, %v3112_v36  ;;  %v3118_v23 = vand.u32 2147483647, %v6170_v56  ;;  %vm3144_vm1 = vweird.f32 %v6212_v18 }
 0x4d2   : > { %v3049_v53 = vadd.f32 %v3048_v37, %v3007_v4  ;;  %2847 = vperm.xlu2 %3653, %v2803_v33   ;;  %3186 = vperm.xlu0 %3651, %v3092_v21   ;;  %v2807_v40 = vsub.f32 1.0, %v2806_v44  ;;  %v3127_v13 = vmul.f32 %v6210_v0, %v3126_v50  ;;  %vm6280_vm0 = vmor %vm3114_vm4, %vm3115_vm13  ;;  %v3148_v24 = vand.u32 2147483647, %v6212_v18 }
 0x4d3   : > { %v3117_v41 = vsel %vm6280_vm0, %v6198_v31, %v3113_v3  ;;  %v3121_v44 = vor.u32 1.1754944e-38, %v3120_v62  ;;  %vm3119_vm3 = vcmp.eq.f32.partialorder %v3118_v23, 8.507059e+37  ;;  %v6626_v62 = vld [vmem:[#allocation50_spill] sm:$0xff] }
 0x4d4   : > { %v3871_v11 = vpop.eup %3870  ;;  %v3626_v29 = vmul.f32 -1.442695, %v3049_v53  ;;  %v2808_v7 = vmul.f32 %v3869_v30, %v2807_v40  ;;  %v3128_v54 = vadd.f32 %v6210_v0, %v3127_v13  ;;  %vm3149_vm5 = vcmp.eq.f32.partialorder %v3148_v24, 8.507059e+37  ;;  %v6627_v24 = vld [vmem:[#allocation53_spill] sm:$0xff] }
 0x4d5   : > { %v3873_v42 = vpop.eup %3872  ;;  %v6252_v49 = vadd.f32 1.0, %v3871_v11  ;;  %v3122_v50 = vsel %vm3119_vm3, %v3121_v44, %v3117_v41 }
 0x4d6   : > { %3874 = vpow2.f32 %v3626_v29  ;;  %v2809_v10 = vadd.f32 %v3869_v30, %v2808_v7  ;;  %v3140_v63 = vmul.f32 %v3873_v42, %v6212_v18  ;;  %v3132_v32 = vsel %vm6261_vm8, %v6210_v0, %v3128_v54 }
 0x4d7   : > { %3876 = vrcp.f32 %v6252_v49  ;;  %v3137_v22 = vsel %vm3134_vm12, %v3136_v57, %v3132_v32  ;;  %vm3145_vm14 = vweird.f32 %v3873_v42  ;;  %v3150_v0 = vand.u32 2147483648, %v6212_v18  ;;  %v6625_v32 = vld [vmem:[#allocation51_spill] sm:$0xff] }
 0x4d8   : > { %v2813_v17 = vsel %vm2812_vm9, %v3869_v30, %v2809_v10  ;;  %v3141_v43 = vsub.f32 1.0, %v3140_v63  ;;  %vm3146_vm2 = vmor %vm3144_vm1, %vm3145_vm14  ;;  %v3165_v33 = vand.u32 2147483648, %v6252_v49  ;;  %vm3159_vm7 = vweird.f32 %v6252_v49 }
 0x4d9   : > { %v2818_v1 = vsel %vm2815_vm10, %v2817_v39, %v2813_v17  ;;  %v3151_v15 = vor.u32 1.1754944e-38, %v3150_v0  ;;  %v3163_v31 = vand.u32 2147483647, %v6252_v49 }
 0x4da   : > { %2852 = vperm.xlu1 %3652, %v2818_v1   ;;  %3191 = vperm.xlu2 %3653, %v3107_v28   ;;  %v3142_v20 = vmul.f32 %v3873_v42, %v3141_v43  ;;  %v3166_v13 = vor.u32 1.1754944e-38, %v3165_v33  ;;  %v6628_v33 = vld [vmem:[#allocation55_spill] sm:$0xff] }
 0x4db   : > { %3201 = vperm.xlu0 %3651, %v3137_v22   ;;  %vm3164_vm9 = vcmp.eq.f32.partialorder %v3163_v31, 8.507059e+37 }
 0x4dc   : > { %v3875_v48 = vpop.eup %3874  ;;  %v3143_v26 = vadd.f32 %v3873_v42, %v3142_v20 }
 0x4dd   : > { %v3877_v30 = vpop.eup %3876  ;;  %v3078_v4 = vadd.f32 1.0, %v3875_v48 }
 0x4de   : > { %v3147_v9 = vsel %vm3146_vm2, %v3873_v42, %v3143_v26  ;;  %v3155_v35 = vmul.f32 %v3877_v30, %v6252_v49  ;;  %vm3160_vm6 = vweird.f32 %v3877_v30 }
 0x4df   : > { %3878 = vrcp.f32 %v3078_v4  ;;  %v3152_v37 = vsel %vm3149_vm5, %v3151_v15, %v3147_v9  ;;  %vm3161_vm8 = vmor %vm3159_vm7, %vm3160_vm6  ;;  %v3180_v14 = vand.u32 2147483648, %v3078_v4  ;;  %v3178_v11 = vand.u32 2147483647, %v3078_v4  ;;  %v3594_v9 = vld [vmem:[%s5615_s30 + $0xa4] sm:$0x1] }
 0x4e0   : > { %v3156_v56 = vsub.f32 1.0, %v3155_v35  ;;  %vm3174_vm12 = vweird.f32 %v3078_v4 }
 0x4e1   : > { %v3181_v7 = vor.u32 1.1754944e-38, %v3180_v14  ;;  %vm3179_vm14 = vcmp.eq.f32.partialorder %v3178_v11, 8.507059e+37 }
 0x4e2   : > { %3196 = vperm.xlu1 %3652, %v3122_v50   ;;  %3206 = vperm.xlu2 %3653, %v3152_v37   ;;  %v3157_v18 = vmul.f32 %v3877_v30, %v3156_v56 }
 0x4e4   : > { %v3158_v21 = vadd.f32 %v3877_v30, %v3157_v18 }
 0x4e5   : > { %v3879_v38 = vpop.eup %3878 }
 0x4e6   : > { %v3162_v53 = vsel %vm3161_vm8, %v3877_v30, %v3158_v21  ;;  %v3170_v40 = vmul.f32 %v3879_v38, %v3078_v4  ;;  %vm3175_vm10 = vweird.f32 %v3879_v38 }
 0x4e7   : > { %v3167_v12 = vsel %vm3164_vm9, %v3166_v13, %v3162_v53  ;;  %vm3176_vm13 = vmor %vm3174_vm12, %vm3175_vm10 }
 0x4e8   : > { %v3171_v16 = vsub.f32 1.0, %v3170_v40 }
 0x4ea   : > { %3211 = vperm.xlu1 %3652, %v3167_v12   ;;  %v3172_v2 = vmul.f32 %v3879_v38, %v3171_v16 }
 0x4ec   : > { %v3173_v29 = vadd.f32 %v3879_v38, %v3172_v2 }
 0x4ee   : > { %v3177_v27 = vsel %vm3176_vm13, %v3879_v38, %v3173_v29  ;;  %v3633_v38 = vld [vmem:[%s5615_s30 + $0xdc] sm:$0x1] }
 0x4ef   : > { %v3182_v54 = vsel %vm3179_vm14, %v3181_v7, %v3177_v27 }
 0x4f0   : > { %3216 = vperm.xlu0 %3651, %v3182_v54  }
 0x514   : > { %v2833_v42 = vpop.permute.xlu2 %2832 }
 0x515   : > { %v2857_v49 = vmul.f32 %v2833_v42, %v4660_v55 }
 0x517   : > { %v2864_v45 = vpack.c.bf16 %v2857_v49, %v2857_v49 }
 0x519   : > { %3590 = vst.msk [vmem:[%s5615_s30 + $0x94] sm:$0xf] %vm625_vm11, %v2864_v45 }
 0x51c   : > { %v2823_v59 = vpop.permute.xlu1 %2822 }
 0x51d   : > { %v2855_v10 = vmul.f32 %v2823_v59, %v6542_v34 }
 0x51f   : > { %v2862_v47 = vpack.c.bf16 %v2855_v10, %v2855_v10 }
 0x521   : > { %3588 = vst.msk [vmem:[%s5615_s30 + $0x8c] sm:$0xf] %vm625_vm11, %v2862_v47 }
 0x524   : > { %v2828_v36 = vpop.permute.xlu0 %2827 }
 0x525   : > { %v2856_v63 = vmul.f32 %v2828_v36, %v4656_v25 }
 0x527   : > { %v2863_v39 = vpack.c.bf16 %v2856_v63, %v2856_v63 }
 0x529   : > { %3589 = vst.msk [vmem:[%s5615_s30 + $0x90] sm:$0xf] %vm625_vm11, %v2863_v39 }
 0x52c   : > { %v2848_v6 = vpop.permute.xlu2 %2847 }
 0x52d   : > { %v2860_v55 = vmul.f32 %v2848_v6, %v6625_v32 }
 0x52f   : > { %v2867_v17 = vpack.c.bf16 %v2860_v55, %v2860_v55 }
 0x531   : > { %3593 = vst.msk [vmem:[%s5615_s30 + $0xa0] sm:$0xf] %vm625_vm11, %v2867_v17 }
 0x534   : > { %v2838_v34 = vpop.permute.xlu1 %2837  ;;  %v3192_v57 = vpop.permute.xlu2 %3191 }
 0x535   : > { %v2858_v43 = vmul.f32 %v2838_v34, %v4668_v19  ;;  %v3220_v1 = vmul.f32 %v3192_v57, %v6547_v5 }
 0x537   : > { %v2865_v28 = vpack.c.bf16 %v2858_v43, %v2858_v43  ;;  %v3227_v25 = vpack.c.bf16 %v3220_v1, %v3220_v1 }
 0x539   : > { %3591 = vst.msk [vmem:[%s5615_s30 + $0x98] sm:$0xf] %vm625_vm11, %v2865_v28 }
 0x53a   : > { %3628 = vst.msk [vmem:[%s5615_s30 + $0xc8] sm:$0xf] %vm625_vm11, %v3227_v25 }
 0x53c   : > { %v3207_v22 = vpop.permute.xlu2 %3206  ;;  %v2843_v3 = vpop.permute.xlu0 %2842 }
 0x53d   : > { %v3223_v20 = vmul.f32 %v3207_v22, %v4715_v8  ;;  %v2859_v0 = vmul.f32 %v2843_v3, %v6626_v62 }
 0x53f   : > { %v3230_v48 = vpack.c.bf16 %v3223_v20, %v3223_v20  ;;  %v2866_v60 = vpack.c.bf16 %v2859_v0, %v2859_v0 }
 0x541   : > { %3592 = vst.msk [vmem:[%s5615_s30 + $0x9c] sm:$0xf] %vm625_vm11, %v2866_v60 }
 0x542   : > { %3631 = vst.msk [vmem:[%s5615_s30 + $0xd4] sm:$0xf] %vm625_vm11, %v3230_v48 }
 0x544   : > { %v3187_v19 = vpop.permute.xlu0 %3186 }
 0x545   : > { %v3219_v5 = vmul.f32 %v3187_v19, %v6553_v58 }
 0x547   : > { %v3226_v23 = vpack.c.bf16 %v3219_v5, %v3219_v5 }
 0x549   : > { %3627 = vst.msk [vmem:[%s5615_s30 + $0xc4] sm:$0xf] %vm625_vm11, %v3226_v23 }
 0x54c   : > { %v2853_v26 = vpop.permute.xlu1 %2852 }
 0x54d   : > { %v2861_v8 = vmul.f32 %v2853_v26, %v6627_v24  ;;  %v3202_v30 = vpop.permute.xlu0 %3201 }
 0x54e   : > { %v3222_v4 = vmul.f32 %v3202_v30, %v4680_v51 }
 0x54f   : > { %v2868_v41 = vpack.c.bf16 %v2861_v8, %v2861_v8 }
 0x550   : > { %v3229_v35 = vpack.c.bf16 %v3222_v4, %v3222_v4 }
 0x551   : > { %v2877_v44 = vsel %vm5657_vm15, %v2868_v41, %v3594_v9 }
 0x552   : > { %3595 = vst [vmem:[%s5615_s30 + $0xa4] sm:$0x1] %v2877_v44 }
 0x553   : > { %3630 = vst.msk [vmem:[%s5615_s30 + $0xd0] sm:$0xf] %vm625_vm11, %v3229_v35 }
 0x554   : > { %v3197_v58 = vpop.permute.xlu1 %3196 }
 0x555   : > { %v3221_v15 = vmul.f32 %v3197_v58, %v4670_v52 }
 0x557   : > { %v3228_v56 = vpack.c.bf16 %v3221_v15, %v3221_v15 }
 0x559   : > { %3629 = vst.msk [vmem:[%s5615_s30 + $0xcc] sm:$0xf] %vm625_vm11, %v3228_v56 }
 0x55c   : > { %v3212_v50 = vpop.permute.xlu1 %3211 }
 0x55d   : > { %v3224_v51 = vmul.f32 %v3212_v50, %v4756_v46 }
 0x55f   : > { %v3231_v37 = vpack.c.bf16 %v3224_v51, %v3224_v51 }
 0x561   : > { %3632 = vst.msk [vmem:[%s5615_s30 + $0xd8] sm:$0xf] %vm625_vm11, %v3231_v37 }
 0x562   : > { %v3217_v18 = vpop.permute.xlu0 %3216 }
 0x563   : > { %v3225_v21 = vmul.f32 %v3217_v18, %v6628_v33 }
 0x565   : > { %v3232_v31 = vpack.c.bf16 %v3225_v21, %v3225_v21 }
 0x567   : > { %v3241_v53 = vsel %vm5657_vm15, %v3232_v31, %v3633_v38 }
 0x568   : > { %3634 = vst [vmem:[%s5615_s30 + $0xdc] sm:$0x1] %v3241_v53 }
 0x569 PF: > { %s13_s12 = sadd.s32 1, %s3900_s12  }
 0x56a   : > { %p10_p4 = scmp.ge.s32.totalorder %s13_s12, 4  }
 0x56c   :  { %12 = sbr.rel (!%p10_p4) target bundleno = 1 (0x1), region = 81 }

</bundles_post_ra>
